<compile_context>
chip_gen: v5e
topology: v5e:2x2
jax: 0.10.0
libtpu: 0.0.40
codegen_flags: <defaults>
</compile_context>

<pallas_src>
import functools

import jax
import jax.numpy as jnp
from jax import lax
from jax.experimental import pallas as pl
from jax.experimental.pallas import tpu as pltpu


# ----------------------------- fused Pallas kernel ---------------------------

def fused_kernel(xoh_ref, wemb_ref, aggm_ref, wg_ref, bg_ref, mmean_ref,
                 wih_ref, blstm_ref, wdec_ref, bpred_ref, out_ref):
    # Whole-batch fused forward, feature-major (batch folded into lanes).
    #   xoh_ref   : (C+nc+1, N*M)   channels (+ ones row for bias) x points
    #   wemb_ref  : (2E, C+nc+1)    block-diag embed weight, bias last column
    #   aggm_ref  : (N*M, N*M)      kron(I_{N*S}, A) graph aggregation
    #   wg_ref    : (D, 2E), bg_ref: (D, 1)
    #   mmean_ref : (N*M, N*V)      temporal-mean selector
    #   wih_ref   : (4H, D), blstm_ref: (4H, 1)
    #   wdec_ref  : (pad8(4H+out), H)  [w_hh^T ; (w_enc@w_out)^T ; 0-pad]
    #   bpred_ref : (out_dim, 1)
    #   out_ref   : (out_dim, pred_len*N*V)   lane order (t, n, v)
    f32 = jnp.float32
    fourH = wih_ref.shape[0]
    H = wdec_ref.shape[1]
    out_dim, L = out_ref.shape
    NV = mmean_ref.shape[1]
    pred_len = L // NV

    # --- EmbedLayer: single matmul (bias folded via the ones row).
    embT = jnp.dot(wemb_ref[...], xoh_ref[...], preferred_element_type=f32)

    # --- ST-GCN: graph aggregation over all N*S frames in one matmul,
    # 1x1 channel projection + ReLU, temporal mean as a matmul.
    # TODO(synk): STGCN3DModule source was not provided; this block is a stand-in.
    # TODO(synk): kron(I_{N*S}, A) grows O((N*S*V)^2); replace with a per-frame
    #             contraction against A if N or S ever grows.
    aggT = jnp.dot(embT, aggm_ref[...], preferred_element_type=f32)     # (2E, NM)
    yT = jnp.maximum(
        jnp.dot(wg_ref[...], aggT, preferred_element_type=f32) + bg_ref[...],
        0.0)                                                            # (D, NM)
    featsT = jnp.dot(yT, mmean_ref[...], preferred_element_type=f32)    # (D, NV)

    # --- LSTM decoder (gate slices on the sublane axis).  Decoder input is the
    # same feature every step -> input projection hoisted out of the loop.
    xprojT = (jnp.dot(wih_ref[...], featsT, preferred_element_type=f32)
              + blstm_ref[...])                                         # (4H, NV)
    wdec = wdec_ref[...]

    def cell(gates, c):
        i_g = jax.nn.sigmoid(gates[0 * H:1 * H])
        f_g = jax.nn.sigmoid(gates[1 * H:2 * H])
        g_g = jnp.tanh(gates[2 * H:3 * H])
        o_g = jax.nn.sigmoid(gates[3 * H:4 * H])
        c_new = f_g * c + i_g * g_g
        return o_g * jnp.tanh(c_new), c_new

    # Step 0: h_0 = 0 so w_hh @ h_0 == 0 -> gates are just xproj (matmul skipped).
    h, c = cell(xprojT, jnp.zeros((H, NV), f32))

    # Steps 1..pred_len-1: ONE merged matmul per step -> this step's gate
    # pre-activations (rows :4H) and the PREVIOUS step's raw prediction
    # (rows 4H:4H+out_dim).
    raw_preds = []
    for _ in range(pred_len - 1):                  # static, fully unrolled
        r = jnp.dot(wdec, h, preferred_element_type=f32)        # (pad8, NV)
        raw_preds.append(r[fourH:fourH + out_dim])
        h, c = cell(xprojT + r[:fourH], c)
    # Trailing prediction from the final hidden state.
    raw_preds.append(jnp.dot(wdec[fourH:fourH + out_dim], h,
                             preferred_element_type=f32))

    # One lane-dense block, one activation pass, one store.
    p = jnp.concatenate(raw_preds, axis=1) + bpred_ref[...]     # (out, t*N*V)
    # output_activation: identity on mu (rows 0-1), exp on sigmas (2-3),
    # tanh on corr (4).
    # TODO(synk): output_activation was not defined in the provided source.
    row = lax.broadcasted_iota(jnp.int32, p.shape, 0)
    out_ref[...] = jnp.where(row < 2, p,
                             jnp.where(row < 4, jnp.exp(p), jnp.tanh(p)))


# ----------------------------- wrapper ----------------------------------------

def _full_spec(shape):
    nd = len(shape)
    return pl.BlockSpec(shape, lambda i, _nd=nd: (0,) * _nd)


@functools.partial(jax.jit, static_argnums=(4,))
def stgcn3d_gep_forward(x, A, one_hots, p, pred_len):
    # x: (N, C_in, T, H, V)   one_hots: (N, nc, T, H, V)   A: (V, V)
    N, C, T, Hs, V = x.shape
    nc = one_hots.shape[1]
    S = T * Hs
    M = S * V
    E = p['w_dyn'].shape[1]
    D = p['w_g'].shape[1]
    Hc = p['w_hh'].shape[0]
    out_dim = p['w_out'].shape[1]
    f32 = jnp.float32

    # Batch folded into lanes: columns ordered (n, s, v); the ones row folds
    # the embed bias into the matmul (contraction dim = exactly 8 sublanes).
    xoh = jnp.concatenate([x, one_hots], axis=1).reshape(N, C + nc, M)
    xoh = jnp.transpose(xoh, (1, 0, 2)).reshape(C + nc, N * M)
    xoh = jnp.concatenate([xoh, jnp.ones((1, N * M), f32)], axis=0)

    # Tiny weight re-packing (fuses into the jit; done at full precision).
    w_emb = jnp.zeros((C + nc, 2 * E), f32)
    w_emb = w_emb.at[:C, :E].set(p['w_dyn']).at[C:, E:].set(p['w_oh'])
    b_emb = jnp.concatenate([p['b_dyn'].reshape(-1), p['b_oh'].reshape(-1)])
    w_embT = jnp.concatenate([w_emb.T, b_emb[:, None]], axis=1)     # (2E, C+nc+1)
    agg_m = jnp.kron(jnp.eye(N * S, dtype=f32), A)                  # (NM, NM)
    w_gT = p['w_g'].T                                               # (D, 2E)
    b_gT = p['b_g'].reshape(D, 1)
    m_mean = jnp.kron(jnp.eye(N, dtype=f32),
                      jnp.tile(jnp.eye(V, dtype=f32), (S, 1)) / S)  # (NM, NV)
    w_ihT = p['w_ih'].T                                             # (4H, D)
    b_lstmT = p['b_lstm'].reshape(4 * Hc, 1)
    # PredictionLayer: enc_h -> out is affine -> fold; then stack on top of
    # w_hh^T so one matmul/step yields gates + previous prediction.
    w_predT = jnp.matmul(p['w_enc'], p['w_out'], precision='highest').T
    b_predT = (jnp.matmul(p['b_enc'], p['w_out'], precision='highest')
               + p['b_out']).reshape(out_dim, 1)
    pad = (-(4 * Hc + out_dim)) % 8
    w_dec = jnp.concatenate(
        [p['w_hh'].T, w_predT, jnp.zeros((pad, Hc), f32)], axis=0)  # (pad8, H)

    weights = (w_embT, agg_m, w_gT, b_gT, m_mean, w_ihT, b_lstmT,
               w_dec, b_predT)

    out_t = pl.pallas_call(
        fused_kernel,
        out_shape=jax.ShapeDtypeStruct((out_dim, pred_len * N * V), f32),
        grid=(1,),                         # single step: whole batch in lanes
        in_specs=[_full_spec(xoh.shape)]
                 + [_full_spec(w.shape) for w in weights],
        out_specs=pl.BlockSpec((out_dim, pred_len * N * V), lambda i: (0, 0)),
        compiler_params=pltpu.CompilerParams(
            dimension_semantics=("arbitrary",)),
    )(xoh, *weights)

    # (out_dim, pred_len*N*V) lane order (t, n, v) -> (N, pred_len, V, out_dim)
    out = out_t.reshape(out_dim, pred_len, N, V)
    return jnp.transpose(out, (2, 1, 3, 0))


# ----------------------------- plain-JAX reference ---------------------------

def reference_forward(x, A, one_hots, p, pred_len):
    N, C, T, Hs, V = x.shape
    E = p['w_dyn'].shape[1]
    x_cl = jnp.transpose(x, (0, 2, 3, 4, 1))
    oh_cl = jnp.transpose(one_hots, (0, 2, 3, 4, 1))
    dyn = jnp.matmul(x_cl, p['w_dyn']) + p['b_dyn']
    oh = jnp.matmul(oh_cl, p['w_oh']) + p['b_oh']
    emb = jnp.concatenate([dyn, oh], -1).reshape(N, T * Hs, V, 2 * E)
    xa = jnp.einsum('vw,nsvc->nswc', A, emb)
    y = jnp.maximum(jnp.matmul(xa, p['w_g']) + p['b_g'], 0.0)
    feats = jnp.mean(y, axis=1)
    H = p['w_hh'].shape[0]
    x_proj = jnp.matmul(feats, p['w_ih']) + p['b_lstm']
    h = jnp.zeros((N, V, H), jnp.float32)
    c = jnp.zeros((N, V, H), jnp.float32)
    outs = []
    for _ in range(pred_len):
        gates = x_proj + jnp.matmul(h, p['w_hh'])
        i_g = jax.nn.sigmoid(gates[..., 0:H])
        f_g = jax.nn.sigmoid(gates[..., H:2 * H])
        g_g = jnp.tanh(gates[..., 2 * H:3 * H])
        o_g = jax.nn.sigmoid(gates[..., 3 * H:4 * H])
        c = f_g * c + i_g * g_g
        h = o_g * jnp.tanh(c)
        e = jnp.matmul(h, p['w_enc']) + p['b_enc']
        o = jnp.matmul(e, p['w_out']) + p['b_out']
        outs.append(jnp.concatenate(
            [o[..., :2], jnp.exp(o[..., 2:4]), jnp.tanh(o[..., 4:5])], -1))
    return jnp.stack(outs, axis=1)


# ----------------------------- params -----------------------------------------

def init_params(key, in_channels, nc, emb_dim, cell_input_dim, cell_h_dim,
                e_h_dim, out_dim):
    ks = jax.random.split(key, 13)
    s = 0.1

    def rn(k, shape):
        return s * jax.random.normal(k, shape, jnp.float32)

    return dict(
        # EmbedLayer (Conv3d with kernel (1,1,1)) == per-point linear
        w_dyn=rn(ks[0], (in_channels, emb_dim)), b_dyn=rn(ks[1], (1, emb_dim)),
        w_oh=rn(ks[2], (nc, emb_dim)), b_oh=rn(ks[3], (1, emb_dim)),
        # STGCN stand-in: 1x1 projection 2E -> cell_input_dim
        w_g=rn(ks[4], (2 * emb_dim, cell_input_dim)),
        b_g=rn(ks[5], (1, cell_input_dim)),
        # LSTM decoder (PyTorch gate order i, f, g, o; b = b_ih + b_hh folded)
        w_ih=rn(ks[6], (cell_input_dim, 4 * cell_h_dim)),
        w_hh=rn(ks[7], (cell_h_dim, 4 * cell_h_dim)),
        b_lstm=rn(ks[8], (1, 4 * cell_h_dim)),
        # PredictionLayer
        w_enc=rn(ks[9], (cell_h_dim, e_h_dim)), b_enc=rn(ks[10], (1, e_h_dim)),
        w_out=rn(ks[11], (e_h_dim, out_dim)), b_out=rn(ks[12], (1, out_dim)),
    )


# ----------------------------- main -------------------------------------------

if __name__ == "__main__":
    # args: in_channels=4, nc=3, emb_dim=16, emb_kernel_size=1,
    #       cell_input_dim=32, cell_h_dim=32, e_h_dim=32, out_dim=5,
    #       pred_len=6, gru=False
    N, C_IN, NC, T, HS, V = 2, 4, 3, 8, 1, 16
    EMB, D_CELL, H_CELL, E_H, OUT, PRED = 16, 32, 32, 32, 5, 6

    key = jax.random.PRNGKey(0)
    kx, ko, ka, kp = jax.random.split(key, 4)
    x = jax.random.normal(kx, (N, C_IN, T, HS, V), jnp.float32)
    one_hots = jax.random.normal(ko, (N, NC, T, HS, V), jnp.float32)
    A = jax.nn.softmax(jax.random.normal(ka, (V, V), jnp.float32), axis=0)
    params = init_params(kp, C_IN, NC, EMB, D_CELL, H_CELL, E_H, OUT)

    out = stgcn3d_gep_forward(x, A, one_hots, params, PRED)
    out = jax.block_until_ready(out)
    assert out.shape == (N, PRED, V, OUT), out.shape

    with jax.default_matmul_precision("highest"):
        ref = reference_forward(x, A, one_hots, params, PRED)
    ref = jax.block_until_ready(ref)
    err = float(jnp.max(jnp.abs(out - ref)))
    assert err < 1e-2, f"max abs err {err}"

    print("KERNEL_OK")
</pallas_src>

<mosaic_0001>
module attributes {stable_mosaic.version = 11 : i64} {
  func.func @fused_kernel(%arg0: i32, %arg1: memref<8x256xf32, #tpu.memory_space<vmem>>, %arg2: memref<32x8xf32, #tpu.memory_space<vmem>>, %arg3: memref<256x256xf32, #tpu.memory_space<vmem>>, %arg4: memref<32x32xf32, #tpu.memory_space<vmem>>, %arg5: memref<32x1xf32, #tpu.memory_space<vmem>>, %arg6: memref<256x32xf32, #tpu.memory_space<vmem>>, %arg7: memref<128x32xf32, #tpu.memory_space<vmem>>, %arg8: memref<128x1xf32, #tpu.memory_space<vmem>>, %arg9: memref<136x32xf32, #tpu.memory_space<vmem>>, %arg10: memref<5x1xf32, #tpu.memory_space<vmem>>, %arg11: memref<5x192xf32, #tpu.memory_space<vmem>>) attributes {dimension_semantics = [#tpu.dimension_semantics<arbitrary>], iteration_bounds = array<i64: 1>, scalar_prefetch = 0 : i64, scratch_operands = 0 : i64, tpu.core_type = #tpu.core_type<tc>, window_params = [{pipeline_mode = #tpu.pipeline_mode<synchronous>, transform_indices = @transform_0, window_bounds = array<i64: 8, 256>}, {pipeline_mode = #tpu.pipeline_mode<synchronous>, transform_indices = @transform_1, window_bounds = array<i64: 32, 8>}, {pipeline_mode = #tpu.pipeline_mode<synchronous>, transform_indices = @transform_2, window_bounds = array<i64: 256, 256>}, {pipeline_mode = #tpu.pipeline_mode<synchronous>, transform_indices = @transform_3, window_bounds = array<i64: 32, 32>}, {pipeline_mode = #tpu.pipeline_mode<synchronous>, transform_indices = @transform_4, window_bounds = array<i64: 32, 1>}, {pipeline_mode = #tpu.pipeline_mode<synchronous>, transform_indices = @transform_5, window_bounds = array<i64: 256, 32>}, {pipeline_mode = #tpu.pipeline_mode<synchronous>, transform_indices = @transform_6, window_bounds = array<i64: 128, 32>}, {pipeline_mode = #tpu.pipeline_mode<synchronous>, transform_indices = @transform_7, window_bounds = array<i64: 128, 1>}, {pipeline_mode = #tpu.pipeline_mode<synchronous>, transform_indices = @transform_8, window_bounds = array<i64: 136, 32>}, {pipeline_mode = #tpu.pipeline_mode<synchronous>, transform_indices = @transform_9, window_bounds = array<i64: 5, 1>}, {pipeline_mode = #tpu.pipeline_mode<synchronous>, transform_indices = @transform_10, window_bounds = array<i64: 5, 192>}]} {
    %c0 = arith.constant 0 : index
    %c0_0 = arith.constant 0 : index
    %0 = vector.load %arg2[%c0, %c0_0] : memref<32x8xf32, #tpu.memory_space<vmem>>, vector<32x8xf32>
    %c0_1 = arith.constant 0 : index
    %c0_2 = arith.constant 0 : index
    %1 = vector.load %arg1[%c0_1, %c0_2] : memref<8x256xf32, #tpu.memory_space<vmem>>, vector<8x256xf32>
    %cst = arith.constant dense<0.000000e+00> : vector<32x256xf32>
    %2 = tpu.matmul %0, %1, %cst {dimension_numbers = #tpu.dot_dimension_numbers<[1], [0], [0], [1], [0, 0, 1, 1], [], []>} : vector<32x8xf32>, vector<8x256xf32>, vector<32x256xf32> -> vector<32x256xf32>
    %c0_3 = arith.constant 0 : index
    %c0_4 = arith.constant 0 : index
    %3 = vector.load %arg3[%c0_3, %c0_4] : memref<256x256xf32, #tpu.memory_space<vmem>>, vector<256x256xf32>
    %cst_5 = arith.constant dense<0.000000e+00> : vector<32x256xf32>
    %4 = tpu.matmul %2, %3, %cst_5 {dimension_numbers = #tpu.dot_dimension_numbers<[1], [0], [0], [1], [0, 0, 1, 1], [], []>} : vector<32x256xf32>, vector<256x256xf32>, vector<32x256xf32> -> vector<32x256xf32>
    %c0_6 = arith.constant 0 : index
    %c0_7 = arith.constant 0 : index
    %5 = vector.load %arg4[%c0_6, %c0_7] : memref<32x32xf32, #tpu.memory_space<vmem>>, vector<32x32xf32>
    %cst_8 = arith.constant dense<0.000000e+00> : vector<32x256xf32>
    %6 = tpu.matmul %5, %4, %cst_8 {dimension_numbers = #tpu.dot_dimension_numbers<[1], [0], [0], [1], [0, 0, 1, 1], [], []>} : vector<32x32xf32>, vector<32x256xf32>, vector<32x256xf32> -> vector<32x256xf32>
    %c0_9 = arith.constant 0 : index
    %c0_10 = arith.constant 0 : index
    %7 = vector.load %arg5[%c0_9, %c0_10] : memref<32x1xf32, #tpu.memory_space<vmem>>, vector<32x1xf32>
    %8 = vector.broadcast %7 : vector<32x1xf32> to vector<32x256xf32>
    %9 = arith.addf %6, %8 : vector<32x256xf32>
    %cst_11 = arith.constant 0.000000e+00 : f32
    %10 = vector.broadcast %cst_11 : f32 to vector<32x256xf32>
    %11 = arith.maximumf %9, %10 : vector<32x256xf32>
    %c0_12 = arith.constant 0 : index
    %c0_13 = arith.constant 0 : index
    %12 = vector.load %arg6[%c0_12, %c0_13] : memref<256x32xf32, #tpu.memory_space<vmem>>, vector<256x32xf32>
    %cst_14 = arith.constant dense<0.000000e+00> : vector<32x32xf32>
    %13 = tpu.matmul %11, %12, %cst_14 {dimension_numbers = #tpu.dot_dimension_numbers<[1], [0], [0], [1], [0, 0, 1, 1], [], []>} : vector<32x256xf32>, vector<256x32xf32>, vector<32x32xf32> -> vector<32x32xf32>
    %c0_15 = arith.constant 0 : index
    %c0_16 = arith.constant 0 : index
    %14 = vector.load %arg7[%c0_15, %c0_16] : memref<128x32xf32, #tpu.memory_space<vmem>>, vector<128x32xf32>
    %cst_17 = arith.constant dense<0.000000e+00> : vector<128x32xf32>
    %15 = tpu.matmul %14, %13, %cst_17 {dimension_numbers = #tpu.dot_dimension_numbers<[1], [0], [0], [1], [0, 0, 1, 1], [], []>} : vector<128x32xf32>, vector<32x32xf32>, vector<128x32xf32> -> vector<128x32xf32>
    %c0_18 = arith.constant 0 : index
    %c0_19 = arith.constant 0 : index
    %16 = vector.load %arg8[%c0_18, %c0_19] : memref<128x1xf32, #tpu.memory_space<vmem>>, vector<128x1xf32>
    %17 = vector.broadcast %16 : vector<128x1xf32> to vector<128x32xf32>
    %18 = arith.addf %15, %17 : vector<128x32xf32>
    %c0_20 = arith.constant 0 : index
    %c0_21 = arith.constant 0 : index
    %19 = vector.load %arg9[%c0_20, %c0_21] : memref<136x32xf32, #tpu.memory_space<vmem>>, vector<136x32xf32>
    %cst_22 = arith.constant 0.000000e+00 : f32
    %20 = vector.broadcast %cst_22 : f32 to vector<32x32xf32>
    %21 = vector.extract_strided_slice %18 {offsets = [0, 0], sizes = [32, 32], strides = [1, 1]} : vector<128x32xf32> to vector<32x32xf32>
    %22 = arith.negf %21 : vector<32x32xf32>
    %23 = math.exp %22 : vector<32x32xf32>
    %cst_23 = arith.constant 1.000000e+00 : f32
    %24 = vector.broadcast %cst_23 : f32 to vector<32x32xf32>
    %25 = arith.addf %24, %23 : vector<32x32xf32>
    %26 = arith.divf %24, %25 : vector<32x32xf32>
    %27 = vector.extract_strided_slice %18 {offsets = [32, 0], sizes = [32, 32], strides = [1, 1]} : vector<128x32xf32> to vector<32x32xf32>
    %28 = arith.negf %27 : vector<32x32xf32>
    %29 = math.exp %28 : vector<32x32xf32>
    %cst_24 = arith.constant 1.000000e+00 : f32
    %30 = vector.broadcast %cst_24 : f32 to vector<32x32xf32>
    %31 = arith.addf %30, %29 : vector<32x32xf32>
    %32 = arith.divf %30, %31 : vector<32x32xf32>
    %33 = vector.extract_strided_slice %18 {offsets = [64, 0], sizes = [32, 32], strides = [1, 1]} : vector<128x32xf32> to vector<32x32xf32>
    %34 = math.tanh %33 : vector<32x32xf32>
    %35 = vector.extract_strided_slice %18 {offsets = [96, 0], sizes = [32, 32], strides = [1, 1]} : vector<128x32xf32> to vector<32x32xf32>
    %36 = arith.negf %35 : vector<32x32xf32>
    %37 = math.exp %36 : vector<32x32xf32>
    %cst_25 = arith.constant 1.000000e+00 : f32
    %38 = vector.broadcast %cst_25 : f32 to vector<32x32xf32>
    %39 = arith.addf %38, %37 : vector<32x32xf32>
    %40 = arith.divf %38, %39 : vector<32x32xf32>
    %41 = arith.mulf %32, %20 : vector<32x32xf32>
    %42 = arith.mulf %26, %34 : vector<32x32xf32>
    %43 = arith.addf %41, %42 : vector<32x32xf32>
    %44 = math.tanh %43 : vector<32x32xf32>
    %45 = arith.mulf %40, %44 : vector<32x32xf32>
    %cst_26 = arith.constant dense<0.000000e+00> : vector<136x32xf32>
    %46 = tpu.matmul %19, %45, %cst_26 {dimension_numbers = #tpu.dot_dimension_numbers<[1], [0], [0], [1], [0, 0, 1, 1], [], []>} : vector<136x32xf32>, vector<32x32xf32>, vector<136x32xf32> -> vector<136x32xf32>
    %47 = vector.extract_strided_slice %46 {offsets = [128, 0], sizes = [5, 32], strides = [1, 1]} : vector<136x32xf32> to vector<5x32xf32>
    %48 = vector.extract_strided_slice %46 {offsets = [0, 0], sizes = [128, 32], strides = [1, 1]} : vector<136x32xf32> to vector<128x32xf32>
    %49 = arith.addf %18, %48 : vector<128x32xf32>
    %50 = vector.extract_strided_slice %49 {offsets = [0, 0], sizes = [32, 32], strides = [1, 1]} : vector<128x32xf32> to vector<32x32xf32>
    %51 = arith.negf %50 : vector<32x32xf32>
    %52 = math.exp %51 : vector<32x32xf32>
    %cst_27 = arith.constant 1.000000e+00 : f32
    %53 = vector.broadcast %cst_27 : f32 to vector<32x32xf32>
    %54 = arith.addf %53, %52 : vector<32x32xf32>
    %55 = arith.divf %53, %54 : vector<32x32xf32>
    %56 = vector.extract_strided_slice %49 {offsets = [32, 0], sizes = [32, 32], strides = [1, 1]} : vector<128x32xf32> to vector<32x32xf32>
    %57 = arith.negf %56 : vector<32x32xf32>
    %58 = math.exp %57 : vector<32x32xf32>
    %cst_28 = arith.constant 1.000000e+00 : f32
    %59 = vector.broadcast %cst_28 : f32 to vector<32x32xf32>
    %60 = arith.addf %59, %58 : vector<32x32xf32>
    %61 = arith.divf %59, %60 : vector<32x32xf32>
    %62 = vector.extract_strided_slice %49 {offsets = [64, 0], sizes = [32, 32], strides = [1, 1]} : vector<128x32xf32> to vector<32x32xf32>
    %63 = math.tanh %62 : vector<32x32xf32>
    %64 = vector.extract_strided_slice %49 {offsets = [96, 0], sizes = [32, 32], strides = [1, 1]} : vector<128x32xf32> to vector<32x32xf32>
    %65 = arith.negf %64 : vector<32x32xf32>
    %66 = math.exp %65 : vector<32x32xf32>
    %cst_29 = arith.constant 1.000000e+00 : f32
    %67 = vector.broadcast %cst_29 : f32 to vector<32x32xf32>
    %68 = arith.addf %67, %66 : vector<32x32xf32>
    %69 = arith.divf %67, %68 : vector<32x32xf32>
    %70 = arith.mulf %61, %43 : vector<32x32xf32>
    %71 = arith.mulf %55, %63 : vector<32x32xf32>
    %72 = arith.addf %70, %71 : vector<32x32xf32>
    %73 = math.tanh %72 : vector<32x32xf32>
    %74 = arith.mulf %69, %73 : vector<32x32xf32>
    %cst_30 = arith.constant dense<0.000000e+00> : vector<136x32xf32>
    %75 = tpu.matmul %19, %74, %cst_30 {dimension_numbers = #tpu.dot_dimension_numbers<[1], [0], [0], [1], [0, 0, 1, 1], [], []>} : vector<136x32xf32>, vector<32x32xf32>, vector<136x32xf32> -> vector<136x32xf32>
    %76 = vector.extract_strided_slice %75 {offsets = [128, 0], sizes = [5, 32], strides = [1, 1]} : vector<136x32xf32> to vector<5x32xf32>
    %77 = vector.extract_strided_slice %75 {offsets = [0, 0], sizes = [128, 32], strides = [1, 1]} : vector<136x32xf32> to vector<128x32xf32>
    %78 = arith.addf %18, %77 : vector<128x32xf32>
    %79 = vector.extract_strided_slice %78 {offsets = [0, 0], sizes = [32, 32], strides = [1, 1]} : vector<128x32xf32> to vector<32x32xf32>
    %80 = arith.negf %79 : vector<32x32xf32>
    %81 = math.exp %80 : vector<32x32xf32>
    %cst_31 = arith.constant 1.000000e+00 : f32
    %82 = vector.broadcast %cst_31 : f32 to vector<32x32xf32>
    %83 = arith.addf %82, %81 : vector<32x32xf32>
    %84 = arith.divf %82, %83 : vector<32x32xf32>
    %85 = vector.extract_strided_slice %78 {offsets = [32, 0], sizes = [32, 32], strides = [1, 1]} : vector<128x32xf32> to vector<32x32xf32>
    %86 = arith.negf %85 : vector<32x32xf32>
    %87 = math.exp %86 : vector<32x32xf32>
    %cst_32 = arith.constant 1.000000e+00 : f32
    %88 = vector.broadcast %cst_32 : f32 to vector<32x32xf32>
    %89 = arith.addf %88, %87 : vector<32x32xf32>
    %90 = arith.divf %88, %89 : vector<32x32xf32>
    %91 = vector.extract_strided_slice %78 {offsets = [64, 0], sizes = [32, 32], strides = [1, 1]} : vector<128x32xf32> to vector<32x32xf32>
    %92 = math.tanh %91 : vector<32x32xf32>
    %93 = vector.extract_strided_slice %78 {offsets = [96, 0], sizes = [32, 32], strides = [1, 1]} : vector<128x32xf32> to vector<32x32xf32>
    %94 = arith.negf %93 : vector<32x32xf32>
    %95 = math.exp %94 : vector<32x32xf32>
    %cst_33 = arith.constant 1.000000e+00 : f32
    %96 = vector.broadcast %cst_33 : f32 to vector<32x32xf32>
    %97 = arith.addf %96, %95 : vector<32x32xf32>
    %98 = arith.divf %96, %97 : vector<32x32xf32>
    %99 = arith.mulf %90, %72 : vector<32x32xf32>
    %100 = arith.mulf %84, %92 : vector<32x32xf32>
    %101 = arith.addf %99, %100 : vector<32x32xf32>
    %102 = math.tanh %101 : vector<32x32xf32>
    %103 = arith.mulf %98, %102 : vector<32x32xf32>
    %cst_34 = arith.constant dense<0.000000e+00> : vector<136x32xf32>
    %104 = tpu.matmul %19, %103, %cst_34 {dimension_numbers = #tpu.dot_dimension_numbers<[1], [0], [0], [1], [0, 0, 1, 1], [], []>} : vector<136x32xf32>, vector<32x32xf32>, vector<136x32xf32> -> vector<136x32xf32>
    %105 = vector.extract_strided_slice %104 {offsets = [128, 0], sizes = [5, 32], strides = [1, 1]} : vector<136x32xf32> to vector<5x32xf32>
    %106 = vector.extract_strided_slice %104 {offsets = [0, 0], sizes = [128, 32], strides = [1, 1]} : vector<136x32xf32> to vector<128x32xf32>
    %107 = arith.addf %18, %106 : vector<128x32xf32>
    %108 = vector.extract_strided_slice %107 {offsets = [0, 0], sizes = [32, 32], strides = [1, 1]} : vector<128x32xf32> to vector<32x32xf32>
    %109 = arith.negf %108 : vector<32x32xf32>
    %110 = math.exp %109 : vector<32x32xf32>
    %cst_35 = arith.constant 1.000000e+00 : f32
    %111 = vector.broadcast %cst_35 : f32 to vector<32x32xf32>
    %112 = arith.addf %111, %110 : vector<32x32xf32>
    %113 = arith.divf %111, %112 : vector<32x32xf32>
    %114 = vector.extract_strided_slice %107 {offsets = [32, 0], sizes = [32, 32], strides = [1, 1]} : vector<128x32xf32> to vector<32x32xf32>
    %115 = arith.negf %114 : vector<32x32xf32>
    %116 = math.exp %115 : vector<32x32xf32>
    %cst_36 = arith.constant 1.000000e+00 : f32
    %117 = vector.broadcast %cst_36 : f32 to vector<32x32xf32>
    %118 = arith.addf %117, %116 : vector<32x32xf32>
    %119 = arith.divf %117, %118 : vector<32x32xf32>
    %120 = vector.extract_strided_slice %107 {offsets = [64, 0], sizes = [32, 32], strides = [1, 1]} : vector<128x32xf32> to vector<32x32xf32>
    %121 = math.tanh %120 : vector<32x32xf32>
    %122 = vector.extract_strided_slice %107 {offsets = [96, 0], sizes = [32, 32], strides = [1, 1]} : vector<128x32xf32> to vector<32x32xf32>
    %123 = arith.negf %122 : vector<32x32xf32>
    %124 = math.exp %123 : vector<32x32xf32>
    %cst_37 = arith.constant 1.000000e+00 : f32
    %125 = vector.broadcast %cst_37 : f32 to vector<32x32xf32>
    %126 = arith.addf %125, %124 : vector<32x32xf32>
    %127 = arith.divf %125, %126 : vector<32x32xf32>
    %128 = arith.mulf %119, %101 : vector<32x32xf32>
    %129 = arith.mulf %113, %121 : vector<32x32xf32>
    %130 = arith.addf %128, %129 : vector<32x32xf32>
    %131 = math.tanh %130 : vector<32x32xf32>
    %132 = arith.mulf %127, %131 : vector<32x32xf32>
    %cst_38 = arith.constant dense<0.000000e+00> : vector<136x32xf32>
    %133 = tpu.matmul %19, %132, %cst_38 {dimension_numbers = #tpu.dot_dimension_numbers<[1], [0], [0], [1], [0, 0, 1, 1], [], []>} : vector<136x32xf32>, vector<32x32xf32>, vector<136x32xf32> -> vector<136x32xf32>
    %134 = vector.extract_strided_slice %133 {offsets = [128, 0], sizes = [5, 32], strides = [1, 1]} : vector<136x32xf32> to vector<5x32xf32>
    %135 = vector.extract_strided_slice %133 {offsets = [0, 0], sizes = [128, 32], strides = [1, 1]} : vector<136x32xf32> to vector<128x32xf32>
    %136 = arith.addf %18, %135 : vector<128x32xf32>
    %137 = vector.extract_strided_slice %136 {offsets = [0, 0], sizes = [32, 32], strides = [1, 1]} : vector<128x32xf32> to vector<32x32xf32>
    %138 = arith.negf %137 : vector<32x32xf32>
    %139 = math.exp %138 : vector<32x32xf32>
    %cst_39 = arith.constant 1.000000e+00 : f32
    %140 = vector.broadcast %cst_39 : f32 to vector<32x32xf32>
    %141 = arith.addf %140, %139 : vector<32x32xf32>
    %142 = arith.divf %140, %141 : vector<32x32xf32>
    %143 = vector.extract_strided_slice %136 {offsets = [32, 0], sizes = [32, 32], strides = [1, 1]} : vector<128x32xf32> to vector<32x32xf32>
    %144 = arith.negf %143 : vector<32x32xf32>
    %145 = math.exp %144 : vector<32x32xf32>
    %cst_40 = arith.constant 1.000000e+00 : f32
    %146 = vector.broadcast %cst_40 : f32 to vector<32x32xf32>
    %147 = arith.addf %146, %145 : vector<32x32xf32>
    %148 = arith.divf %146, %147 : vector<32x32xf32>
    %149 = vector.extract_strided_slice %136 {offsets = [64, 0], sizes = [32, 32], strides = [1, 1]} : vector<128x32xf32> to vector<32x32xf32>
    %150 = math.tanh %149 : vector<32x32xf32>
    %151 = vector.extract_strided_slice %136 {offsets = [96, 0], sizes = [32, 32], strides = [1, 1]} : vector<128x32xf32> to vector<32x32xf32>
    %152 = arith.negf %151 : vector<32x32xf32>
    %153 = math.exp %152 : vector<32x32xf32>
    %cst_41 = arith.constant 1.000000e+00 : f32
    %154 = vector.broadcast %cst_41 : f32 to vector<32x32xf32>
    %155 = arith.addf %154, %153 : vector<32x32xf32>
    %156 = arith.divf %154, %155 : vector<32x32xf32>
    %157 = arith.mulf %148, %130 : vector<32x32xf32>
    %158 = arith.mulf %142, %150 : vector<32x32xf32>
    %159 = arith.addf %157, %158 : vector<32x32xf32>
    %160 = math.tanh %159 : vector<32x32xf32>
    %161 = arith.mulf %156, %160 : vector<32x32xf32>
    %cst_42 = arith.constant dense<0.000000e+00> : vector<136x32xf32>
    %162 = tpu.matmul %19, %161, %cst_42 {dimension_numbers = #tpu.dot_dimension_numbers<[1], [0], [0], [1], [0, 0, 1, 1], [], []>} : vector<136x32xf32>, vector<32x32xf32>, vector<136x32xf32> -> vector<136x32xf32>
    %163 = vector.extract_strided_slice %162 {offsets = [128, 0], sizes = [5, 32], strides = [1, 1]} : vector<136x32xf32> to vector<5x32xf32>
    %164 = vector.extract_strided_slice %162 {offsets = [0, 0], sizes = [128, 32], strides = [1, 1]} : vector<136x32xf32> to vector<128x32xf32>
    %165 = arith.addf %18, %164 : vector<128x32xf32>
    %166 = vector.extract_strided_slice %165 {offsets = [0, 0], sizes = [32, 32], strides = [1, 1]} : vector<128x32xf32> to vector<32x32xf32>
    %167 = arith.negf %166 : vector<32x32xf32>
    %168 = math.exp %167 : vector<32x32xf32>
    %cst_43 = arith.constant 1.000000e+00 : f32
    %169 = vector.broadcast %cst_43 : f32 to vector<32x32xf32>
    %170 = arith.addf %169, %168 : vector<32x32xf32>
    %171 = arith.divf %169, %170 : vector<32x32xf32>
    %172 = vector.extract_strided_slice %165 {offsets = [32, 0], sizes = [32, 32], strides = [1, 1]} : vector<128x32xf32> to vector<32x32xf32>
    %173 = arith.negf %172 : vector<32x32xf32>
    %174 = math.exp %173 : vector<32x32xf32>
    %cst_44 = arith.constant 1.000000e+00 : f32
    %175 = vector.broadcast %cst_44 : f32 to vector<32x32xf32>
    %176 = arith.addf %175, %174 : vector<32x32xf32>
    %177 = arith.divf %175, %176 : vector<32x32xf32>
    %178 = vector.extract_strided_slice %165 {offsets = [64, 0], sizes = [32, 32], strides = [1, 1]} : vector<128x32xf32> to vector<32x32xf32>
    %179 = math.tanh %178 : vector<32x32xf32>
    %180 = vector.extract_strided_slice %165 {offsets = [96, 0], sizes = [32, 32], strides = [1, 1]} : vector<128x32xf32> to vector<32x32xf32>
    %181 = arith.negf %180 : vector<32x32xf32>
    %182 = math.exp %181 : vector<32x32xf32>
    %cst_45 = arith.constant 1.000000e+00 : f32
    %183 = vector.broadcast %cst_45 : f32 to vector<32x32xf32>
    %184 = arith.addf %183, %182 : vector<32x32xf32>
    %185 = arith.divf %183, %184 : vector<32x32xf32>
    %186 = arith.mulf %177, %159 : vector<32x32xf32>
    %187 = arith.mulf %171, %179 : vector<32x32xf32>
    %188 = arith.addf %186, %187 : vector<32x32xf32>
    %189 = math.tanh %188 : vector<32x32xf32>
    %190 = arith.mulf %185, %189 : vector<32x32xf32>
    %191 = vector.extract_strided_slice %19 {offsets = [128, 0], sizes = [5, 32], strides = [1, 1]} : vector<136x32xf32> to vector<5x32xf32>
    %cst_46 = arith.constant dense<0.000000e+00> : vector<5x32xf32>
    %192 = tpu.matmul %191, %190, %cst_46 {dimension_numbers = #tpu.dot_dimension_numbers<[1], [0], [0], [1], [0, 0, 1, 1], [], []>} : vector<5x32xf32>, vector<32x32xf32>, vector<5x32xf32> -> vector<5x32xf32>
    %193 = tpu.concatenate %47, %76, %105, %134, %163, %192 in 1 : vector<5x32xf32>, vector<5x32xf32>, vector<5x32xf32>, vector<5x32xf32>, vector<5x32xf32>, vector<5x32xf32> -> vector<5x192xf32>
    %c0_47 = arith.constant 0 : index
    %c0_48 = arith.constant 0 : index
    %194 = vector.load %arg10[%c0_47, %c0_48] : memref<5x1xf32, #tpu.memory_space<vmem>>, vector<5x1xf32>
    %195 = vector.broadcast %194 : vector<5x1xf32> to vector<5x192xf32>
    %196 = arith.addf %193, %195 : vector<5x192xf32>
    %197 = tpu.iota {dimensions = array<i32: 0>} : vector<5x192xi32>
    %c2_i32 = arith.constant 2 : i32
    %198 = vector.broadcast %c2_i32 : i32 to vector<5x192xi32>
    %199 = arith.cmpi slt, %197, %198 : vector<5x192xi32>
    %c4_i32 = arith.constant 4 : i32
    %200 = vector.broadcast %c4_i32 : i32 to vector<5x192xi32>
    %201 = arith.cmpi slt, %197, %200 : vector<5x192xi32>
    %202 = math.exp %196 : vector<5x192xf32>
    %203 = math.tanh %196 : vector<5x192xf32>
    %204 = arith.select %201, %202, %203 : vector<5x192xi1>, vector<5x192xf32>
    %205 = arith.select %199, %196, %204 : vector<5x192xi1>, vector<5x192xf32>
    %c0_49 = arith.constant 0 : index
    %c0_50 = arith.constant 0 : index
    %206 = vector.load %arg11[%c0_49, %c0_50] : memref<5x192xf32, #tpu.memory_space<vmem>>, vector<5x192xf32>
    tpu.vector_store %arg11[%c0_49, %c0_50], %205 {strides = array<i32>} : memref<5x192xf32, #tpu.memory_space<vmem>>, vector<5x192xf32>,
    return
  }
  func.func @transform_0(%arg0: i32) -> (i32, i32) {
    %c0_i32 = arith.constant 0 : i32
    %c0_i32_0 = arith.constant 0 : i32
    %c0_i32_1 = arith.constant 0 : i32
    return %c0_i32, %c0_i32_0 : i32, i32
  }
  func.func @transform_1(%arg0: i32) -> (i32, i32) {
    %c0_i32 = arith.constant 0 : i32
    %c0_i32_0 = arith.constant 0 : i32
    %c0_i32_1 = arith.constant 0 : i32
    return %c0_i32, %c0_i32_0 : i32, i32
  }
  func.func @transform_2(%arg0: i32) -> (i32, i32) {
    %c0_i32 = arith.constant 0 : i32
    %c0_i32_0 = arith.constant 0 : i32
    %c0_i32_1 = arith.constant 0 : i32
    return %c0_i32, %c0_i32_0 : i32, i32
  }
  func.func @transform_3(%arg0: i32) -> (i32, i32) {
    %c0_i32 = arith.constant 0 : i32
    %c0_i32_0 = arith.constant 0 : i32
    %c0_i32_1 = arith.constant 0 : i32
    return %c0_i32, %c0_i32_0 : i32, i32
  }
  func.func @transform_4(%arg0: i32) -> (i32, i32) {
    %c0_i32 = arith.constant 0 : i32
    %c0_i32_0 = arith.constant 0 : i32
    %c0_i32_1 = arith.constant 0 : i32
    return %c0_i32, %c0_i32_0 : i32, i32
  }
  func.func @transform_5(%arg0: i32) -> (i32, i32) {
    %c0_i32 = arith.constant 0 : i32
    %c0_i32_0 = arith.constant 0 : i32
    %c0_i32_1 = arith.constant 0 : i32
    return %c0_i32, %c0_i32_0 : i32, i32
  }
  func.func @transform_6(%arg0: i32) -> (i32, i32) {
    %c0_i32 = arith.constant 0 : i32
    %c0_i32_0 = arith.constant 0 : i32
    %c0_i32_1 = arith.constant 0 : i32
    return %c0_i32, %c0_i32_0 : i32, i32
  }
  func.func @transform_7(%arg0: i32) -> (i32, i32) {
    %c0_i32 = arith.constant 0 : i32
    %c0_i32_0 = arith.constant 0 : i32
    %c0_i32_1 = arith.constant 0 : i32
    return %c0_i32, %c0_i32_0 : i32, i32
  }
  func.func @transform_8(%arg0: i32) -> (i32, i32) {
    %c0_i32 = arith.constant 0 : i32
    %c0_i32_0 = arith.constant 0 : i32
    %c0_i32_1 = arith.constant 0 : i32
    return %c0_i32, %c0_i32_0 : i32, i32
  }
  func.func @transform_9(%arg0: i32) -> (i32, i32) {
    %c0_i32 = arith.constant 0 : i32
    %c0_i32_0 = arith.constant 0 : i32
    %c0_i32_1 = arith.constant 0 : i32
    return %c0_i32, %c0_i32_0 : i32, i32
  }
  func.func @transform_10(%arg0: i32) -> (i32, i32) {
    %c0_i32 = arith.constant 0 : i32
    %c0_i32_0 = arith.constant 0 : i32
    %c0_i32_1 = arith.constant 0 : i32
    return %c0_i32, %c0_i32_0 : i32, i32
  }
}

</mosaic_0001>

<bundles_post_ra>
// kernel: stgcn3d_gep_forward.1
= control target key start
LH: loop header
LB: loop body
LE: loop exit
PB: predicated region body
PF: predicated region fallthrough
CT: control target
= control target key end

     0   :  { %vm41_vm0 = vcmask 64512   ;;  %vm320_vm1 = vcmask 261120   ;;  %s3422_s24 = smov 96   ;;  %s5901_s0 = inlined_call_operand.vmem [shape: f32[8,256], index: 0, kind: input, shape index: {}]   ;;  %s5902_s1 = inlined_call_operand.vmem [shape: f32[32,8], index: 1, kind: input, shape index: {}]   ;;  %s5903_s2 = inlined_call_operand.vmem [shape: f32[256,256], index: 2, kind: input, shape index: {}]   ;;  %s5904_s4 = inlined_call_operand.vmem [shape: f32[32,1], index: 4, kind: input, shape index: {}]   ;;  %s5905_s7 = inlined_call_operand.vmem [shape: f32[128,1], index: 7, kind: input, shape index: {}]   ;;  %s5906_s3 = inlined_call_operand.vmem [shape: f32[32,32], index: 3, kind: input, shape index: {}]   ;;  %s5907_s5 = inlined_call_operand.vmem [shape: f32[256,32], index: 5, kind: input, shape index: {}]   ;;  %s5908_s6 = inlined_call_operand.vmem [shape: f32[128,32], index: 6, kind: input, shape index: {}]   ;;  %s5909_s8 = inlined_call_operand.vmem [shape: f32[136,32], index: 8, kind: input, shape index: {}]   ;;  %s5910_s9 = inlined_call_operand.vmem [shape: f32[5,1], index: 9, kind: input, shape index: {}]   ;;  %s5911_s10 = inlined_call_operand.vmem [shape: f32[5,192], index: 10, kind: output, shape index: {}]  }
   0x1   :  { %v39_v0 = vld [vmem:[%s5901_s0] sm:$0xff]  ;;  %v40_v1 = vld [vmem:[%s5901_s0 + $0x8] sm:$0xff]  ;;  %v142_v3 = vld [vmem:[%s5903_s2 + $0xf0] sm:$0xff] }
   0x2   :  { %v35_v2 = vld [vmem:[%s5902_s1] sm:$0xff]  ;;  %69 = vmatpush.msra.mxu0 %v39_v0  ;;  %98 = vmatpush.msra.mxu1 %v40_v1  ;;  %v174_v4 = vld [vmem:[%s5903_s2 + $0x1f0] sm:$0xff]  ;;  %v36_v11 = vld [vmem:[%s5902_s1 + $0x8] sm:$0xff] }
   0x3   :  { %2785 = vmatmul.msk.f32.vlgmr.msra.gmra.mxu0 %vm41_vm0, %v35_v2  ;;  %2789 = vmatmul.msk.f32.vlgmr.msra.gmra.mxu1 %vm41_vm0, %v35_v2  ;;  %v140_v5 = vld [vmem:[%s5903_s2 + $0xe0] sm:$0xff]  ;;  %v138_v7 = vld [vmem:[%s5903_s2 + $0xd0] sm:$0xff]  ;;  %v175_v16 = vld [vmem:[%s5903_s2 + $0x1f8] sm:$0xff] }
   0x4   :  { %176 = vmatpush.msrb.mxu0 %v142_v3  ;;  %205 = vmatpush.msra.mxu3 %v174_v4  ;;  %v172_v6 = vld [vmem:[%s5903_s2 + $0x1e0] sm:$0xff]  ;;  %v170_v8 = vld [vmem:[%s5903_s2 + $0x1d0] sm:$0xff]  ;;  %v173_v19 = vld [vmem:[%s5903_s2 + $0x1e8] sm:$0xff] }
   0x5   :  { %v136_v9 = vld [vmem:[%s5903_s2 + $0xc0] sm:$0xff]  ;;  %v134_v12 = vld [vmem:[%s5903_s2 + $0xb0] sm:$0xff]  ;;  %263 = vmatpush.msrb.mxu1 %v175_v16  ;;  %v38_v31 = vld [vmem:[%s5902_s1 + $0x18] sm:$0xff]  ;;  %v3419_v16 = vmov 0  }
   0x6   :  { %177 = vmatpush.msrb.mxu0 %v140_v5  ;;  %206 = vmatpush.msra.mxu3 %v172_v6  ;;  %v168_v10 = vld [vmem:[%s5903_s2 + $0x1c0] sm:$0xff]  ;;  %v166_v13 = vld [vmem:[%s5903_s2 + $0x1b0] sm:$0xff]  ;;  %v171_v40 = vld [vmem:[%s5903_s2 + $0x1d8] sm:$0xff] }
   0x7   :  { %v132_v14 = vld [vmem:[%s5903_s2 + $0xa0] sm:$0xff]  ;;  %v130_v17 = vld [vmem:[%s5903_s2 + $0x90] sm:$0xff]  ;;  %264 = vmatpush.msrb.mxu1 %v173_v19  ;;  %v143_v41 = vld [vmem:[%s5903_s2 + $0xf8] sm:$0xff]  ;;  %2991 = vset.pattern.permute.xlu0 %v3419_v16 }
   0x8   :  { %178 = vmatpush.msrb.mxu0 %v138_v7  ;;  %207 = vmatpush.msra.mxu3 %v170_v8  ;;  %v164_v15 = vld [vmem:[%s5903_s2 + $0x1a0] sm:$0xff]  ;;  %v162_v18 = vld [vmem:[%s5903_s2 + $0x190] sm:$0xff]  ;;  %v169_v42 = vld [vmem:[%s5903_s2 + $0x1c8] sm:$0xff] }
   0x9   :  { %v128_v20 = vld [vmem:[%s5903_s2 + $0x80] sm:$0xff]  ;;  %v37_v22 = vld [vmem:[%s5902_s1 + $0x10] sm:$0xff]  ;;  %265 = vmatpush.msrb.mxu1 %v171_v40  ;;  %v141_v43 = vld [vmem:[%s5903_s2 + $0xe8] sm:$0xff]  ;;  %2992 = vset.pattern.permute.xlu1 %v3419_v16 }
   0xa   :  { %179 = vmatpush.msrb.mxu0 %v136_v9  ;;  %208 = vmatpush.msra.mxu3 %v168_v10  ;;  %v160_v21 = vld [vmem:[%s5903_s2 + $0x180] sm:$0xff]  ;;  %v126_v23 = vld [vmem:[%s5903_s2 + $0x70] sm:$0xff]  ;;  %v167_v44 = vld [vmem:[%s5903_s2 + $0x1b8] sm:$0xff] }
   0xb   :  { %2786 = vmatmul.msk.f32.gmra.mxu0 %vm41_vm0, %v36_v11  ;;  %2790 = vmatmul.msk.f32.gmra.mxu1 %vm41_vm0, %v36_v11  ;;  %v158_v24 = vld [vmem:[%s5903_s2 + $0x170] sm:$0xff]  ;;  %v124_v25 = vld [vmem:[%s5903_s2 + $0x60] sm:$0xff]  ;;  %v139_v45 = vld [vmem:[%s5903_s2 + $0xd8] sm:$0xff] }
   0xc   :  { %180 = vmatpush.msrb.mxu0 %v134_v12  ;;  %209 = vmatpush.msra.mxu3 %v166_v13  ;;  %v156_v26 = vld [vmem:[%s5903_s2 + $0x160] sm:$0xff]  ;;  %v122_v27 = vld [vmem:[%s5903_s2 + $0x50] sm:$0xff]  ;;  %v165_v46 = vld [vmem:[%s5903_s2 + $0x1a8] sm:$0xff] }
   0xd   :  { %v154_v28 = vld [vmem:[%s5903_s2 + $0x150] sm:$0xff]  ;;  %v120_v29 = vld [vmem:[%s5903_s2 + $0x40] sm:$0xff]  ;;  %266 = vmatpush.msrb.mxu1 %v169_v42  ;;  %v137_v47 = vld [vmem:[%s5903_s2 + $0xc8] sm:$0xff]  ;;  %2993 = vset.pattern.permute.xlu2 %v3419_v16 }
   0xe   :  { %181 = vmatpush.msrb.mxu0 %v132_v14  ;;  %210 = vmatpush.msra.mxu3 %v164_v15  ;;  %v152_v30 = vld [vmem:[%s5903_s2 + $0x140] sm:$0xff]  ;;  %v118_v32 = vld [vmem:[%s5903_s2 + $0x30] sm:$0xff]  ;;  %v163_v48 = vld [vmem:[%s5903_s2 + $0x198] sm:$0xff] }
   0xf   :  { %v150_v33 = vld [vmem:[%s5903_s2 + $0x130] sm:$0xff]  ;;  %v116_v34 = vld [vmem:[%s5903_s2 + $0x20] sm:$0xff]  ;;  %267 = vmatpush.msrb.mxu1 %v167_v44  ;;  %v135_v49 = vld [vmem:[%s5903_s2 + $0xb8] sm:$0xff] }
  0x10   :  { %182 = vmatpush.msrb.mxu0 %v130_v17  ;;  %211 = vmatpush.msra.mxu3 %v162_v18  ;;  %v148_v35 = vld [vmem:[%s5903_s2 + $0x120] sm:$0xff]  ;;  %v114_v36 = vld [vmem:[%s5903_s2 + $0x10] sm:$0xff]  ;;  %v161_v50 = vld [vmem:[%s5903_s2 + $0x188] sm:$0xff] }
  0x11   :  { %v146_v37 = vld [vmem:[%s5903_s2 + $0x110] sm:$0xff]  ;;  %v112_v38 = vld [vmem:[%s5903_s2] sm:$0xff]  ;;  %268 = vmatpush.msrb.mxu1 %v165_v46  ;;  %v133_v51 = vld [vmem:[%s5903_s2 + $0xa8] sm:$0xff] }
  0x12   :  { %183 = vmatpush.msrb.mxu0 %v128_v20  ;;  %212 = vmatpush.msra.mxu3 %v160_v21  ;;  %v144_v39 = vld [vmem:[%s5903_s2 + $0x100] sm:$0xff]  ;;  %v159_v52 = vld [vmem:[%s5903_s2 + $0x178] sm:$0xff]  ;;  %v157_v54 = vld [vmem:[%s5903_s2 + $0x168] sm:$0xff] }
  0x13   :  { %2787 = vmatmul.msk.f32.gmra.mxu0 %vm41_vm0, %v37_v22  ;;  %2791 = vmatmul.msk.f32.gmra.mxu1 %vm41_vm0, %v37_v22  ;;  %v131_v53 = vld [vmem:[%s5903_s2 + $0x98] sm:$0xff]  ;;  %v129_v55 = vld [vmem:[%s5903_s2 + $0x88] sm:$0xff]  ;;  %v296_v15 = vld [vmem:[%s5904_s4] sm:$0xff] }
  0x14   :  { %184 = vmatpush.msrb.mxu0 %v126_v23  ;;  %213 = vmatpush.msra.mxu3 %v158_v24  ;;  %v155_v56 = vld [vmem:[%s5903_s2 + $0x158] sm:$0xff]  ;;  %v153_v58 = vld [vmem:[%s5903_s2 + $0x148] sm:$0xff]  ;;  %v298_v22 = vld [vmem:[%s5904_s4 + $0x10] sm:$0xff] }
  0x15   :  { %269 = vmatpush.msrb.mxu1 %v163_v48  ;;  %v127_v57 = vld [vmem:[%s5903_s2 + $0x78] sm:$0xff]  ;;  %v125_v59 = vld [vmem:[%s5903_s2 + $0x68] sm:$0xff]  ;;  %302 = vperm.xlu0 %2991, %v296_v15   ;;  %v507_v23 = vld [vmem:[%s5905_s7 + $0x10] sm:$0xff] }
  0x16   :  { %185 = vmatpush.msrb.mxu0 %v124_v25  ;;  %214 = vmatpush.msra.mxu3 %v156_v26  ;;  %v151_v60 = vld [vmem:[%s5903_s2 + $0x138] sm:$0xff]  ;;  %v149_v62 = vld [vmem:[%s5903_s2 + $0x128] sm:$0xff]  ;;  %v505_v40 = vld [vmem:[%s5905_s7] sm:$0xff] }
  0x17   :  { %270 = vmatpush.msrb.mxu1 %v161_v50  ;;  %v123_v61 = vld [vmem:[%s5903_s2 + $0x58] sm:$0xff]  ;;  %v121_v63 = vld [vmem:[%s5903_s2 + $0x48] sm:$0xff]  ;;  %312 = vperm.xlu1 %2992, %v298_v22   ;;  %v401_v15 = vld [vmem:[%s5907_s5 + $0x10] sm:$0xff] }
  0x18   :  { %186 = vmatpush.msrb.mxu0 %v122_v27  ;;  %215 = vmatpush.msra.mxu3 %v154_v28  ;;  %v147_v0 = vld [vmem:[%s5903_s2 + $0x118] sm:$0xff]  ;;  %v145_v2 = vld [vmem:[%s5903_s2 + $0x108] sm:$0xff]  ;;  %v421_v16 = vld [vmem:[%s5907_s5 + $0xb0] sm:$0xff] }
  0x19   :  { %271 = vmatpush.msrb.mxu1 %v159_v52  ;;  %v119_v1 = vld [vmem:[%s5903_s2 + $0x38] sm:$0xff]  ;;  %v117_v3 = vld [vmem:[%s5903_s2 + $0x28] sm:$0xff]  ;;  %v417_v22 = vld [vmem:[%s5907_s5 + $0x90] sm:$0xff] }
  0x1a   :  { %187 = vmatpush.msrb.mxu0 %v120_v29  ;;  %216 = vmatpush.msra.mxu3 %v152_v30  ;;  %v115_v4 = vld [vmem:[%s5903_s2 + $0x18] sm:$0xff]  ;;  %v113_v5 = vld [vmem:[%s5903_s2 + $0x8] sm:$0xff] }
  0x1b   :  { %2788 = vmatmul.msk.f32.gmra.mxu0 %vm41_vm0, %v38_v31  ;;  %2792 = vmatmul.msk.f32.gmra.mxu1 %vm41_vm0, %v38_v31  ;;  %v297_v19 = vld [vmem:[%s5904_s4 + $0x8] sm:$0xff]  ;;  %v299_v26 = vld [vmem:[%s5904_s4 + $0x18] sm:$0xff] }
  0x1c   :  { %188 = vmatpush.msrb.mxu0 %v118_v32  ;;  %217 = vmatpush.msra.mxu3 %v150_v33  ;;  %v510_v27 = vld [vmem:[%s5905_s7 + $0x28] sm:$0xff]  ;;  %v511_v33 = vld [vmem:[%s5905_s7 + $0x30] sm:$0xff] }
  0x1d   :  { %272 = vmatpush.msrb.mxu1 %v157_v54  ;;  %307 = vperm.xlu0 %2991, %v297_v19   ;;  %v293_v42 = vld [vmem:[%s5906_s3 + $0x8] sm:$0xff]  ;;  %v295_v54 = vld [vmem:[%s5906_s3 + $0x18] sm:$0xff]  ;;  %v399_v19 = vld [vmem:[%s5907_s5] sm:$0xff] }
  0x1e   :  { %189 = vmatpush.msrb.mxu0 %v116_v34  ;;  %218 = vmatpush.msra.mxu3 %v148_v35  ;;  %v520_v34 = vld [vmem:[%s5905_s7 + $0x78] sm:$0xff]  ;;  %v514_v46 = vld [vmem:[%s5905_s7 + $0x48] sm:$0xff] }
  0x1f   :  { %273 = vmatpush.msrb.mxu1 %v155_v56  ;;  %317 = vperm.xlu1 %2992, %v299_v26   ;;  %v513_v56 = vld [vmem:[%s5905_s7 + $0x40] sm:$0xff] }
  0x20   :  { %190 = vmatpush.msrb.mxu0 %v114_v36  ;;  %219 = vmatpush.msra.mxu3 %v146_v37 }
  0x21   :  { %274 = vmatpush.msrb.mxu1 %v153_v58  ;;  %v413_v58 = vld [vmem:[%s5907_s5 + $0x70] sm:$0xff] }
  0x22   :  { %191 = vmatpush.msrb.mxu0 %v112_v38  ;;  %220 = vmatpush.msra.mxu3 %v144_v39  ;;  %v292_v38 = vld [vmem:[%s5906_s3] sm:$0xff] }
  0x23   :  { %275 = vmatpush.msrb.mxu1 %v151_v60  ;;  %v430_v60 = vld [vmem:[%s5907_s5 + $0xf8] sm:$0xff] }
  0x24   :  { %234 = vmatpush.msra.mxu0 %v143_v41  ;;  %v517_v41 = vld [vmem:[%s5905_s7 + $0x60] sm:$0xff] }
  0x25   :  { %276 = vmatpush.msrb.mxu1 %v149_v62  ;;  %533 = vperm.xlu0 %2991, %v507_v23   ;;  %v410_v62 = vld [vmem:[%s5907_s5 + $0x58] sm:$0xff]  ;;  %v416_v23 = vld [vmem:[%s5907_s5 + $0x88] sm:$0xff] }
  0x26   :  { %235 = vmatpush.msra.mxu0 %v141_v43 }
  0x27   :  { %277 = vmatpush.msrb.mxu1 %v147_v0  ;;  %553 = vperm.xlu1 %2992, %v511_v33   ;;  %v429_v0 = vld [vmem:[%s5907_s5 + $0xf0] sm:$0xff] }
  0x28   :  { %236 = vmatpush.msra.mxu0 %v139_v45  ;;  %v519_v45 = vld [vmem:[%s5905_s7 + $0x70] sm:$0xff] }
  0x29   :  { %278 = vmatpush.msrb.mxu1 %v145_v2  ;;  %v428_v2 = vld [vmem:[%s5907_s5 + $0xe8] sm:$0xff] }
  0x2a   :  { %237 = vmatpush.msra.mxu0 %v137_v47  ;;  %v294_v47 = vld [vmem:[%s5906_s3 + $0x10] sm:$0xff] }
  0x2b   :  { %460 = vmatpush.msra.mxu1 %v430_v60 }
  0x2c   :  { %238 = vmatpush.msra.mxu0 %v135_v49 }
  0x2d   :  { %548 = vperm.xlu0 %2991, %v510_v27   ;;  %461 = vmatpush.msra.mxu1 %v429_v0 }
  0x2e   :  { %239 = vmatpush.msra.mxu0 %v133_v51  ;;  %v516_v51 = vld [vmem:[%s5905_s7 + $0x58] sm:$0xff] }
  0x2f   :  { %523 = vperm.xlu1 %2992, %v505_v40   ;;  %462 = vmatpush.msra.mxu1 %v428_v2  ;;  %v489_v2 = vld [vmem:[%s5908_s6] sm:$0xff] }
  0x30   :  { %240 = vmatpush.msra.mxu0 %v131_v53 }
  0x32   :  { %241 = vmatpush.msra.mxu0 %v129_v55 }
  0x34   :  { %242 = vmatpush.msra.mxu0 %v127_v57  ;;  %v414_v57 = vld [vmem:[%s5907_s5 + $0x78] sm:$0xff] }
  0x35   :  { %598 = vperm.xlu0 %2991, %v520_v34  }
  0x36   :  { %243 = vmatpush.msra.mxu0 %v125_v59  ;;  %v412_v59 = vld [vmem:[%s5907_s5 + $0x68] sm:$0xff] }
  0x37   :  { %593 = vperm.xlu1 %2992, %v519_v45  }
  0x38   :  { %244 = vmatpush.msra.mxu0 %v123_v61  ;;  %v411_v61 = vld [vmem:[%s5907_s5 + $0x60] sm:$0xff] }
  0x3a   :  { %245 = vmatpush.msra.mxu0 %v121_v63  ;;  %v409_v63 = vld [vmem:[%s5907_s5 + $0x50] sm:$0xff] }
  0x3c   :  { %246 = vmatpush.msra.mxu0 %v119_v1  ;;  %v408_v1 = vld [vmem:[%s5907_s5 + $0x48] sm:$0xff] }
  0x3d   :  { %583 = vperm.xlu0 %2991, %v517_v41  }
  0x3e   :  { %247 = vmatpush.msra.mxu0 %v117_v3  ;;  %v407_v3 = vld [vmem:[%s5907_s5 + $0x40] sm:$0xff] }
  0x3f   :  { %578 = vperm.xlu1 %2992, %v516_v51  }
  0x40   :  { %248 = vmatpush.msra.mxu0 %v115_v4  ;;  %v427_v4 = vld [vmem:[%s5907_s5 + $0xe0] sm:$0xff] }
  0x41   :  { %463 = vmatpush.msra.mxu1 %v427_v4  ;;  %v512_v4 = vld [vmem:[%s5905_s7 + $0x38] sm:$0xff] }
  0x42   :  { %249 = vmatpush.msra.mxu0 %v113_v5  ;;  %v406_v5 = vld [vmem:[%s5907_s5 + $0x38] sm:$0xff] }
  0x45   :  { %568 = vperm.xlu0 %2991, %v514_v46  }
  0x47   :  { %563 = vperm.xlu1 %2992, %v513_v56  }
  0x80   :  { %v71_v6 = vpop.f32.mrf.mxu0  ;;  %v100_v7 = vpop.f32.mrf.mxu1 }
  0x81   :  { %192 = vmatmul.f32.vlgmr.msrb.gmra.mxu0 %v71_v6  ;;  %221 = vmatmul.f32.vlgmr.msra.gmra.mxu3 %v100_v7 }
  0x82   :  { %279 = vmatmul.f32.vlgmr.msrb.gmra.mxu1 %v100_v7  ;;  %431 = vmatpush.msrb.mxu0 %v414_v57  ;;  %v405_v7 = vld [vmem:[%s5907_s5 + $0x30] sm:$0xff] }
  0x84   :  { %432 = vmatpush.msrb.mxu0 %v413_v58 }
  0x86   :  { %433 = vmatpush.msrb.mxu0 %v412_v59 }
  0x88   :  { %v74_v8 = vpop.f32.mrf.mxu0  ;;  %v103_v9 = vpop.f32.mrf.mxu1  ;;  %434 = vmatpush.msrb.mxu0 %v411_v61 }
  0x89   :  { %195 = vmatmul.f32.gmra.mxu0 %v74_v8  ;;  %224 = vmatmul.f32.gmra.mxu3 %v103_v9  ;;  %v313_v33 = vpop.permute.xlu1 %312 }
  0x8a   :  { %282 = vmatmul.f32.gmra.mxu1 %v103_v9  ;;  %435 = vmatpush.msrb.mxu0 %v410_v62  ;;  %v404_v9 = vld [vmem:[%s5907_s5 + $0x28] sm:$0xff]  ;;  %v508_v62 = vld [vmem:[%s5905_s7 + $0x18] sm:$0xff] }
  0x8b   :  { %538 = vperm.xlu2 %2993, %v508_v62  }
  0x8c   :  { %436 = vmatpush.msrb.mxu0 %v409_v63 }
  0x8e   :  { %437 = vmatpush.msrb.mxu0 %v408_v1 }
  0x90   :  { %v77_v10 = vpop.f32.mrf.mxu0  ;;  %v106_v11 = vpop.f32.mrf.mxu1  ;;  %438 = vmatpush.msrb.mxu0 %v407_v3  ;;  %v490_v3 = vld [vmem:[%s5908_s6 + $0x8] sm:$0xff] }
  0x91   :  { %198 = vmatmul.f32.gmra.mxu0 %v77_v10  ;;  %227 = vmatmul.f32.gmra.mxu3 %v106_v11 }
  0x92   :  { %285 = vmatmul.f32.gmra.mxu1 %v106_v11  ;;  %439 = vmatpush.msrb.mxu0 %v406_v5  ;;  %v403_v11 = vld [vmem:[%s5907_s5 + $0x20] sm:$0xff]  ;;  %v491_v5 = vld [vmem:[%s5908_s6 + $0x10] sm:$0xff] }
  0x93   :  { %558 = vperm.xlu2 %2993, %v512_v4  }
  0x94   :  { %440 = vmatpush.msrb.mxu0 %v405_v7  ;;  %v492_v7 = vld [vmem:[%s5908_s6 + $0x18] sm:$0xff] }
  0x96   :  { %441 = vmatpush.msrb.mxu0 %v404_v9  ;;  %v494_v9 = vld [vmem:[%s5908_s6 + $0x28] sm:$0xff] }
  0x98   :  { %v80_v12 = vpop.f32.mrf.mxu0  ;;  %v109_v13 = vpop.f32.mrf.mxu1  ;;  %442 = vmatpush.msrb.mxu0 %v403_v11  ;;  %v495_v11 = vld [vmem:[%s5908_s6 + $0x30] sm:$0xff] }
  0x99   :  { %201 = vmatmul.f32.gmra.mxu0 %v80_v12  ;;  %230 = vmatmul.f32.gmra.mxu3 %v109_v13 }
  0x9a   :  { %288 = vmatmul.f32.gmra.mxu1 %v109_v13  ;;  %v402_v13 = vld [vmem:[%s5907_s5 + $0x18] sm:$0xff] }
  0x9b   :  { %443 = vmatpush.msrb.mxu0 %v402_v13  ;;  %v497_v13 = vld [vmem:[%s5908_s6 + $0x40] sm:$0xff] }
  0x9d   :  { %444 = vmatpush.msrb.mxu0 %v401_v15  ;;  %v499_v15 = vld [vmem:[%s5908_s6 + $0x50] sm:$0xff] }
  0xa1   :  { %250 = vmatmul.f32.vlgmr.msra.gmra.mxu0 %v71_v6  ;;  %v426_v6 = vld [vmem:[%s5907_s5 + $0xd8] sm:$0xff] }
  0xa2   :  { %464 = vmatpush.msra.mxu1 %v426_v6  ;;  %v506_v6 = vld [vmem:[%s5905_s7 + $0x8] sm:$0xff] }
  0xa3   :  { %528 = vperm.xlu2 %2993, %v506_v6  }
  0xa9   :  { %253 = vmatmul.f32.gmra.mxu0 %v74_v8  ;;  %v425_v8 = vld [vmem:[%s5907_s5 + $0xd0] sm:$0xff] }
  0xaa   :  { %465 = vmatpush.msra.mxu1 %v425_v8  ;;  %v493_v8 = vld [vmem:[%s5908_s6 + $0x20] sm:$0xff] }
  0xb1   :  { %256 = vmatmul.f32.gmra.mxu0 %v77_v10  ;;  %v424_v10 = vld [vmem:[%s5907_s5 + $0xc8] sm:$0xff] }
  0xb2   :  { %466 = vmatpush.msra.mxu1 %v424_v10  ;;  %v509_v10 = vld [vmem:[%s5905_s7 + $0x20] sm:$0xff] }
  0xb3   :  { %543 = vperm.xlu2 %2993, %v509_v10  }
  0xb9   :  { %259 = vmatmul.f32.gmra.mxu0 %v80_v12  ;;  %v423_v12 = vld [vmem:[%s5907_s5 + $0xc0] sm:$0xff] }
  0xba   :  { %467 = vmatpush.msra.mxu1 %v423_v12  ;;  %v496_v12 = vld [vmem:[%s5908_s6 + $0x38] sm:$0xff] }
  0xfe   :  { %v193_v14 = vpop.f32.mrf.mxu0 }
  0xff   :  { %v280_v28 = vpop.f32.mrf.mxu1 }
 0x104   :  { %v222_v17 = vpop.f32.mrf.mxu3 }
 0x105   :  { %v223_v37 = vadd.f32 %v222_v17, %v193_v14  ;;  %v422_v14 = vld [vmem:[%s5907_s5 + $0xb8] sm:$0xff]  ;;  %v400_v17 = vld [vmem:[%s5907_s5 + $0x8] sm:$0xff] }
 0x106   :  { %v196_v18 = vpop.f32.mrf.mxu0  ;;  %468 = vmatpush.msra.mxu1 %v422_v14  ;;  %445 = vmatpush.msrb.mxu0 %v400_v17  ;;  %v498_v14 = vld [vmem:[%s5908_s6 + $0x48] sm:$0xff]  ;;  %v500_v17 = vld [vmem:[%s5908_s6 + $0x58] sm:$0xff] }
 0x107   :  { %v283_v36 = vpop.f32.mrf.mxu1 }
 0x108   :  { %469 = vmatpush.msra.mxu1 %v421_v16  ;;  %446 = vmatpush.msrb.mxu0 %v399_v19  ;;  %v518_v16 = vld [vmem:[%s5905_s7 + $0x68] sm:$0xff]  ;;  %v501_v19 = vld [vmem:[%s5908_s6 + $0x60] sm:$0xff] }
 0x109   :  { %588 = vperm.xlu2 %2993, %v518_v16  }
 0x10c   :  { %v225_v20 = vpop.f32.mrf.mxu3 }
 0x10d   :  { %v226_v35 = vadd.f32 %v225_v20, %v196_v18  ;;  %v420_v18 = vld [vmem:[%s5907_s5 + $0xa8] sm:$0xff]  ;;  %v419_v20 = vld [vmem:[%s5907_s5 + $0xa0] sm:$0xff] }
 0x10e   :  { %v199_v21 = vpop.f32.mrf.mxu0  ;;  %470 = vmatpush.msra.mxu1 %v420_v18  ;;  %v515_v18 = vld [vmem:[%s5905_s7 + $0x50] sm:$0xff] }
 0x10f   :  { %v286_v43 = vpop.f32.mrf.mxu1 }
 0x110   :  { %471 = vmatpush.msra.mxu1 %v419_v20  ;;  %v502_v20 = vld [vmem:[%s5908_s6 + $0x68] sm:$0xff] }
 0x111   :  { %573 = vperm.xlu2 %2993, %v515_v18  }
 0x114   :  { %v228_v24 = vpop.f32.mrf.mxu3 }
 0x115   :  { %v229_v32 = vadd.f32 %v228_v24, %v199_v21  ;;  %v418_v21 = vld [vmem:[%s5907_s5 + $0x98] sm:$0xff]  ;;  %v415_v24 = vld [vmem:[%s5907_s5 + $0x80] sm:$0xff]  ;;  %s3420_s5 = smov 64  }
 0x116   :  { %v202_v25 = vpop.f32.mrf.mxu0  ;;  %472 = vmatpush.msra.mxu1 %v418_v21  ;;  %v503_v21 = vld [vmem:[%s5908_s6 + $0x70] sm:$0xff] }
 0x117   :  { %v289_v48 = vpop.f32.mrf.mxu1 }
 0x118   :  { %473 = vmatpush.msra.mxu1 %v417_v22  ;;  %v504_v22 = vld [vmem:[%s5908_s6 + $0x78] sm:$0xff] }
 0x11a   :  { %474 = vmatpush.msra.mxu1 %v416_v23 }
 0x11c   :  { %v231_v29 = vpop.f32.mrf.mxu3  ;;  %475 = vmatpush.msra.mxu1 %v415_v24 }
 0x11d   :  { %v232_v30 = vadd.f32 %v231_v29, %v202_v25  ;;  %v303_v25 = vpop.permute.xlu0 %302 }
 0x11e   :  { %v251_v31 = vpop.f32.mrf.mxu0 }
 0x11f   :  { %345 = vmatpush.msra.mxu2 %v232_v30  ;;  %v281_v55 = vadd.f32 %v280_v28, %v251_v31 }
 0x121   :  { %346 = vmatpush.msra.mxu2 %v229_v32 }
 0x123   :  { %347 = vmatpush.msra.mxu2 %v226_v35 }
 0x125   :  { %348 = vmatpush.msra.mxu2 %v223_v37  ;;  %v308_v29 = vpop.permute.xlu0 %307  ;;  %v318_v37 = vpop.permute.xlu1 %317 }
 0x126   :  { %v254_v39 = vpop.f32.mrf.mxu0  ;;  %2793 = vmatmul.msk.f32.vlgmr.msra.gmra.mxu2 %vm320_vm1, %v292_v38 }
 0x127   :  { %v284_v53 = vadd.f32 %v283_v36, %v254_v39 }
 0x12e   :  { %v257_v44 = vpop.f32.mrf.mxu0  ;;  %2794 = vmatmul.msk.f32.gmra.mxu2 %vm320_vm1, %v293_v42 }
 0x12f   :  { %v287_v52 = vadd.f32 %v286_v43, %v257_v44 }
 0x136   :  { %v260_v49 = vpop.f32.mrf.mxu0  ;;  %2795 = vmatmul.msk.f32.gmra.mxu2 %vm320_vm1, %v294_v47 }
 0x137   :  { %v290_v50 = vadd.f32 %v289_v48, %v260_v49 }
 0x139   :  { %374 = vmatpush.msrb.mxu3 %v290_v50 }
 0x13b   :  { %375 = vmatpush.msrb.mxu3 %v287_v52 }
 0x13d   :  { %376 = vmatpush.msrb.mxu3 %v284_v53 }
 0x13e   :  { %2796 = vmatmul.msk.f32.gmra.mxu2 %vm320_vm1, %v295_v54 }
 0x13f   :  { %377 = vmatpush.msrb.mxu3 %v281_v55 }
 0x140   :  { %2797 = vmatmul.msk.f32.vlgmr.msrb.gmra.mxu3 %vm320_vm1, %v292_v38 }
 0x148   :  { %2798 = vmatmul.msk.f32.gmra.mxu3 %vm320_vm1, %v293_v42 }
 0x150   :  { %2799 = vmatmul.msk.f32.gmra.mxu3 %vm320_vm1, %v294_v47 }
 0x158   :  { %2800 = vmatmul.msk.f32.gmra.mxu3 %vm320_vm1, %v295_v54 }
 0x1a9   :  { %v350_v26 = vpop.f32.mrf.mxu2 }
 0x1aa   :  { %v351_v27 = vadd.f32 %v350_v26, %v303_v25 }
 0x1ac   :  { %v391_v28 = vmax.f32 %v351_v27, 0.0 }
 0x1ae   :  { %447 = vmatmul.f32.vlgmr.msrb.gmra.mxu0 %v391_v28  ;;  %v539_v28 = vpop.permute.xlu2 %538 }
 0x1b1   :  { %v353_v30 = vpop.f32.mrf.mxu2 }
 0x1b2   :  { %v354_v31 = vadd.f32 %v353_v30, %v308_v29 }
 0x1b4   :  { %v393_v32 = vmax.f32 %v354_v31, 0.0  ;;  %v554_v31 = vpop.permute.xlu1 %553 }
 0x1b6   :  { %450 = vmatmul.f32.gmra.mxu0 %v393_v32  ;;  %v559_v30 = vpop.permute.xlu2 %558 }
 0x1b9   :  { %v356_v34 = vpop.f32.mrf.mxu2 }
 0x1ba   :  { %v357_v35 = vadd.f32 %v356_v34, %v313_v33 }
 0x1bc   :  { %v395_v36 = vmax.f32 %v357_v35, 0.0 }
 0x1be   :  { %453 = vmatmul.f32.gmra.mxu0 %v395_v36  ;;  %v529_v34 = vpop.permute.xlu2 %528  ;;  %v524_v36 = vpop.permute.xlu1 %523 }
 0x1c1   :  { %v359_v38 = vpop.f32.mrf.mxu2 }
 0x1c2   :  { %v360_v39 = vadd.f32 %v359_v38, %v318_v37  ;;  %v534_v38 = vpop.permute.xlu0 %533 }
 0x1c3   :  { %v379_v40 = vpop.f32.mrf.mxu3 }
 0x1c4   :  { %v380_v41 = vadd.f32 %v379_v40, %v303_v25  ;;  %v397_v42 = vmax.f32 %v360_v39, 0.0 }
 0x1c6   :  { %v392_v43 = vmax.f32 %v380_v41, 0.0  ;;  %456 = vmatmul.f32.gmra.mxu0 %v397_v42 }
 0x1c8   :  { %476 = vmatmul.f32.vlgmr.msra.gmra.mxu1 %v392_v43 }
 0x1cb   :  { %v382_v44 = vpop.f32.mrf.mxu3 }
 0x1cc   :  { %v383_v45 = vadd.f32 %v382_v44, %v308_v29 }
 0x1ce   :  { %v394_v46 = vmax.f32 %v383_v45, 0.0 }
 0x1d0   :  { %479 = vmatmul.f32.gmra.mxu1 %v394_v46 }
 0x1d3   :  { %v385_v47 = vpop.f32.mrf.mxu3 }
 0x1d4   :  { %v386_v48 = vadd.f32 %v385_v47, %v313_v33 }
 0x1d6   :  { %v396_v49 = vmax.f32 %v386_v48, 0.0 }
 0x1d8   :  { %482 = vmatmul.f32.gmra.mxu1 %v396_v49 }
 0x1db   :  { %v388_v50 = vpop.f32.mrf.mxu3 }
 0x1dc   :  { %v389_v51 = vadd.f32 %v388_v50, %v318_v37  ;;  %v549_v50 = vpop.permute.xlu0 %548 }
 0x1de   :  { %v398_v52 = vmax.f32 %v389_v51, 0.0 }
 0x1e0   :  { %485 = vmatmul.f32.gmra.mxu1 %v398_v52  ;;  %v544_v52 = vpop.permute.xlu2 %543 }
 0x22b   :  { %v448_v53 = vpop.f32.mrf.mxu0 }
 0x233   :  { %v451_v55 = vpop.f32.mrf.mxu0 }
 0x23b   :  { %v454_v57 = vpop.f32.mrf.mxu0 }
 0x243   :  { %v457_v59 = vpop.f32.mrf.mxu0 }
 0x245   :  { %v477_v54 = vpop.f32.mrf.mxu1 }
 0x246   :  { %v478_v1 = vadd.f32 %v477_v54, %v448_v53 }
 0x24d   :  { %v480_v56 = vpop.f32.mrf.mxu1 }
 0x24e   :  { %v481_v0 = vadd.f32 %v480_v56, %v451_v55 }
 0x255   :  { %v483_v58 = vpop.f32.mrf.mxu1 }
 0x256   :  { %v484_v63 = vadd.f32 %v483_v58, %v454_v57 }
 0x25d   :  { %v486_v60 = vpop.f32.mrf.mxu1 }
 0x25e   :  { %v487_v61 = vadd.f32 %v486_v60, %v457_v59 }
 0x260   :  { %661 = vmatpush.msra.mxu0 %v487_v61  ;;  %2975 = vmatpush.msrb.mxu2 %v487_v61 }
 0x262   :  { %662 = vmatpush.msra.mxu0 %v484_v63  ;;  %2976 = vmatpush.msrb.mxu2 %v484_v63 }
 0x264   :  { %663 = vmatpush.msra.mxu0 %v481_v0  ;;  %2977 = vmatpush.msrb.mxu2 %v481_v0 }
 0x266   :  { %664 = vmatpush.msra.mxu0 %v478_v1  ;;  %2978 = vmatpush.msrb.mxu2 %v478_v1 }
 0x267   :  { %2801 = vmatmul.msk.f32.vlgmr.msra.gmra.mxu0 %vm320_vm1, %v489_v2  ;;  %2802 = vmatmul.msk.f32.vlgmr.msrb.gmra.mxu2 %vm320_vm1, %v490_v3  ;;  %v3977_v2 = vpop.permute.xlu0 %598 }
 0x26f   :  { %2803 = vmatmul.msk.f32.gmra.mxu2 %vm320_vm1, %v491_v5  ;;  %v584_v18 = vpop.permute.xlu0 %583 }
 0x277   :  { %2804 = vmatmul.msk.f32.gmra.mxu2 %vm320_vm1, %v492_v7 }
 0x27f   :  { %2805 = vmatmul.msk.f32.gmra.mxu2 %vm320_vm1, %v493_v8 }
 0x287   :  { %2806 = vmatmul.msk.f32.gmra.mxu2 %vm320_vm1, %v494_v9 }
 0x28f   :  { %2807 = vmatmul.msk.f32.gmra.mxu2 %vm320_vm1, %v495_v11 }
 0x297   :  { %2808 = vmatmul.msk.f32.gmra.mxu2 %vm320_vm1, %v496_v12 }
 0x29f   :  { %2809 = vmatmul.msk.f32.gmra.mxu2 %vm320_vm1, %v497_v13 }
 0x2a7   :  { %2810 = vmatmul.msk.f32.gmra.mxu2 %vm320_vm1, %v498_v14 }
 0x2af   :  { %2811 = vmatmul.msk.f32.gmra.mxu2 %vm320_vm1, %v499_v15 }
 0x2b7   :  { %2812 = vmatmul.msk.f32.gmra.mxu2 %vm320_vm1, %v500_v17 }
 0x2bf   :  { %2813 = vmatmul.msk.f32.gmra.mxu2 %vm320_vm1, %v501_v19 }
 0x2c7   :  { %2814 = vmatmul.msk.f32.gmra.mxu2 %vm320_vm1, %v502_v20 }
 0x2cf   :  { %2815 = vmatmul.msk.f32.gmra.mxu2 %vm320_vm1, %v503_v21 }
 0x2d7   :  { %2816 = vmatmul.msk.f32.gmra.mxu2 %vm320_vm1, %v504_v22 }
 0x2e4   :  { %v666_v33 = vpop.f32.mrf.mxu0 }
 0x2e5   :  { %v3938_v37 = vadd.f32 %v666_v33, %v524_v36 }
 0x2e7   :  { %v2817_v41 = vmul.f32 -1.442695, %v3938_v37 }
 0x2e9   :  { %2994 = vpow2.f32 %v2817_v41 }
 0x2ea   :  { %v669_v23 = vpop.f32.mrf.mxu2 }
 0x2eb   :  { %v3940_v39 = vadd.f32 %v669_v23, %v529_v34 }
 0x2ed   :  { %5947 = vst [vmem:[#allocation2_spill] sm:$0xff] %v3940_v39  ;;  %v2818_v42 = vmul.f32 -1.442695, %v3940_v39 }
 0x2ef   :  { %2996 = vpow2.f32 %v2818_v42  ;;  %v2995_v47 = vpop.eup %2994 }
 0x2f0   :  { %v3956_v54 = vadd.f32 1.0, %v2995_v47 }
 0x2f2   :  { %v672_v24 = vpop.f32.mrf.mxu2  ;;  %vm752_vm2 = vweird.f32 %v3956_v54  ;;  %v756_v42 = vand.u32 2147483647, %v3956_v54  ;;  %v758_v47 = vand.u32 2147483648, %v3956_v54 }
 0x2f3   :  { %v3942_v40 = vadd.f32 %v672_v24, %v534_v38  ;;  %v594_v24 = vpop.permute.xlu1 %593 }
 0x2f5   :  { %5948 = vst [vmem:[#allocation3_spill] sm:$0xff] %v3942_v40  ;;  %v2819_v43 = vmul.f32 -1.442695, %v3942_v40  ;;  %v2997_v49 = vpop.eup %2996 }
 0x2f6   :  { %v3960_v56 = vadd.f32 1.0, %v2997_v49 }
 0x2f7   :  { %2998 = vpow2.f32 %v2819_v43 }
 0x2f8   :  { %v771_v34 = vand.u32 2147483647, %v3960_v56  ;;  %v773_v36 = vand.u32 2147483648, %v3960_v56  ;;  %vm767_vm5 = vweird.f32 %v3960_v56 }
 0x2fa   :  { %v675_v25 = vpop.f32.mrf.mxu2  ;;  %vm4039_vm6 = vcmp.eq.f32.partialorder %v771_v34, 8.507059e+37 }
 0x2fb   :  { %v3949_v45 = vadd.f32 %v675_v25, %v539_v28  ;;  %v589_v25 = vpop.permute.xlu2 %588 }
 0x2fd   :  { %5949 = vst [vmem:[#allocation4_spill] sm:$0xff] %v3949_v45  ;;  %v2820_v46 = vmul.f32 -1.442695, %v3949_v45  ;;  %v2999_v51 = vpop.eup %2998 }
 0x2fe   :  { %v3964_v58 = vadd.f32 1.0, %v2999_v51 }
 0x2ff   :  { %3000 = vpow2.f32 %v2820_v46 }
 0x300   :  { %3002 = vrcp.f32 %v3956_v54  ;;  %v788_v51 = vand.u32 2147483648, %v3964_v58  ;;  %vm782_vm9 = vweird.f32 %v3964_v58 }
 0x301   :  { %3004 = vrcp.f32 %v3960_v56 }
 0x302   :  { %v678_v26 = vpop.f32.mrf.mxu2  ;;  %3006 = vrcp.f32 %v3964_v58 }
 0x303   :  { %v3966_v59 = vadd.f32 %v678_v26, %v544_v52 }
 0x305   :  { %5953 = vst [vmem:[#allocation8_spill] sm:$0xff] %v3966_v59  ;;  %v3001_v62 = vpop.eup %3000  ;;  %v2821_v1 = vmul.f32 -1.442695, %v3966_v59 }
 0x306   :  { %v3979_v3 = vadd.f32 1.0, %v3001_v62  ;;  %v3981_v4 = vpop.eup %3002  ;;  %v774_v62 = vor.u32 1.1754944e-38, %v773_v36 }
 0x307   :  { %v3983_v5 = vpop.eup %3004  ;;  %v748_v10 = vmul.f32 %v3981_v4, %v3956_v54  ;;  %vm753_vm4 = vweird.f32 %v3981_v4 }
 0x308   :  { %v3985_v6 = vpop.eup %3006  ;;  %v763_v12 = vmul.f32 %v3983_v5, %v3960_v56  ;;  %vm768_vm3 = vweird.f32 %v3983_v5  ;;  %vm4054_vm8 = vmor %vm752_vm2, %vm753_vm4  ;;  %vm797_vm14 = vweird.f32 %v3979_v3 }
 0x309   :  { %v778_v16 = vmul.f32 %v3985_v6, %v3964_v58  ;;  %v749_v20 = vsub.f32 1.0, %v748_v10  ;;  %vm783_vm7 = vweird.f32 %v3985_v6  ;;  %vm4065_vm10 = vmor %vm767_vm5, %vm768_vm3 }
 0x30a   :  { %v681_v27 = vpop.f32.mrf.mxu2  ;;  %v764_v23 = vsub.f32 1.0, %v763_v12  ;;  %vm4087_vm13 = vmor %vm782_vm9, %vm783_vm7 }
 0x30b   :  { %v3954_v53 = vadd.f32 %v681_v27, %v549_v50  ;;  %v779_v28 = vsub.f32 1.0, %v778_v16  ;;  %v786_v50 = vand.u32 2147483647, %v3964_v58  ;;  %v579_v16 = vpop.permute.xlu1 %578 }
 0x30d   :  { %5950 = vst [vmem:[#allocation5_spill] sm:$0xff] %v3954_v53  ;;  %v2822_v60 = vmul.f32 -1.442695, %v3954_v53  ;;  %v780_v41 = vmul.f32 %v3985_v6, %v779_v28  ;;  %vm4075_vm11 = vcmp.eq.f32.partialorder %v786_v50, 8.507059e+37 }
 0x30f   :  { %3008 = vpow2.f32 %v2822_v60 }
 0x312   :  { %v684_v29 = vpop.f32.mrf.mxu2 }
 0x313   :  { %v3958_v55 = vadd.f32 %v684_v29, %v554_v31 }
 0x315   :  { %5951 = vst [vmem:[#allocation6_spill] sm:$0xff] %v3958_v55  ;;  %v2823_v61 = vmul.f32 -1.442695, %v3958_v55  ;;  %v3009_v7 = vpop.eup %3008 }
 0x316   :  { %v3992_v14 = vadd.f32 1.0, %v3009_v7 }
 0x317   :  { %3010 = vpow2.f32 %v2823_v61 }
 0x318   :  { %vm843_vm4 = vweird.f32 %v3992_v14 }
 0x31a   :  { %v687_v32 = vpop.f32.mrf.mxu2 }
 0x31b   :  { %v3962_v57 = vadd.f32 %v687_v32, %v559_v30  ;;  %v750_v30 = vmul.f32 %v3981_v4, %v749_v20  ;;  %v765_v32 = vmul.f32 %v3983_v5, %v764_v23  ;;  %v789_v23 = vor.u32 1.1754944e-38, %v788_v51 }
 0x31d   :  { %5952 = vst [vmem:[#allocation7_spill] sm:$0xff] %v3962_v57  ;;  %v2824_v63 = vmul.f32 -1.442695, %v3962_v57  ;;  %v3011_v9 = vpop.eup %3010  ;;  %v4027_v46 = vadd.f32 %v3981_v4, %v750_v30  ;;  %v766_v52 = vadd.f32 %v3983_v5, %v765_v32 }
 0x31e   :  { %v3994_v15 = vadd.f32 1.0, %v3011_v9 }
 0x31f   :  { %3012 = vpow2.f32 %v2824_v63 }
 0x320   :  { %3014 = vpow2.f32 %v2821_v1  ;;  %vm858_vm9 = vweird.f32 %v3994_v15 }
 0x321   :  { %3016 = vrcp.f32 %v3979_v3 }
 0x322   :  { %v3936_v35 = vpop.f32.mrf.mxu2  ;;  %3018 = vrcp.f32 %v3992_v14 }
 0x323   :  { %3020 = vrcp.f32 %v3994_v15 }
 0x325   :  { %v3013_v11 = vpop.eup %3012 }
 0x326   :  { %v3015_v13 = vpop.eup %3014  ;;  %v4000_v19 = vadd.f32 1.0, %v3013_v11 }
 0x327   :  { %v3998_v17 = vpop.eup %3016  ;;  %v4002_v21 = vadd.f32 1.0, %v3015_v13  ;;  %v755_v13 = vsel %vm4054_vm8, %v3981_v4, %v4027_v46 }
 0x328   :  { %v793_v27 = vmul.f32 %v3998_v17, %v3979_v3  ;;  %3022 = vrcp.f32 %v4000_v19  ;;  %v4023_v43 = vpop.eup %3018  ;;  %vm798_vm12 = vweird.f32 %v3998_v17 }
 0x329   :  { %3024 = vrcp.f32 %v4002_v21  ;;  %v4031_v49 = vpop.eup %3020  ;;  %v839_v9 = vmul.f32 %v4023_v43, %v3992_v14  ;;  %vm4116_vm15 = vmor %vm797_vm14, %vm798_vm12  ;;  %vm828_vm2 = vweird.f32 %v4002_v21  ;;  %vm844_vm5 = vweird.f32 %v4023_v43 }
 0x32a   :  { %v3947_v44 = vpop.f32.mrf.mxu2  ;;  %v794_v38 = vsub.f32 1.0, %v793_v27  ;;  %v854_v11 = vmul.f32 %v4031_v49, %v3994_v15  ;;  %v803_v27 = vand.u32 2147483648, %v3979_v3 }
 0x32b   :  { %v840_v34 = vsub.f32 1.0, %v839_v9 }
 0x32c   :  { %v795_v7 = vmul.f32 %v3998_v17, %v794_v38  ;;  %v855_v50 = vsub.f32 1.0, %v854_v11 }
 0x32e   :  { %v4036_v60 = vpop.eup %3022  ;;  %v856_v12 = vmul.f32 %v4031_v49, %v855_v50  ;;  %v877_v50 = vand.u32 2147483647, %v4000_v19 }
 0x32f   :  { %v4043_v63 = vpop.eup %3024  ;;  %v869_v20 = vmul.f32 %v4036_v60, %v4000_v19  ;;  %vm874_vm7 = vweird.f32 %v4036_v60 }
 0x330   :  { %v824_v30 = vmul.f32 %v4043_v63, %v4002_v21  ;;  %vm829_vm3 = vweird.f32 %v4043_v63 }
 0x332   :  { %v3952_v48 = vpop.f32.mrf.mxu2 }
 0x33a   :  { %v3973_v0 = vpop.f32.mrf.mxu2 }
 0x33b   :  { %v4107_v51 = vadd.f32 %v3973_v0, %v579_v16  ;;  %v825_v0 = vsub.f32 1.0, %v824_v30  ;;  %v847_v16 = vand.u32 2147483647, %v3992_v14 }
 0x33d   :  { %5969 = vst [vmem:[#allocation14_spill] sm:$0xff] %v4107_v51  ;;  %v826_v58 = vmul.f32 %v4043_v63, %v825_v0  ;;  %vm848_vm14 = vcmp.eq.f32.partialorder %v847_v16, 8.507059e+37 }
 0x342   :  { %v702_v8 = vpop.f32.mrf.mxu2 }
 0x343   :  { %v4004_v22 = vadd.f32 %v702_v8, %v584_v18  ;;  %v781_v8 = vadd.f32 %v3985_v6, %v780_v41  ;;  %v574_v18 = vpop.permute.xlu2 %573  ;;  %v801_v41 = vand.u32 2147483647, %v3979_v3 }
 0x344   :  { %v4103_v38 = vadd.f32 %v3952_v48, %v574_v18  ;;  %v804_v48 = vor.u32 1.1754944e-38, %v803_v27  ;;  %v857_v27 = vadd.f32 %v4031_v49, %v856_v12 }
 0x345   :  { %5954 = vst [vmem:[#allocation9_spill] sm:$0xff] %v4004_v22  ;;  %v2825_v31 = vmul.f32 -1.442695, %v4004_v22  ;;  %vm4138_vm0 = vcmp.eq.f32.partialorder %v801_v41, 8.507059e+37 }
 0x346   :  { %5968 = vst [vmem:[#allocation13_spill] sm:$0xff] %v4103_v38 }
 0x347   :  { %3026 = vpow2.f32 %v2825_v31 }
 0x34a   :  { %v705_v26 = vpop.f32.mrf.mxu2 }
 0x34b   :  { %v4011_v29 = vadd.f32 %v705_v26, %v589_v25  ;;  %v569_v25 = vpop.permute.xlu0 %568 }
 0x34c   :  { %v4094_v32 = vadd.f32 %v3947_v44, %v569_v25  ;;  %v870_v44 = vsub.f32 1.0, %v869_v20  ;;  %v849_v20 = vand.u32 2147483648, %v3992_v14 }
 0x34d   :  { %5955 = vst [vmem:[#allocation10_spill] sm:$0xff] %v4011_v29  ;;  %v2826_v33 = vmul.f32 -1.442695, %v4011_v29  ;;  %v3027_v31 = vpop.eup %3026 }
 0x34e   :  { %5967 = vst [vmem:[#allocation12_spill] sm:$0xff] %v4094_v32 }
 0x34f   :  { %3028 = vpow2.f32 %v2826_v33  ;;  %v785_v33 = vsel %vm4087_vm13, %v3985_v6, %v781_v8 }
 0x352   :  { %v708_v1 = vpop.f32.mrf.mxu2 }
 0x353   :  { %v4058_v10 = vadd.f32 %v708_v1, %v594_v24  ;;  %v770_v24 = vsel %vm4065_vm10, %v3983_v5, %v766_v52  ;;  %v4097_v5 = vadd.f32 %v3998_v17, %v795_v7  ;;  %v4122_v1 = vsel %vm4075_vm11, %v789_v23, %v785_v33  ;;  %v564_v23 = vpop.permute.xlu1 %563  ;;  %vm4174_vm10 = vmor %vm843_vm4, %vm844_vm5 }
 0x354   :  { %v4112_v52 = vsel %vm4039_vm6, %v774_v62, %v770_v24  ;;  %v4124_v7 = vadd.f32 1.0, %v3027_v31  ;;  %v841_v62 = vmul.f32 %v4023_v43, %v840_v34  ;;  %vm859_vm6 = vweird.f32 %v4031_v49 }
 0x355   :  { %5960 = vst [vmem:[#allocation11_spill] sm:$0xff] %v4058_v10  ;;  %v2827_v26 = vmul.f32 -1.442695, %v4058_v10  ;;  %v3029_v36 = vpop.eup %3028  ;;  %v800_v61 = vsel %vm4116_vm15, %v3998_v17, %v4097_v5  ;;  %v871_v17 = vmul.f32 %v4036_v60, %v870_v44  ;;  %v864_v31 = vand.u32 2147483648, %v3994_v15  ;;  %vm4183_vm12 = vmor %vm858_vm9, %vm859_vm6 }
 0x356   :  { %v4132_v8 = vadd.f32 1.0, %v3029_v36  ;;  %v842_v25 = vadd.f32 %v4023_v43, %v841_v62  ;;  %v879_v33 = vand.u32 2147483648, %v4000_v19  ;;  %v827_v36 = vadd.f32 %v4043_v63, %v826_v58  ;;  %vm4215_vm15 = vmor %vm828_vm2, %vm829_vm3 }
 0x357   :  { %3030 = vpow2.f32 %v2827_v26  ;;  %v4159_v26 = vadd.f32 %v3936_v35, %v564_v23  ;;  %v872_v30 = vadd.f32 %v4036_v60, %v871_v17  ;;  %v862_v35 = vand.u32 2147483647, %v3994_v15 }
 0x358   :  { %3032 = vtanh.f32 %v4094_v32  ;;  %vm873_vm11 = vweird.f32 %v4000_v19  ;;  %v846_v14 = vsel %vm4174_vm10, %v4023_v43, %v842_v25  ;;  %v832_v15 = vand.u32 2147483647, %v4002_v21 }
 0x359   :  { %3034 = vtanh.f32 %v4103_v38  ;;  %5975 = vst [vmem:[#allocation16_spill] sm:$0xff] %v4159_v26  ;;  %vm4196_vm13 = vmor %vm873_vm11, %vm874_vm7  ;;  %v861_v0 = vsel %vm4183_vm12, %v4031_v49, %v857_v27  ;;  %v834_v62 = vand.u32 2147483648, %v4002_v21  ;;  %v805_v12 = vsel %vm4138_vm0, %v804_v48, %v800_v61 }
 0x35a   :  { %v711_v3 = vpop.f32.mrf.mxu2  ;;  %3036 = vtanh.f32 %v4107_v51  ;;  %v876_v17 = vsel %vm4196_vm13, %v4036_v60, %v872_v30  ;;  %vm863_vm4 = vcmp.eq.f32.partialorder %v862_v35, 8.507059e+37  ;;  %v831_v48 = vsel %vm4215_vm15, %v4043_v63, %v827_v36 }
 0x35b   :  { %v4136_v9 = vadd.f32 %v711_v3, %v3977_v2  ;;  %3038 = vrcp.f32 %v4124_v7  ;;  %v850_v3 = vor.u32 1.1754944e-38, %v849_v20  ;;  %v880_v20 = vor.u32 1.1754944e-38, %v879_v33 }
 0x35c   :  { %3040 = vrcp.f32 %v4132_v8  ;;  %vm878_vm0 = vcmp.eq.f32.partialorder %v877_v50, 8.507059e+37  ;;  %vm757_vm2 = vcmp.eq.f32.partialorder %v756_v42, 8.507059e+37  ;;  %vm833_vm3 = vcmp.eq.f32.partialorder %v832_v15, 8.507059e+37 }
 0x35d   :  { %5972 = vst [vmem:[#allocation15_spill] sm:$0xff] %v4136_v9  ;;  %v3031_v2 = vpop.eup %3030  ;;  %v2828_v18 = vmul.f32 -1.442695, %v4136_v9  ;;  %v851_v58 = vsel %vm848_vm14, %v850_v3, %v846_v14  ;;  %v881_v16 = vsel %vm878_vm0, %v880_v20, %v876_v17  ;;  %vm908_vm8 = vweird.f32 %v4124_v7 }
 0x35e   :  { %v4153_v24 = vadd.f32 1.0, %v3031_v2  ;;  %v3033_v28 = vpop.eup %3032  ;;  %v865_v2 = vor.u32 1.1754944e-38, %v864_v31  ;;  %v964_v30 = vmul.f32 0.0, %v851_v58  ;;  %v966_v36 = vmul.f32 0.0, %v881_v16 }
 0x35f   :  { %3042 = vpow2.f32 %v2828_v18  ;;  %v3035_v5 = vpop.eup %3034  ;;  %v968_v21 = vmul.f32 %v3033_v28, %v4112_v52  ;;  %v759_v52 = vor.u32 1.1754944e-38, %v758_v47  ;;  %v835_v28 = vor.u32 1.1754944e-38, %v834_v62 }
 0x360   :  { %3044 = vrcp.f32 %v4153_v24  ;;  %v3037_v41 = vpop.eup %3036  ;;  %v866_v11 = vsel %vm863_vm4, %v865_v2, %v861_v0  ;;  %v969_v25 = vmul.f32 %v3035_v5, %v4122_v1  ;;  %vm938_vm7 = vweird.f32 %v4153_v24 }
 0x361   :  { %v4191_v6 = vpop.eup %3038  ;;  %3046 = vtanh.f32 %v4159_v26  ;;  %v970_v63 = vmul.f32 %v3037_v41, %v805_v12  ;;  %v965_v34 = vmul.f32 0.0, %v866_v11  ;;  %v4237_v50 = vadd.f32 %v968_v21, %v964_v30 }
 0x362   :  { %v4204_v43 = vpop.eup %3040  ;;  %v904_v31 = vmul.f32 %v4191_v6, %v4124_v7  ;;  %v760_v41 = vsel %vm757_vm2, %v759_v52, %v755_v13  ;;  %v836_v44 = vsel %vm833_vm3, %v835_v28, %v831_v48  ;;  %v942_v12 = vand.u32 2147483647, %v4153_v24 }
 0x363   :  { %v919_v27 = vmul.f32 %v4204_v43, %v4132_v8  ;;  %v4241_v1 = vadd.f32 %v969_v25, %v965_v34  ;;  %v4248_v14 = vadd.f32 %v970_v63, %v966_v36  ;;  %v963_v54 = vmul.f32 0.0, %v836_v44 }
 0x364   :  { %v905_v47 = vsub.f32 1.0, %v904_v31  ;;  %vm924_vm6 = vweird.f32 %v4204_v43  ;;  %v944_v17 = vand.u32 2147483648, %v4153_v24  ;;  %vm923_vm11 = vweird.f32 %v4132_v8 }
 0x365   :  { %v3043_v18 = vpop.eup %3042  ;;  %v920_v5 = vsub.f32 1.0, %v919_v27  ;;  %v927_v48 = vand.u32 2147483647, %v4132_v8  ;;  %v929_v11 = vand.u32 2147483648, %v4132_v8  ;;  %vm909_vm12 = vweird.f32 %v4191_v6  ;;  %vm4283_vm14 = vmor %vm923_vm11, %vm924_vm6 }
 0x366   :  { %v4222_v61 = vpop.eup %3044  ;;  %v4224_v60 = vadd.f32 1.0, %v3043_v18  ;;  %v906_v4 = vmul.f32 %v4191_v6, %v905_v47  ;;  %v945_v63 = vor.u32 1.1754944e-38, %v944_v17  ;;  %v912_v30 = vand.u32 2147483647, %v4124_v7  ;;  %vm910_vm2 = vmor %vm908_vm8, %vm909_vm12  ;;  %v4385_v17 = vld [vmem:[%s5909_s8 + $0x70] sm:$0xff] }
 0x367   :  { %v934_v23 = vmul.f32 %v4222_v61, %v4153_v24  ;;  %v3047_v33 = vpop.eup %3046  ;;  %v921_v56 = vmul.f32 %v4204_v43, %v920_v5  ;;  %vm939_vm5 = vweird.f32 %v4222_v61  ;;  %vm943_vm0 = vcmp.eq.f32.partialorder %v942_v12, 8.507059e+37  ;;  %v4380_v12 = vld [vmem:[%s5909_s8 + $0x30] sm:$0xff] }
 0x368   :  { %3048 = vrcp.f32 %v4224_v60  ;;  %v967_v19 = vmul.f32 %v3047_v33, %v760_v41  ;;  %v959_v62 = vand.u32 2147483648, %v4224_v60  ;;  %v957_v49 = vand.u32 2147483647, %v4224_v60  ;;  %vm4269_vm10 = vmor %vm938_vm7, %vm939_vm5 }
 0x369   :  { %v935_v35 = vsub.f32 1.0, %v934_v23  ;;  %3050 = vtanh.f32 %v4237_v50  ;;  %v922_v18 = vadd.f32 %v4204_v43, %v921_v56  ;;  %vm953_vm13 = vweird.f32 %v4224_v60  ;;  %v4343_v56 = vld [vmem:[%s5909_s8 + $0x58] sm:$0xff] }
 0x36a   :  { %3052 = vtanh.f32 %v4241_v1  ;;  %v4258_v46 = vadd.f32 %v967_v19, %v963_v54  ;;  %v907_v25 = vadd.f32 %v4191_v6, %v906_v4  ;;  %v960_v8 = vor.u32 1.1754944e-38, %v959_v62  ;;  %v4308_v19 = vld [vmem:[%s5909_s8 + $0x8] sm:$0xff]  ;;  %v4329_v54 = vld [vmem:[%s5909_s8 + $0x50] sm:$0xff]  ;;  %v4352_v4 = vld [vmem:[%s5909_s8 + $0x20] sm:$0xff] }
 0x36b   :  { %v936_v0 = vmul.f32 %v4222_v61, %v935_v35  ;;  %3054 = vtanh.f32 %v4248_v14  ;;  %vm958_vm4 = vcmp.eq.f32.partialorder %v957_v49, 8.507059e+37  ;;  %v930_v34 = vor.u32 1.1754944e-38, %v929_v11  ;;  %v4371_v62 = vld [vmem:[%s5909_s8 + $0x68] sm:$0xff]  ;;  %v4399_v49 = vld [vmem:[%s5909_s8 + $0x78] sm:$0xff] }
 0x36c   :  { %3056 = vtanh.f32 %v4258_v46  ;;  %vm928_vm3 = vcmp.eq.f32.partialorder %v927_v48, 8.507059e+37  ;;  %v911_v28 = vsel %vm910_vm2, %v4191_v6, %v907_v25  ;;  %vm913_vm5 = vcmp.eq.f32.partialorder %v912_v30, 8.507059e+37  ;;  %v4303_v6 = vld [vmem:[%s5909_s8] sm:$0xff] }
 0x36d   :  { %v937_v15 = vadd.f32 %v4222_v61, %v936_v0  ;;  %v4313_v0 = vld [vmem:[%s5909_s8 + $0x48] sm:$0xff] }
 0x36e   :  { %v3049_v3 = vpop.eup %3048 }
 0x36f   :  { %v949_v42 = vmul.f32 %v3049_v3, %v4224_v60  ;;  %vm954_vm9 = vweird.f32 %v3049_v3  ;;  %v3051_v20 = vpop.eup %3050  ;;  %v941_v16 = vsel %vm4269_vm10, %v4222_v61, %v937_v15  ;;  %v914_v60 = vand.u32 2147483648, %v4124_v7  ;;  %v4366_v15 = vld [vmem:[%s5909_s8 + $0x28] sm:$0xff] }
 0x370   :  { %v3053_v24 = vpop.eup %3052  ;;  %vm955_vm15 = vmor %vm953_vm13, %vm954_vm9  ;;  %v926_v61 = vsel %vm4283_vm14, %v4204_v43, %v922_v18  ;;  %v946_v35 = vsel %vm943_vm0, %v945_v63, %v941_v16  ;;  %v4408_v18 = vld [vmem:[%s5909_s8 + $0x40] sm:$0xff] }
 0x371   :  { %v950_v13 = vsub.f32 1.0, %v949_v42  ;;  %v3055_v27 = vpop.eup %3054  ;;  %v931_v36 = vsel %vm928_vm3, %v930_v34, %v926_v61  ;;  %v915_v5 = vor.u32 1.1754944e-38, %v914_v60  ;;  %v981_v41 = vmul.f32 %v3053_v24, %v946_v35  ;;  %v4338_v42 = vld [vmem:[%s5909_s8 + $0x18] sm:$0xff] }
 0x372   :  { %v980_v44 = vmul.f32 %v3051_v20, %v931_v36  ;;  %v3057_v47 = vpop.eup %3056 }
 0x373   :  { %v951_v2 = vmul.f32 %v3049_v3, %v950_v13  ;;  %v916_v43 = vsel %vm913_vm5, %v915_v5, %v911_v28  ;;  %v4357_v13 = vld [vmem:[%s5909_s8 + $0x60] sm:$0xff] }
 0x374   :  { %v979_v7 = vmul.f32 %v3057_v47, %v916_v43 }
 0x375   :  { %v952_v21 = vadd.f32 %v3049_v3, %v951_v2  ;;  %v4394_v2 = vld [vmem:[%s5909_s8 + $0x38] sm:$0xff] }
 0x377   :  { %v956_v31 = vsel %vm955_vm15, %v3049_v3, %v952_v21  ;;  %v4324_v3 = vld [vmem:[%s5909_s8 + $0x10] sm:$0xff] }
 0x378   :  { %v961_v33 = vsel %vm958_vm4, %v960_v8, %v956_v31 }
 0x379   :  { %v982_v52 = vmul.f32 %v3055_v27, %v961_v33 }
 0x37b   :  { %1046 = vmatpush.msrb.mxu0 %v982_v52  ;;  %2979 = vmatpush.msrb.mxu1 %v982_v52 }
 0x37c   :  { %2980 = vmatpush.msra.mxu3 %v982_v52 }
 0x37d   :  { %1047 = vmatpush.msrb.mxu0 %v981_v41  ;;  %2981 = vmatpush.msrb.mxu1 %v981_v41 }
 0x37e   :  { %2982 = vmatpush.msra.mxu3 %v981_v41 }
 0x37f   :  { %1048 = vmatpush.msrb.mxu0 %v980_v44  ;;  %2983 = vmatpush.msrb.mxu1 %v980_v44 }
 0x380   :  { %2984 = vmatpush.msra.mxu3 %v980_v44 }
 0x381   :  { %1049 = vmatpush.msrb.mxu0 %v979_v7  ;;  %2985 = vmatpush.msrb.mxu1 %v979_v7 }
 0x382   :  { %2986 = vmatpush.msra.mxu3 %v979_v7  ;;  %2829 = vmatmul.msk.f32.vlgmr.msrb.gmra.mxu0 %vm320_vm1, %v4303_v6 }
 0x383   :  { %2830 = vmatmul.msk.f32.vlgmr.msrb.gmra.mxu1 %vm320_vm1, %v4308_v19  ;;  %2838 = vmatmul.msk.f32.vlgmr.msra.gmra.mxu3 %vm320_vm1, %v4313_v0 }
 0x38b   :  { %2831 = vmatmul.msk.f32.gmra.mxu1 %vm320_vm1, %v4324_v3  ;;  %2839 = vmatmul.msk.f32.gmra.mxu3 %vm320_vm1, %v4329_v54 }
 0x393   :  { %2832 = vmatmul.msk.f32.gmra.mxu1 %vm320_vm1, %v4338_v42  ;;  %2840 = vmatmul.msk.f32.gmra.mxu3 %vm320_vm1, %v4343_v56 }
 0x39b   :  { %2833 = vmatmul.msk.f32.gmra.mxu1 %vm320_vm1, %v4352_v4  ;;  %2841 = vmatmul.msk.f32.gmra.mxu3 %vm320_vm1, %v4357_v13 }
 0x3a3   :  { %2834 = vmatmul.msk.f32.gmra.mxu1 %vm320_vm1, %v4366_v15  ;;  %2842 = vmatmul.msk.f32.gmra.mxu3 %vm320_vm1, %v4371_v62 }
 0x3ab   :  { %2835 = vmatmul.msk.f32.gmra.mxu1 %vm320_vm1, %v4380_v12  ;;  %2843 = vmatmul.msk.f32.gmra.mxu3 %vm320_vm1, %v4385_v17 }
 0x3b3   :  { %2836 = vmatmul.msk.f32.gmra.mxu1 %vm320_vm1, %v4394_v2  ;;  %2844 = vmatmul.msk.f32.gmra.mxu3 %vm320_vm1, %v4399_v49 }
 0x3bb   :  { %2837 = vmatmul.msk.f32.gmra.mxu1 %vm320_vm1, %v4408_v18 }
 0x3ff   :  { %v1051_v24 = vpop.f32.mrf.mxu0 }
 0x400   :  { %v1054_v20 = vpop.f32.mrf.mxu1  ;;  %v1102_v21 = vadd.f32 %v1051_v24, %v3938_v37 }
 0x401   :  { %v1103_v11 = vadd.f32 %v1054_v20, %v3940_v39 }
 0x402   :  { %v2846_v8 = vmul.f32 -1.442695, %v1102_v21 }
 0x403   :  { %v2847_v16 = vmul.f32 -1.442695, %v1103_v11 }
 0x405   :  { %3058 = vpow2.f32 %v2847_v16 }
 0x406   :  { %v1078_v58 = vpop.f32.mrf.mxu3  ;;  %3060 = vpow2.f32 %v2846_v8 }
 0x407   :  { %v1111_v8 = vadd.f32 %v1078_v58, %v4094_v32 }
 0x408   :  { %v1057_v48 = vpop.f32.mrf.mxu1 }
 0x409   :  { %v1104_v23 = vadd.f32 %v1057_v48, %v3942_v40 }
 0x40b   :  { %v2848_v63 = vmul.f32 -1.442695, %v1104_v23  ;;  %v3059_v60 = vpop.eup %3058 }
 0x40c   :  { %v4420_v33 = vadd.f32 1.0, %v3059_v60  ;;  %v3061_v35 = vpop.eup %3060 }
 0x40d   :  { %3062 = vpow2.f32 %v2848_v63  ;;  %v4423_v36 = vadd.f32 1.0, %v3061_v35 }
 0x40e   :  { %v4415_v25 = vpop.f32.mrf.mxu3  ;;  %3064 = vrcp.f32 %v4420_v33  ;;  %vm1154_vm6 = vweird.f32 %v4420_v33 }
 0x40f   :  { %vm1139_vm8 = vweird.f32 %v4423_v36 }
 0x410   :  { %v1060_v27 = vpop.f32.mrf.mxu1 }
 0x411   :  { %v1105_v31 = vadd.f32 %v1060_v27, %v3949_v45 }
 0x413   :  { %v2849_v34 = vmul.f32 -1.442695, %v1105_v31  ;;  %v3063_v52 = vpop.eup %3062 }
 0x414   :  { %v4426_v41 = vadd.f32 1.0, %v3063_v52  ;;  %v4431_v20 = vpop.eup %3064 }
 0x415   :  { %3066 = vpow2.f32 %v2849_v34  ;;  %v1150_v21 = vmul.f32 %v4431_v20, %v4420_v33  ;;  %vm1155_vm9 = vweird.f32 %v4431_v20 }
 0x416   :  { %v4417_v30 = vpop.f32.mrf.mxu3  ;;  %3068 = vrcp.f32 %v4423_v36  ;;  %vm4499_vm11 = vmor %vm1154_vm6, %vm1155_vm9  ;;  %vm1169_vm13 = vweird.f32 %v4426_v41 }
 0x417   :  { %3070 = vrcp.f32 %v4426_v41  ;;  %v1151_v52 = vsub.f32 1.0, %v1150_v21 }
 0x418   :  { %v1063_v61 = vpop.f32.mrf.mxu1 }
 0x419   :  { %v1106_v28 = vadd.f32 %v1063_v61, %v3966_v59 }
 0x41b   :  { %v2850_v43 = vmul.f32 -1.442695, %v1106_v28  ;;  %v3067_v48 = vpop.eup %3066 }
 0x41c   :  { %v4433_v24 = vpop.eup %3068  ;;  %v4437_v16 = vadd.f32 1.0, %v3067_v48  ;;  %v1158_v48 = vand.u32 2147483647, %v4420_v33 }
 0x41d   :  { %3072 = vpow2.f32 %v2850_v43  ;;  %v4439_v27 = vpop.eup %3070  ;;  %v1135_v61 = vmul.f32 %v4433_v24, %v4423_v36  ;;  %vm1140_vm12 = vweird.f32 %v4433_v24 }
 0x41e   :  { %v1087_v5 = vpop.f32.mrf.mxu3  ;;  %v1165_v58 = vmul.f32 %v4439_v27, %v4426_v41  ;;  %vm4471_vm7 = vcmp.eq.f32.partialorder %v1158_v48, 8.507059e+37  ;;  %vm1170_vm14 = vweird.f32 %v4439_v27  ;;  %vm4525_vm4 = vmor %vm1139_vm8, %vm1140_vm12  ;;  %vm1184_vm2 = vweird.f32 %v4437_v16 }
 0x41f   :  { %v1114_v35 = vadd.f32 %v1087_v5, %v4004_v22  ;;  %v1136_v5 = vsub.f32 1.0, %v1135_v61  ;;  %v1143_v61 = vand.u32 2147483647, %v4423_v36  ;;  %vm4539_vm0 = vmor %vm1169_vm13, %vm1170_vm14 }
 0x420   :  { %v1066_v44 = vpop.f32.mrf.mxu1 }
 0x421   :  { %v1107_v47 = vadd.f32 %v1066_v44, %v3954_v53  ;;  %v2854_v21 = vmul.f32 -1.442695, %v1114_v35  ;;  %v1112_v35 = vadd.f32 %v4415_v25, %v4103_v38  ;;  %vm4485_vm10 = vcmp.eq.f32.partialorder %v1143_v61, 8.507059e+37 }
 0x423   :  { %v2851_v7 = vmul.f32 -1.442695, %v1107_v47  ;;  %v3073_v60 = vpop.eup %3072 }
 0x424   :  { %v4452_v44 = vadd.f32 1.0, %v3073_v60  ;;  %v1166_v60 = vsub.f32 1.0, %v1165_v58 }
 0x425   :  { %3074 = vpow2.f32 %v2851_v7  ;;  %v1145_v7 = vand.u32 2147483648, %v4423_v36 }
 0x426   :  { %v1090_v11 = vpop.f32.mrf.mxu3  ;;  %3076 = vrcp.f32 %v4437_v16  ;;  %v1221_v58 = vand.u32 2147483648, %v4452_v44  ;;  %vm1215_vm5 = vweird.f32 %v4452_v44 }
 0x427   :  { %v1115_v43 = vadd.f32 %v1090_v11, %v4011_v29  ;;  %3078 = vtanh.f32 %v1111_v8  ;;  %v1160_v11 = vand.u32 2147483648, %v4420_v33 }
 0x428   :  { %v1069_v23 = vpop.f32.mrf.mxu1 }
 0x429   :  { %v1108_v63 = vadd.f32 %v1069_v23, %v3958_v55  ;;  %v1152_v23 = vmul.f32 %v4431_v20, %v1151_v52  ;;  %v2855_v8 = vmul.f32 -1.442695, %v1115_v43  ;;  %v4469_v52 = vor.u32 1.1754944e-38, %v1145_v7 }
 0x42a   :  { %v1161_v55 = vor.u32 1.1754944e-38, %v1160_v11  ;;  %v1167_v7 = vmul.f32 %v4439_v27, %v1166_v60 }
 0x42b   :  { %v3075_v31 = vpop.eup %3074  ;;  %v2852_v34 = vmul.f32 -1.442695, %v1108_v63 }
 0x42c   :  { %v4447_v28 = vadd.f32 1.0, %v3075_v31  ;;  %v4464_v22 = vpop.eup %3076 }
 0x42d   :  { %v3079_v43 = vpop.eup %3078  ;;  %v1180_v48 = vmul.f32 %v4464_v22, %v4437_v16  ;;  %vm1185_vm3 = vweird.f32 %v4464_v22 }
 0x42e   :  { %3080 = vrcp.f32 %v4447_v28  ;;  %v1093_v47 = vpop.f32.mrf.mxu3  ;;  %vm1230_vm12 = vweird.f32 %v4447_v28 }
 0x42f   :  { %3082 = vpow2.f32 %v2852_v34  ;;  %v1116_v63 = vadd.f32 %v1093_v47, %v4058_v10 }
 0x430   :  { %v1072_v31 = vpop.f32.mrf.mxu1  ;;  %3084 = vrcp.f32 %v4452_v44 }
 0x431   :  { %v1109_v29 = vadd.f32 %v1072_v31, %v3962_v57  ;;  %v2856_v34 = vmul.f32 -1.442695, %v1116_v63  ;;  %3086 = vpow2.f32 %v2854_v21  ;;  %v1137_v31 = vmul.f32 %v4433_v24, %v1136_v5 }
 0x432   :  { %v1153_v57 = vadd.f32 %v4431_v20, %v1152_v23  ;;  %3088 = vpow2.f32 %v2855_v8  ;;  %v1113_v21 = vadd.f32 %v4417_v30, %v4107_v51  ;;  %v1173_v5 = vand.u32 2147483647, %v4426_v41 }
 0x433   :  { %v2853_v47 = vmul.f32 -1.442695, %v1109_v29  ;;  %3090 = vpow2.f32 %v2856_v34  ;;  %v1175_v23 = vand.u32 2147483648, %v4426_v41  ;;  %v1138_v61 = vadd.f32 %v4433_v24, %v1137_v31 }
 0x434   :  { %v4476_v10 = vpop.eup %3080  ;;  %v1157_v34 = vsel %vm4499_vm11, %v4431_v20, %v1153_v57  ;;  %vm4515_vm15 = vcmp.eq.f32.partialorder %v1173_v5, 8.507059e+37  ;;  %v1190_v30 = vand.u32 2147483648, %v4437_v16  ;;  %v1219_v29 = vand.u32 2147483647, %v4452_v44 }
 0x435   :  { %v3083_v25 = vpop.eup %3082  ;;  %3092 = vpow2.f32 %v2853_v47  ;;  %v1226_v33 = vmul.f32 %v4476_v10, %v4447_v28  ;;  %v1176_v57 = vor.u32 1.1754944e-38, %v1175_v23  ;;  %v1162_v5 = vsel %vm4471_vm7, %v1161_v55, %v1157_v34 }
 0x436   :  { %v4491_v11 = vadd.f32 1.0, %v3083_v25  ;;  %v1096_v8 = vpop.f32.mrf.mxu3  ;;  %v4493_v63 = vpop.eup %3084  ;;  %3094 = vtanh.f32 %v1112_v35  ;;  %v1168_v35 = vadd.f32 %v4439_v27, %v1167_v7  ;;  %v1181_v25 = vsub.f32 1.0, %v1180_v48 }
 0x437   :  { %v1117_v60 = vadd.f32 %v1096_v8, %v4136_v9  ;;  %v3087_v47 = vpop.eup %3086  ;;  %v1211_v20 = vmul.f32 %v4493_v63, %v4452_v44  ;;  %v1188_v55 = vand.u32 2147483647, %v4437_v16  ;;  %v4558_v38 = vmul.f32 %v3079_v43, %v1162_v5 }
 0x438   :  { %3096 = vrcp.f32 %v4491_v11  ;;  %v3089_v8 = vpop.eup %3088  ;;  %v1182_v41 = vmul.f32 %v4464_v22, %v1181_v25  ;;  %vm1216_vm7 = vweird.f32 %v4493_v63  ;;  %vm1231_vm9 = vweird.f32 %v4476_v10 }
 0x439   :  { %v2857_v31 = vmul.f32 -1.442695, %v1117_v60  ;;  %3098 = vtanh.f32 %v1113_v21  ;;  %v3091_v48 = vpop.eup %3090  ;;  %v1142_v21 = vsel %vm4525_vm4, %v4433_v24, %v1138_v61  ;;  %v1227_v60 = vsub.f32 1.0, %v1226_v33  ;;  %vm4620_vm14 = vmor %vm1230_vm12, %vm1231_vm9 }
 0x43a   :  { %v4546_v34 = vadd.f32 1.0, %v3091_v48  ;;  %v1172_v24 = vsel %vm4539_vm0, %v4439_v27, %v1168_v35  ;;  %v4554_v61 = vadd.f32 1.0, %v3087_v47  ;;  %v1212_v45 = vsub.f32 1.0, %v1211_v20  ;;  %vm4640_vm0 = vmor %vm1215_vm5, %vm1216_vm7 }
 0x43b   :  { %3100 = vpow2.f32 %v2857_v31  ;;  %v3093_v23 = vpop.eup %3092  ;;  %v4560_v40 = vadd.f32 1.0, %v3089_v8  ;;  %v4565_v33 = vsel %vm4485_vm10, %v4469_v52, %v1142_v21  ;;  %v4568_v27 = vor.u32 1.1754944e-38, %v1190_v30  ;;  %v1075_v52 = vpop.f32.mrf.mxu1  ;;  %vm4603_vm10 = vmor %vm1184_vm2, %vm1185_vm3 }
 0x43c   :  { %v4548_v31 = vpop.eup %3094  ;;  %v4556_v7 = vadd.f32 1.0, %v3093_v23  ;;  %v1177_v43 = vsel %vm4515_vm15, %v1176_v57, %v1172_v24  ;;  %v1228_v25 = vmul.f32 %v4476_v10, %v1227_v60  ;;  %v1183_v20 = vadd.f32 %v4464_v22, %v1182_v41 }
 0x43d   :  { %v4581_v48 = vor.u32 1.1754944e-38, %v1221_v58  ;;  %v1213_v9 = vmul.f32 %v4493_v63, %v1212_v45  ;;  %v1251_v57 = vand.u32 2147483648, %v4491_v11  ;;  %v1249_v23 = vand.u32 2147483647, %v4491_v11 }
 0x43e   :  { %v3097_v51 = vpop.eup %3096  ;;  %3102 = vrcp.f32 %v4556_v7  ;;  %v1110_v36 = vadd.f32 %v1075_v52, %v4159_v26  ;;  %vm4591_vm6 = vcmp.eq.f32.partialorder %v1188_v55, 8.507059e+37  ;;  %v1229_v45 = vadd.f32 %v4476_v10, %v1228_v25 }
 0x43f   :  { %v1241_v47 = vmul.f32 %v3097_v51, %v4491_v11  ;;  %v4572_v35 = vpop.eup %3098  ;;  %3104 = vrcp.f32 %v4546_v34  ;;  %vm1246_vm8 = vweird.f32 %v3097_v51  ;;  %v1234_v55 = vand.u32 2147483647, %v4447_v28 }
 0x440   :  { %3106 = vrcp.f32 %v4554_v61  ;;  %v1236_v41 = vand.u32 2147483648, %v4447_v28  ;;  %vm1245_vm11 = vweird.f32 %v4491_v11  ;;  %v1252_v52 = vor.u32 1.1754944e-38, %v1251_v57 }
 0x441   :  { %v3101_v8 = vpop.eup %3100  ;;  %v1242_v5 = vsub.f32 1.0, %v1241_v47  ;;  %3108 = vrcp.f32 %v4560_v40  ;;  %vm1247_vm13 = vmor %vm1245_vm11, %vm1246_vm8  ;;  %vm1250_vm15 = vcmp.eq.f32.partialorder %v1249_v23, 8.507059e+37  ;;  %vm4624_vm4 = vcmp.eq.f32.partialorder %v1219_v29, 8.507059e+37 }
 0x442   :  { %v4587_v30 = vadd.f32 1.0, %v3101_v8  ;;  %v1214_v8 = vadd.f32 %v4493_v63, %v1213_v9  ;;  %v1187_v9 = vsel %vm4603_vm10, %v4464_v22, %v1183_v20  ;;  %v1233_v53 = vsel %vm4620_vm14, %v4476_v10, %v1229_v45 }
 0x443   :  { %v1243_v21 = vmul.f32 %v3097_v51, %v1242_v5  ;;  %vm1235_vm2 = vcmp.eq.f32.partialorder %v1234_v55, 8.507059e+37  ;;  %v1266_v22 = vand.u32 2147483648, %v4556_v7  ;;  %v1264_v10 = vand.u32 2147483647, %v4556_v7 }
 0x444   :  { %3110 = vrcp.f32 %v4587_v30  ;;  %v3103_v60 = vpop.eup %3102  ;;  %v1218_v32 = vsel %vm4640_vm0, %v4493_v63, %v1214_v8  ;;  %vm1260_vm5 = vweird.f32 %v4556_v7  ;;  %v1192_v63 = vsel %vm4591_vm6, %v4568_v27, %v1187_v9 }
 0x445   :  { %v1244_v47 = vadd.f32 %v3097_v51, %v1243_v21  ;;  %v4610_v25 = vpop.eup %3104  ;;  %v1256_v16 = vmul.f32 %v3103_v60, %v4556_v7  ;;  %3112 = vtanh.f32 %v1110_v36  ;;  %vm1261_vm3 = vweird.f32 %v3103_v60 }
 0x446   :  { %v4616_v5 = vpop.eup %3106  ;;  %v1321_v23 = vmul.f32 %v4610_v25, %v4546_v34  ;;  %vm1262_vm8 = vmor %vm1260_vm5, %vm1261_vm3  ;;  %v1267_v8 = vor.u32 1.1754944e-38, %v1266_v22  ;;  %vm1265_vm7 = vcmp.eq.f32.partialorder %v1264_v10, 8.507059e+37  ;;  %v1357_v27 = vmul.f32 %v4572_v35, %v1192_v63 }
 0x447   :  { %v1248_v28 = vsel %vm1247_vm13, %v3097_v51, %v1244_v47  ;;  %v4628_v57 = vpop.eup %3108  ;;  %v1257_v21 = vsub.f32 1.0, %v1256_v16  ;;  %v1237_v51 = vor.u32 1.1754944e-38, %v1236_v41  ;;  %v1356_v41 = vmul.f32 %v4548_v31, %v1177_v43 }
 0x448   :  { %v1253_v26 = vsel %vm1250_vm15, %v1252_v52, %v1248_v28  ;;  %v1306_v44 = vmul.f32 %v4628_v57, %v4560_v40  ;;  %v1291_v47 = vmul.f32 %v4616_v5, %v4554_v61  ;;  %vm1340_vm9 = vweird.f32 %v4587_v30 }
 0x449   :  { %v1258_v36 = vmul.f32 %v3103_v60, %v1257_v21  ;;  %v1352_v24 = vmul.f32 %v1253_v26, %v4241_v1  ;;  %v1238_v55 = vsel %vm1235_vm2, %v1237_v51, %v1233_v53  ;;  %v1322_v21 = vsub.f32 1.0, %v1321_v23 }
 0x44a   :  { %v4647_v20 = vpop.eup %3110  ;;  %v1223_v53 = vsel %vm4624_vm4, %v4581_v48, %v1218_v32  ;;  %v1351_v26 = vmul.f32 %v1238_v55, %v4237_v50  ;;  %v1307_v43 = vsub.f32 1.0, %v1306_v44  ;;  %vm1326_vm10 = vweird.f32 %v4610_v25 }
 0x44b   :  { %v1336_v45 = vmul.f32 %v4647_v20, %v4587_v30  ;;  %v1259_v52 = vadd.f32 %v3103_v60, %v1258_v36  ;;  %v3113_v16 = vpop.eup %3112  ;;  %v4670_v7 = vadd.f32 %v1356_v41, %v1352_v24  ;;  %v1323_v51 = vmul.f32 %v4610_v25, %v1322_v21 }
 0x44c   :  { %v1354_v58 = vmul.f32 %v3113_v16, %v4565_v33  ;;  %v1350_v11 = vmul.f32 %v1223_v53, %v4258_v46  ;;  %v4680_v50 = vadd.f32 %v4558_v38, %v1351_v26  ;;  %vm1341_vm6 = vweird.f32 %v4647_v20 }
 0x44d   :  { %v1337_v28 = vsub.f32 1.0, %v1336_v45  ;;  %v1263_v29 = vsel %vm1262_vm8, %v3103_v60, %v1259_v52  ;;  %v1292_v60 = vsub.f32 1.0, %v1291_v47  ;;  %3114 = vtanh.f32 %v4670_v7  ;;  %vm4695_vm11 = vmor %vm1340_vm9, %vm1341_vm6 }
 0x44e   :  { %v1268_v1 = vsel %vm1265_vm7, %v1267_v8, %v1263_v29  ;;  %v1308_v33 = vmul.f32 %v4628_v57, %v1307_v43  ;;  %v4686_v35 = vadd.f32 %v1354_v58, %v1350_v11  ;;  %v1344_v38 = vand.u32 2147483647, %v4587_v30 }
 0x44f   :  { %v1338_v31 = vmul.f32 %v4647_v20, %v1337_v28  ;;  %v1353_v9 = vmul.f32 %v1268_v1, %v4248_v14  ;;  %v1346_v14 = vand.u32 2147483648, %v4587_v30  ;;  %v1293_v46 = vmul.f32 %v4616_v5, %v1292_v60 }
 0x450   :  { %v1324_v22 = vadd.f32 %v4610_v25, %v1323_v51  ;;  %v1331_v10 = vand.u32 2147483648, %v4546_v34  ;;  %vm1310_vm12 = vweird.f32 %v4560_v40  ;;  %vm1311_vm13 = vweird.f32 %v4628_v57 }
 0x451   :  { %v4677_v48 = vadd.f32 %v1357_v27, %v1353_v9  ;;  %v1339_v23 = vadd.f32 %v4647_v20, %v1338_v31  ;;  %vm1325_vm14 = vweird.f32 %v4546_v34  ;;  %v1329_v32 = vand.u32 2147483647, %v4546_v34  ;;  %vm4725_vm2 = vmor %vm1310_vm12, %vm1311_vm13 }
 0x452   :  { %v1309_v44 = vadd.f32 %v4628_v57, %v1308_v33  ;;  %v1347_v45 = vor.u32 1.1754944e-38, %v1346_v14  ;;  %vm4709_vm15 = vmor %vm1325_vm14, %vm1326_vm10  ;;  %v1314_v55 = vand.u32 2147483647, %v4560_v40  ;;  %v1316_v41 = vand.u32 2147483648, %v4560_v40 }
 0x453   :  { %3116 = vtanh.f32 %v4677_v48  ;;  %v1343_v30 = vsel %vm4695_vm11, %v4647_v20, %v1339_v23  ;;  %v3115_v47 = vpop.eup %3114  ;;  %vm1345_vm4 = vcmp.eq.f32.partialorder %v1344_v38, 8.507059e+37  ;;  %v1328_v20 = vsel %vm4709_vm15, %v4610_v25, %v1324_v22 }
 0x454   :  { %3118 = vtanh.f32 %v4680_v50  ;;  %v1294_v34 = vadd.f32 %v4616_v5, %v1293_v46  ;;  %vm1296_vm0 = vweird.f32 %v4616_v5  ;;  %v1348_v16 = vsel %vm1345_vm4, %v1347_v45, %v1343_v30 }
 0x455   :  { %3120 = vtanh.f32 %v4686_v35  ;;  %v1332_v63 = vor.u32 1.1754944e-38, %v1331_v10  ;;  %vm1295_vm3 = vweird.f32 %v4554_v61  ;;  %v1301_v28 = vand.u32 2147483648, %v4554_v61 }
 0x456   :  { %vm1330_vm5 = vcmp.eq.f32.partialorder %v1329_v32, 8.507059e+37  ;;  %v1313_v21 = vsel %vm4725_vm2, %v4628_v57, %v1309_v44  ;;  %v1299_v29 = vand.u32 2147483647, %v4554_v61  ;;  %v1317_v1 = vor.u32 1.1754944e-38, %v1316_v41  ;;  %vm1297_vm8 = vmor %vm1295_vm3, %vm1296_vm0 }
 0x457   :  { %v1333_v26 = vsel %vm1330_vm5, %v1332_v63, %v1328_v20  ;;  %vm1315_vm7 = vcmp.eq.f32.partialorder %v1314_v55, 8.507059e+37  ;;  %v1298_v31 = vsel %vm1297_vm8, %v4616_v5, %v1294_v34  ;;  %v1302_v58 = vor.u32 1.1754944e-38, %v1301_v28  ;;  %v6017_v28 = vld [vmem:[#allocation16_spill] sm:$0xff] }
 0x458   :  { %v1368_v40 = vmul.f32 %v3115_v47, %v1333_v26  ;;  %v1318_v27 = vsel %vm1315_vm7, %v1317_v1, %v1313_v21  ;;  %vm1300_vm6 = vcmp.eq.f32.partialorder %v1299_v29, 8.507059e+37 }
 0x459   :  { %v3117_v52 = vpop.eup %3116  ;;  %v1303_v60 = vsel %vm1300_vm6, %v1302_v58, %v1298_v31 }
 0x45a   :  { %v1369_v25 = vmul.f32 %v3117_v52, %v1348_v16  ;;  %v3119_v53 = vpop.eup %3118 }
 0x45b   :  { %v3121_v43 = vpop.eup %3120  ;;  %v1367_v9 = vmul.f32 %v3119_v53, %v1318_v27 }
 0x45c   :  { %1382 = vmatpush.msra.mxu0 %v1369_v25  ;;  %v1366_v57 = vmul.f32 %v3121_v43, %v1303_v60 }
 0x45e   :  { %1383 = vmatpush.msra.mxu0 %v1368_v40 }
 0x460   :  { %1384 = vmatpush.msra.mxu0 %v1367_v9 }
 0x462   :  { %1385 = vmatpush.msra.mxu0 %v1366_v57 }
 0x463   :  { %2858 = vmatmul.msk.f32.vlgmr.msra.gmra.mxu0 %vm320_vm1, %v4303_v6 }
 0x46b   :  { %2859 = vmatmul.msk.f32.gmra.mxu0 %vm320_vm1, %v4308_v19 }
 0x473   :  { %2860 = vmatmul.msk.f32.gmra.mxu0 %vm320_vm1, %v4324_v3 }
 0x47b   :  { %2861 = vmatmul.msk.f32.gmra.mxu0 %vm320_vm1, %v4338_v42 }
 0x483   :  { %2862 = vmatmul.msk.f32.gmra.mxu0 %vm320_vm1, %v4352_v4 }
 0x48b   :  { %2863 = vmatmul.msk.f32.gmra.mxu0 %vm320_vm1, %v4366_v15 }
 0x493   :  { %2864 = vmatmul.msk.f32.gmra.mxu0 %vm320_vm1, %v4380_v12 }
 0x49b   :  { %2865 = vmatmul.msk.f32.gmra.mxu0 %vm320_vm1, %v4394_v2 }
 0x4a3   :  { %2866 = vmatmul.msk.f32.gmra.mxu0 %vm320_vm1, %v4408_v18 }
 0x4ab   :  { %2867 = vmatmul.msk.f32.gmra.mxu0 %vm320_vm1, %v4313_v0 }
 0x4b3   :  { %2868 = vmatmul.msk.f32.gmra.mxu0 %vm320_vm1, %v4329_v54 }
 0x4bb   :  { %2869 = vmatmul.msk.f32.gmra.mxu0 %vm320_vm1, %v4343_v56 }
 0x4c3   :  { %2870 = vmatmul.msk.f32.gmra.mxu0 %vm320_vm1, %v4357_v13 }
 0x4cb   :  { %2871 = vmatmul.msk.f32.gmra.mxu0 %vm320_vm1, %v4371_v62 }
 0x4d3   :  { %2872 = vmatmul.msk.f32.gmra.mxu0 %vm320_vm1, %v4385_v17 }
 0x4db   :  { %2873 = vmatmul.msk.f32.gmra.mxu0 %vm320_vm1, %v4399_v49  ;;  %v6016_v49 = vld [vmem:[#allocation5_spill] sm:$0xff] }
 0x4e0   :  { %v1387_v6 = vpop.f32.mrf.mxu0 }
 0x4e1   :  { %v1438_v3 = vadd.f32 %v1387_v6, %v3938_v37 }
 0x4e3   :  { %v2875_v42 = vmul.f32 -1.442695, %v1438_v3 }
 0x4e5   :  { %3122 = vpow2.f32 %v2875_v42  ;;  %v6018_v42 = vld [vmem:[#allocation12_spill] sm:$0xff] }
 0x4e8   :  { %v1390_v19 = vpop.f32.mrf.mxu0 }
 0x4e9   :  { %v1439_v56 = vadd.f32 %v1390_v19, %v3940_v39 }
 0x4eb   :  { %v2876_v15 = vmul.f32 -1.442695, %v1439_v56  ;;  %v3123_v12 = vpop.eup %3122 }
 0x4ec   :  { %v1466_v17 = vadd.f32 1.0, %v3123_v12 }
 0x4ee   :  { %v1481_v53 = vand.u32 2147483648, %v1466_v17  ;;  %vm1475_vm13 = vweird.f32 %v1466_v17  ;;  %v1479_v1 = vand.u32 2147483647, %v1466_v17 }
 0x4f0   :  { %v4768_v0 = vpop.f32.mrf.mxu0  ;;  %v1482_v58 = vor.u32 1.1754944e-38, %v1481_v53  ;;  %vm1480_vm0 = vcmp.eq.f32.partialorder %v1479_v1, 8.507059e+37  ;;  %v6024_v1 = vld [vmem:[#allocation10_spill] sm:$0xff] }
 0x4f8   :  { %v4771_v54 = vpop.f32.mrf.mxu0 }
 0x500   :  { %v1399_v4 = vpop.f32.mrf.mxu0 }
 0x501   :  { %v1442_v13 = vadd.f32 %v1399_v4, %v3966_v59 }
 0x503   :  { %v2879_v62 = vmul.f32 -1.442695, %v1442_v13 }
 0x505   :  { %3124 = vpow2.f32 %v2879_v62 }
 0x506   :  { %3126 = vpow2.f32 %v2876_v15 }
 0x507   :  { %3128 = vrcp.f32 %v1466_v17 }
 0x508   :  { %v1402_v2 = vpop.f32.mrf.mxu0 }
 0x509   :  { %v1443_v18 = vadd.f32 %v1402_v2, %v6016_v49 }
 0x50b   :  { %v3125_v61 = vpop.eup %3124  ;;  %v2880_v5 = vmul.f32 -1.442695, %v1443_v18 }
 0x50c   :  { %v1542_v51 = vadd.f32 1.0, %v3125_v61  ;;  %v3127_v11 = vpop.eup %3126 }
 0x50d   :  { %3130 = vpow2.f32 %v2880_v5  ;;  %v4776_v23 = vadd.f32 1.0, %v3127_v11  ;;  %v3129_v14 = vpop.eup %3128 }
 0x50e   :  { %3132 = vrcp.f32 %v1542_v51  ;;  %v1471_v10 = vmul.f32 %v3129_v14, %v1466_v17  ;;  %v1557_v8 = vand.u32 2147483648, %v1542_v51  ;;  %vm1551_vm10 = vweird.f32 %v1542_v51 }
 0x50f   :  { %3134 = vrcp.f32 %v4776_v23  ;;  %vm1476_vm11 = vweird.f32 %v3129_v14  ;;  %v1555_v29 = vand.u32 2147483647, %v1542_v51  ;;  %v1496_v12 = vand.u32 2147483648, %v4776_v23 }
 0x510   :  { %v4778_v33 = vpop.f32.mrf.mxu0  ;;  %v1472_v45 = vsub.f32 1.0, %v1471_v10  ;;  %v1558_v31 = vor.u32 1.1754944e-38, %v1557_v8  ;;  %vm1477_vm14 = vmor %vm1475_vm13, %vm1476_vm11  ;;  %vm1490_vm8 = vweird.f32 %v4776_v23  ;;  %v1494_v2 = vand.u32 2147483647, %v4776_v23 }
 0x511   :  { %vm1556_vm15 = vcmp.eq.f32.partialorder %v1555_v29, 8.507059e+37  ;;  %v1497_v5 = vor.u32 1.1754944e-38, %v1496_v12  ;;  %v6023_v29 = vld [vmem:[#allocation9_spill] sm:$0xff] }
 0x512   :  { %v1473_v20 = vmul.f32 %v3129_v14, %v1472_v45  ;;  %v6021_v45 = vld [vmem:[#allocation6_spill] sm:$0xff] }
 0x513   :  { %v3131_v46 = vpop.eup %3130 }
 0x514   :  { %v3133_v38 = vpop.eup %3132  ;;  %v4781_v22 = vadd.f32 1.0, %v3131_v46  ;;  %v1474_v21 = vadd.f32 %v3129_v14, %v1473_v20  ;;  %v6019_v46 = vld [vmem:[#allocation3_spill] sm:$0xff] }
 0x515   :  { %v1547_v36 = vmul.f32 %v3133_v38, %v1542_v51  ;;  %v4786_v44 = vpop.eup %3134  ;;  %vm1552_vm9 = vweird.f32 %v3133_v38 }
 0x516   :  { %3136 = vrcp.f32 %v4781_v22  ;;  %v1486_v41 = vmul.f32 %v4786_v44, %v4776_v23  ;;  %vm1553_vm12 = vmor %vm1551_vm10, %vm1552_vm9  ;;  %v1478_v27 = vsel %vm1477_vm14, %v3129_v14, %v1474_v21  ;;  %vm1491_vm2 = vweird.f32 %v4786_v44 }
 0x517   :  { %v1548_v30 = vsub.f32 1.0, %v1547_v36  ;;  %v1572_v19 = vand.u32 2147483648, %v4781_v22  ;;  %v1483_v3 = vsel %vm1480_vm0, %v1482_v58, %v1478_v27  ;;  %vm1566_vm3 = vweird.f32 %v4781_v22  ;;  %vm1492_vm7 = vmor %vm1490_vm8, %vm1491_vm2  ;;  %v6020_v36 = vld [vmem:[#allocation4_spill] sm:$0xff] }
 0x518   :  { %v4784_v32 = vpop.f32.mrf.mxu0  ;;  %v1487_v63 = vsub.f32 1.0, %v1486_v41  ;;  %v1570_v62 = vand.u32 2147483647, %v4781_v22  ;;  %vm1495_vm9 = vcmp.eq.f32.partialorder %v1494_v2, 8.507059e+37  ;;  %v1441_v23 = vadd.f32 %v4771_v54, %v6020_v36 }
 0x519   :  { %v1549_v55 = vmul.f32 %v3133_v38, %v1548_v30  ;;  %v1573_v61 = vor.u32 1.1754944e-38, %v1572_v19 }
 0x51a   :  { %v1488_v43 = vmul.f32 %v4786_v44, %v1487_v63  ;;  %vm1571_vm6 = vcmp.eq.f32.partialorder %v1570_v62, 8.507059e+37  ;;  %v2878_v20 = vmul.f32 -1.442695, %v1441_v23 }
 0x51b   :  { %v1550_v16 = vadd.f32 %v3133_v38, %v1549_v55 }
 0x51c   :  { %v3137_v24 = vpop.eup %3136  ;;  %v1489_v4 = vadd.f32 %v4786_v44, %v1488_v43 }
 0x51d   :  { %v1562_v47 = vmul.f32 %v3137_v24, %v4781_v22  ;;  %v1554_v40 = vsel %vm1553_vm12, %v3133_v38, %v1550_v16  ;;  %vm1567_vm4 = vweird.f32 %v3137_v24  ;;  %v1440_v38 = vadd.f32 %v4768_v0, %v6019_v46 }
 0x51e   :  { %v1559_v9 = vsel %vm1556_vm15, %v1558_v31, %v1554_v40  ;;  %vm1568_vm5 = vmor %vm1566_vm3, %vm1567_vm4 }
 0x51f   :  { %v1563_v34 = vsub.f32 1.0, %v1562_v47  ;;  %v1686_v13 = vmul.f32 %v1559_v9, %v4686_v35  ;;  %v1493_v35 = vsel %vm1492_vm7, %v4786_v44, %v1489_v4  ;;  %v6022_v44 = vld [vmem:[#allocation7_spill] sm:$0xff]  ;;  %v2877_v47 = vmul.f32 -1.442695, %v1440_v38 }
 0x520   :  { %v1411_v52 = vpop.f32.mrf.mxu0  ;;  %v1498_v22 = vsel %vm1495_vm9, %v1497_v5, %v1493_v35  ;;  %v1445_v55 = vadd.f32 %v4784_v32, %v6022_v44  ;;  %v6026_v35 = vld [vmem:[#allocation13_spill] sm:$0xff] }
 0x521   :  { %v1446_v25 = vadd.f32 %v1411_v52, %v6017_v28  ;;  %v1564_v26 = vmul.f32 %v3137_v24, %v1563_v34 }
 0x522   :  { %v2882_v52 = vmul.f32 -1.442695, %v1445_v55 }
 0x523   :  { %3138 = vtanh.f32 %v1446_v25  ;;  %v1565_v57 = vadd.f32 %v3137_v24, %v1564_v26 }
 0x525   :  { %v1569_v18 = vsel %vm1568_vm5, %v3137_v24, %v1565_v57  ;;  %v1444_v24 = vadd.f32 %v4778_v33, %v6021_v45 }
 0x526   :  { %v1574_v51 = vsel %vm1571_vm6, %v1573_v61, %v1569_v18 }
 0x527   :  { %v1687_v10 = vmul.f32 %v1574_v51, %v4680_v50  ;;  %v2881_v34 = vmul.f32 -1.442695, %v1444_v24 }
 0x528   :  { %v1414_v60 = vpop.f32.mrf.mxu0 }
 0x529   :  { %v3139_v6 = vpop.eup %3138  ;;  %v1447_v56 = vadd.f32 %v1414_v60, %v6018_v42 }
 0x52a   :  { %v1690_v15 = vmul.f32 %v3139_v6, %v1483_v3 }
 0x52b   :  { %3140 = vtanh.f32 %v1447_v56  ;;  %v6025_v56 = vld [vmem:[#allocation11_spill] sm:$0xff] }
 0x52c   :  { %v4801_v17 = vadd.f32 %v1690_v15, %v1686_v13  ;;  %3142 = vpow2.f32 %v2877_v47  ;;  %v6028_v47 = vld [vmem:[#allocation15_spill] sm:$0xff] }
 0x52d   :  { %3144 = vpow2.f32 %v2878_v20 }
 0x52e   :  { %3146 = vpow2.f32 %v2881_v34 }
 0x52f   :  { %3148 = vpow2.f32 %v2882_v52 }
 0x530   :  { %v1417_v11 = vpop.f32.mrf.mxu0 }
 0x531   :  { %v3141_v14 = vpop.eup %3140  ;;  %v1448_v5 = vadd.f32 %v1417_v11, %v6026_v35 }
 0x532   :  { %v1691_v30 = vmul.f32 %v3141_v14, %v1498_v22  ;;  %v3143_v54 = vpop.eup %3142  ;;  %v6027_v14 = vld [vmem:[#allocation14_spill] sm:$0xff] }
 0x533   :  { %v3145_v50 = vpop.eup %3144  ;;  %v4819_v33 = vadd.f32 1.0, %v3143_v54 }
 0x534   :  { %v4817_v41 = vadd.f32 %v1691_v30, %v1687_v10  ;;  %v3147_v63 = vpop.eup %3146  ;;  %v4821_v25 = vadd.f32 1.0, %v3145_v50 }
 0x535   :  { %v3149_v8 = vpop.eup %3148  ;;  %v4823_v32 = vadd.f32 1.0, %v3147_v63  ;;  %3150 = vrcp.f32 %v4819_v33  ;;  %vm1505_vm10 = vweird.f32 %v4819_v33  ;;  %v1509_v10 = vand.u32 2147483647, %v4819_v33 }
 0x536   :  { %v4825_v21 = vadd.f32 1.0, %v3149_v8  ;;  %3152 = vrcp.f32 %v4821_v25  ;;  %v1511_v52 = vand.u32 2147483648, %v4819_v33  ;;  %vm1520_vm12 = vweird.f32 %v4821_v25 }
 0x537   :  { %3154 = vrcp.f32 %v4823_v32  ;;  %v1526_v54 = vand.u32 2147483648, %v4821_v25  ;;  %vm1581_vm0 = vweird.f32 %v4823_v32  ;;  %vm1510_vm7 = vcmp.eq.f32.partialorder %v1509_v10, 8.507059e+37 }
 0x538   :  { %v1420_v0 = vpop.f32.mrf.mxu0  ;;  %3156 = vrcp.f32 %v4825_v21  ;;  %vm1596_vm5 = vweird.f32 %v4825_v21 }
 0x539   :  { %v1449_v38 = vadd.f32 %v1420_v0, %v6027_v14 }
 0x53b   :  { %v4833_v27 = vpop.eup %3150 }
 0x53c   :  { %v4835_v58 = vpop.eup %3152  ;;  %v1501_v57 = vmul.f32 %v4833_v27, %v4819_v33  ;;  %vm1506_vm11 = vweird.f32 %v4833_v27 }
 0x53d   :  { %v4837_v9 = vpop.eup %3154  ;;  %v1516_v19 = vmul.f32 %v4835_v58, %v4821_v25  ;;  %vm1521_vm13 = vweird.f32 %v4835_v58  ;;  %vm4882_vm4 = vmor %vm1505_vm10, %vm1506_vm11 }
 0x53e   :  { %v4839_v60 = vpop.eup %3156  ;;  %v1577_v3 = vmul.f32 %v4837_v9, %v4823_v32  ;;  %v1502_v12 = vsub.f32 1.0, %v1501_v57  ;;  %vm1582_vm14 = vweird.f32 %v4837_v9  ;;  %v1602_v57 = vand.u32 2147483648, %v4825_v21  ;;  %vm4895_vm2 = vmor %vm1520_vm12, %vm1521_vm13 }
 0x53f   :  { %v1592_v13 = vmul.f32 %v4839_v60, %v4825_v21  ;;  %v1517_v18 = vsub.f32 1.0, %v1516_v19  ;;  %vm1597_vm15 = vweird.f32 %v4839_v60  ;;  %v1524_v19 = vand.u32 2147483647, %v4821_v25  ;;  %vm4902_vm3 = vmor %vm1581_vm0, %vm1582_vm14 }
 0x540   :  { %v1423_v16 = vpop.f32.mrf.mxu0  ;;  %v1578_v61 = vsub.f32 1.0, %v1577_v3  ;;  %v1503_v23 = vmul.f32 %v4833_v27, %v1502_v12  ;;  %vm4915_vm8 = vmor %vm1596_vm5, %vm1597_vm15 }
 0x541   :  { %v1450_v53 = vadd.f32 %v1423_v16, %v6023_v29  ;;  %v1593_v51 = vsub.f32 1.0, %v1592_v13  ;;  %v1518_v11 = vmul.f32 %v4835_v58, %v1517_v18  ;;  %v1600_v13 = vand.u32 2147483647, %v4825_v21 }
 0x542   :  { %v1579_v55 = vmul.f32 %v4837_v9, %v1578_v61  ;;  %v1504_v16 = vadd.f32 %v4833_v27, %v1503_v23  ;;  %v1527_v18 = vor.u32 1.1754944e-38, %v1526_v54  ;;  %vm1525_vm9 = vcmp.eq.f32.partialorder %v1524_v19, 8.507059e+37 }
 0x543   :  { %v2883_v31 = vmul.f32 -1.442695, %v1450_v53  ;;  %v1594_v34 = vmul.f32 %v4839_v60, %v1593_v51  ;;  %v1519_v53 = vadd.f32 %v4835_v58, %v1518_v11  ;;  %v1603_v51 = vor.u32 1.1754944e-38, %v1602_v57 }
 0x544   :  { %v1580_v8 = vadd.f32 %v4837_v9, %v1579_v55  ;;  %vm1601_vm10 = vcmp.eq.f32.partialorder %v1600_v13, 8.507059e+37 }
 0x545   :  { %3158 = vpow2.f32 %v2883_v31  ;;  %v1595_v31 = vadd.f32 %v4839_v60, %v1594_v34 }
 0x546   :  { %v1584_v12 = vsel %vm4902_vm3, %v4837_v9, %v1580_v8 }
 0x547   :  { %v1599_v61 = vsel %vm4915_vm8, %v4839_v60, %v1595_v31 }
 0x548   :  { %v1426_v26 = vpop.f32.mrf.mxu0  ;;  %v1604_v11 = vsel %vm1601_vm10, %v1603_v51, %v1599_v61 }
 0x549   :  { %v1451_v40 = vadd.f32 %v1426_v26, %v6024_v1  ;;  %v1587_v26 = vand.u32 2147483648, %v4823_v32  ;;  %v1689_v54 = vmul.f32 %v1604_v11, %v4677_v48 }
 0x54b   :  { %v2884_v43 = vmul.f32 -1.442695, %v1451_v40  ;;  %v3159_v62 = vpop.eup %3158  ;;  %v1588_v21 = vor.u32 1.1754944e-38, %v1587_v26 }
 0x54c   :  { %v4852_v22 = vadd.f32 1.0, %v3159_v62  ;;  %v1512_v62 = vor.u32 1.1754944e-38, %v1511_v52 }
 0x54d   :  { %3160 = vpow2.f32 %v2884_v43 }
 0x54e   :  { %vm1631_vm11 = vweird.f32 %v4852_v22 }
 0x550   :  { %v1429_v6 = vpop.f32.mrf.mxu0 }
 0x551   :  { %v1452_v4 = vadd.f32 %v1429_v6, %v6025_v56  ;;  %v1585_v6 = vand.u32 2147483647, %v4823_v32  ;;  %v1508_v32 = vsel %vm4882_vm4, %v4833_v27, %v1504_v16 }
 0x553   :  { %v2885_v15 = vmul.f32 -1.442695, %v1452_v4  ;;  %v3161_v2 = vpop.eup %3160  ;;  %vm1586_vm6 = vcmp.eq.f32.partialorder %v1585_v6, 8.507059e+37 }
 0x554   :  { %v4857_v30 = vadd.f32 1.0, %v3161_v2  ;;  %v1523_v2 = vsel %vm4895_vm2, %v4835_v58, %v1519_v53  ;;  %v1589_v9 = vsel %vm1586_vm6, %v1588_v21, %v1584_v12 }
 0x555   :  { %3162 = vpow2.f32 %v2885_v15  ;;  %v1688_v52 = vmul.f32 %v1589_v9, %v4670_v7  ;;  %v1637_v9 = vand.u32 2147483648, %v4852_v22 }
 0x556   :  { %3164 = vtanh.f32 %v1448_v5  ;;  %vm1646_vm0 = vweird.f32 %v4857_v30  ;;  %v1652_v12 = vand.u32 2147483648, %v4857_v30 }
 0x557   :  { %3166 = vtanh.f32 %v1449_v38  ;;  %v1513_v38 = vsel %vm1510_vm7, %v1512_v62, %v1508_v32  ;;  %v1650_v62 = vand.u32 2147483647, %v4857_v30 }
 0x558   :  { %v1432_v24 = vpop.f32.mrf.mxu0  ;;  %3168 = vrcp.f32 %v4852_v22  ;;  %v1653_v11 = vor.u32 1.1754944e-38, %v1652_v12 }
 0x559   :  { %v1453_v20 = vadd.f32 %v1432_v24, %v6028_v47  ;;  %3170 = vrcp.f32 %v4857_v30  ;;  %v1528_v24 = vsel %vm1525_vm9, %v1527_v18, %v1523_v2  ;;  %vm1651_vm10 = vcmp.eq.f32.partialorder %v1650_v62, 8.507059e+37 }
 0x55b   :  { %v3163_v0 = vpop.eup %3162  ;;  %v2886_v50 = vmul.f32 -1.442695, %v1453_v20 }
 0x55c   :  { %v4871_v63 = vadd.f32 1.0, %v3163_v0  ;;  %v3165_v43 = vpop.eup %3164 }
 0x55d   :  { %3172 = vpow2.f32 %v2886_v50  ;;  %v3167_v3 = vpop.eup %3166  ;;  %v1692_v55 = vmul.f32 %v3165_v43, %v1513_v38  ;;  %v1635_v38 = vand.u32 2147483647, %v4852_v22 }
 0x55e   :  { %3174 = vrcp.f32 %v4871_v63  ;;  %v4911_v15 = vpop.eup %3168  ;;  %v1693_v60 = vmul.f32 %v3167_v3, %v1528_v24  ;;  %vm1661_vm14 = vweird.f32 %v4871_v63  ;;  %v1665_v33 = vand.u32 2147483647, %v4871_v63 }
 0x55f   :  { %v4925_v27 = vpop.eup %3170  ;;  %v1627_v34 = vmul.f32 %v4911_v15, %v4852_v22  ;;  %v4940_v50 = vadd.f32 %v1692_v55, %v1688_v52  ;;  %v1667_v19 = vand.u32 2147483648, %v4871_v63  ;;  %vm1632_vm2 = vweird.f32 %v4911_v15  ;;  %v4991_v22 = vld [vmem:[%s5909_s8] sm:$0xff] }
 0x560   :  { %v1642_v10 = vmul.f32 %v4925_v27, %v4857_v30  ;;  %v4942_v8 = vadd.f32 %v1693_v60, %v1689_v54  ;;  %vm1647_vm13 = vweird.f32 %v4925_v27  ;;  %vm1666_vm6 = vcmp.eq.f32.partialorder %v1665_v33, 8.507059e+37  ;;  %vm1633_vm9 = vmor %vm1631_vm11, %vm1632_vm2  ;;  %v5068_v33 = vld [vmem:[%s5909_s8 + $0x58] sm:$0xff] }
 0x561   :  { %v1628_v53 = vsub.f32 1.0, %v1627_v34  ;;  %vm4971_vm5 = vmor %vm1646_vm0, %vm1647_vm13  ;;  %v1668_v51 = vor.u32 1.1754944e-38, %v1667_v19  ;;  %v1638_v34 = vor.u32 1.1754944e-38, %v1637_v9  ;;  %v5075_v19 = vld [vmem:[%s5909_s8 + $0x60] sm:$0xff] }
 0x562   :  { %v1643_v16 = vsub.f32 1.0, %v1642_v10 }
 0x563   :  { %v3173_v5 = vpop.eup %3172  ;;  %v1629_v7 = vmul.f32 %v4911_v15, %v1628_v53  ;;  %v5005_v53 = vld [vmem:[%s5909_s8 + $0x10] sm:$0xff] }
 0x564   :  { %v4930_v23 = vpop.eup %3174  ;;  %v1625_v58 = vadd.f32 1.0, %v3173_v5  ;;  %v1644_v43 = vmul.f32 %v4925_v27, %v1643_v16 }
 0x565   :  { %v1657_v20 = vmul.f32 %v4930_v23, %v4871_v63  ;;  %vm1662_vm12 = vweird.f32 %v4930_v23  ;;  %v1630_v61 = vadd.f32 %v4911_v15, %v1629_v7  ;;  %v5040_v7 = vld [vmem:[%s5909_s8 + $0x38] sm:$0xff] }
 0x566   :  { %3176 = vrcp.f32 %v1625_v58  ;;  %v1682_v6 = vand.u32 2147483648, %v1625_v58  ;;  %v1680_v4 = vand.u32 2147483647, %v1625_v58  ;;  %v1645_v32 = vadd.f32 %v4925_v27, %v1644_v43  ;;  %vm4958_vm4 = vmor %vm1661_vm14, %vm1662_vm12  ;;  %v5033_v43 = vld [vmem:[%s5909_s8 + $0x30] sm:$0xff] }
 0x567   :  { %v1658_v0 = vsub.f32 1.0, %v1657_v20  ;;  %3178 = vtanh.f32 %v4817_v41  ;;  %vm1676_vm3 = vweird.f32 %v1625_v58  ;;  %v1634_v20 = vsel %vm1633_vm9, %v4911_v15, %v1630_v61  ;;  %v4998_v15 = vld [vmem:[%s5909_s8 + $0x8] sm:$0xff] }
 0x568   :  { %3180 = vtanh.f32 %v4940_v50  ;;  %v1683_v30 = vor.u32 1.1754944e-38, %v1682_v6  ;;  %vm1681_vm7 = vcmp.eq.f32.partialorder %v1680_v4, 8.507059e+37  ;;  %vm1636_vm12 = vcmp.eq.f32.partialorder %v1635_v38, 8.507059e+37  ;;  %v5061_v6 = vld [vmem:[%s5909_s8 + $0x50] sm:$0xff]  ;;  %v5089_v4 = vld [vmem:[%s5909_s8 + $0x80] sm:$0xff] }
 0x569   :  { %v1659_v26 = vmul.f32 %v4930_v23, %v1658_v0  ;;  %3182 = vtanh.f32 %v4942_v8  ;;  %2874 = vmatmul.msk.f32.gmra.mxu0 %vm320_vm1, %v5089_v4  ;;  %2845 = vmatmul.msk.f32.gmra.mxu3 %vm320_vm1, %v5089_v4 }
 0x56a   :  { %3184 = vtanh.f32 %v4801_v17 }
 0x56b   :  { %v1660_v57 = vadd.f32 %v4930_v23, %v1659_v26  ;;  %v5012_v26 = vld [vmem:[%s5909_s8 + $0x18] sm:$0xff] }
 0x56c   :  { %v3177_v40 = vpop.eup %3176 }
 0x56d   :  { %v1672_v31 = vmul.f32 %v3177_v40, %v1625_v58  ;;  %vm1677_vm15 = vweird.f32 %v3177_v40  ;;  %v3179_v13 = vpop.eup %3178  ;;  %v1664_v21 = vsel %vm4958_vm4, %v4930_v23, %v1660_v57  ;;  %v1649_v23 = vsel %vm4971_vm5, %v4925_v27, %v1645_v32  ;;  %v5054_v57 = vld [vmem:[%s5909_s8 + $0x48] sm:$0xff]  ;;  %v5098_v32 = vld [vmem:[%s5909_s8 + $0x70] sm:$0xff] }
 0x56e   :  { %v3181_v2 = vpop.eup %3180  ;;  %vm1678_vm8 = vmor %vm1676_vm3, %vm1677_vm15  ;;  %v1669_v55 = vsel %vm1666_vm6, %v1668_v51, %v1664_v21  ;;  %v1654_v60 = vsel %vm1651_vm10, %v1653_v11, %v1649_v23  ;;  %v1639_v27 = vsel %vm1636_vm12, %v1638_v34, %v1634_v20 }
 0x56f   :  { %v1673_v48 = vsub.f32 1.0, %v1672_v31  ;;  %v3183_v5 = vpop.eup %3182  ;;  %v1704_v52 = vmul.f32 %v3181_v2, %v1669_v55  ;;  %v1703_v0 = vmul.f32 %v3179_v13, %v1654_v60  ;;  %v5026_v31 = vld [vmem:[%s5909_s8 + $0x28] sm:$0xff]  ;;  %v5105_v13 = vld [vmem:[%s5909_s8 + $0x78] sm:$0xff] }
 0x570   :  { %v3185_v54 = vpop.eup %3184 }
 0x571   :  { %v1674_v3 = vmul.f32 %v3177_v40, %v1673_v48  ;;  %v1702_v16 = vmul.f32 %v3185_v54, %v1639_v27  ;;  %v5047_v48 = vld [vmem:[%s5909_s8 + $0x40] sm:$0xff] }
 0x573   :  { %v1675_v63 = vadd.f32 %v3177_v40, %v1674_v3  ;;  %v5082_v3 = vld [vmem:[%s5909_s8 + $0x68] sm:$0xff] }
 0x575   :  { %v1679_v24 = vsel %vm1678_vm8, %v3177_v40, %v1675_v63  ;;  %v5019_v40 = vld [vmem:[%s5909_s8 + $0x20] sm:$0xff] }
 0x576   :  { %v1684_v58 = vsel %vm1681_vm7, %v1683_v30, %v1679_v24 }
 0x577   :  { %v1705_v10 = vmul.f32 %v3183_v5, %v1684_v58 }
 0x579   :  { %1718 = vmatpush.msra.mxu1 %v1705_v10 }
 0x57b   :  { %1719 = vmatpush.msra.mxu1 %v1704_v52 }
 0x57d   :  { %1720 = vmatpush.msra.mxu1 %v1703_v0 }
 0x57f   :  { %1721 = vmatpush.msra.mxu1 %v1702_v16 }
 0x580   :  { %2887 = vmatmul.msk.f32.vlgmr.msra.gmra.mxu1 %vm320_vm1, %v4991_v22 }
 0x588   :  { %2888 = vmatmul.msk.f32.gmra.mxu1 %vm320_vm1, %v4998_v15 }
 0x590   :  { %2889 = vmatmul.msk.f32.gmra.mxu1 %vm320_vm1, %v5005_v53 }
 0x598   :  { %2890 = vmatmul.msk.f32.gmra.mxu1 %vm320_vm1, %v5012_v26 }
 0x5a0   :  { %2891 = vmatmul.msk.f32.gmra.mxu1 %vm320_vm1, %v5019_v40 }
 0x5a8   :  { %2892 = vmatmul.msk.f32.gmra.mxu1 %vm320_vm1, %v5026_v31 }
 0x5b0   :  { %2893 = vmatmul.msk.f32.gmra.mxu1 %vm320_vm1, %v5033_v43 }
 0x5b8   :  { %2894 = vmatmul.msk.f32.gmra.mxu1 %vm320_vm1, %v5040_v7 }
 0x5c0   :  { %2895 = vmatmul.msk.f32.gmra.mxu1 %vm320_vm1, %v5047_v48 }
 0x5c8   :  { %2896 = vmatmul.msk.f32.gmra.mxu1 %vm320_vm1, %v5054_v57 }
 0x5d0   :  { %2897 = vmatmul.msk.f32.gmra.mxu1 %vm320_vm1, %v5061_v6 }
 0x5d8   :  { %2898 = vmatmul.msk.f32.gmra.mxu1 %vm320_vm1, %v5068_v33 }
 0x5e0   :  { %2899 = vmatmul.msk.f32.gmra.mxu1 %vm320_vm1, %v5075_v19 }
 0x5e8   :  { %2900 = vmatmul.msk.f32.gmra.mxu1 %vm320_vm1, %v5082_v3 }
 0x5f0   :  { %2901 = vmatmul.msk.f32.gmra.mxu1 %vm320_vm1, %v5098_v32 }
 0x5f8   :  { %2902 = vmatmul.msk.f32.gmra.mxu1 %vm320_vm1, %v5105_v13 }
 0x5fd   :  { %v1723_v25 = vpop.f32.mrf.mxu1 }
 0x5fe   :  { %v1774_v2 = vadd.f32 %v1723_v25, %v3938_v37 }
 0x600   :  { %2903 = vmatmul.msk.f32.gmra.mxu1 %vm320_vm1, %v5089_v4  ;;  %v2904_v21 = vmul.f32 -1.442695, %v1774_v2 }
 0x602   :  { %3186 = vpow2.f32 %v2904_v21 }
 0x605   :  { %v1726_v62 = vpop.f32.mrf.mxu1 }
 0x606   :  { %v1775_v18 = vadd.f32 %v1726_v62, %v3940_v39 }
 0x608   :  { %v2905_v30 = vmul.f32 -1.442695, %v1775_v18  ;;  %v3187_v38 = vpop.eup %3186 }
 0x609   :  { %v1802_v9 = vadd.f32 1.0, %v3187_v38 }
 0x60b   :  { %vm1811_vm4 = vweird.f32 %v1802_v9 }
 0x60d   :  { %v5111_v12 = vpop.f32.mrf.mxu1 }
 0x615   :  { %v5114_v63 = vpop.f32.mrf.mxu1 }
 0x61d   :  { %v1735_v61 = vpop.f32.mrf.mxu1 }
 0x61e   :  { %v1778_v5 = vadd.f32 %v1735_v61, %v3966_v59 }
 0x620   :  { %v2908_v51 = vmul.f32 -1.442695, %v1778_v5 }
 0x622   :  { %3188 = vpow2.f32 %v2908_v51 }
 0x623   :  { %3190 = vpow2.f32 %v2905_v30 }
 0x624   :  { %3192 = vrcp.f32 %v1802_v9 }
 0x625   :  { %v1738_v24 = vpop.f32.mrf.mxu1 }
 0x626   :  { %v1779_v23 = vadd.f32 %v1738_v24, %v6016_v49  ;;  %v1815_v49 = vand.u32 2147483647, %v1802_v9 }
 0x628   :  { %v3189_v58 = vpop.eup %3188  ;;  %v2909_v55 = vmul.f32 -1.442695, %v1779_v23  ;;  %vm1816_vm5 = vcmp.eq.f32.partialorder %v1815_v49, 8.507059e+37 }
 0x629   :  { %v1878_v11 = vadd.f32 1.0, %v3189_v58  ;;  %v3191_v10 = vpop.eup %3190 }
 0x62a   :  { %3194 = vpow2.f32 %v2909_v55  ;;  %v5119_v20 = vadd.f32 1.0, %v3191_v10  ;;  %v3193_v34 = vpop.eup %3192 }
 0x62b   :  { %3196 = vrcp.f32 %v1878_v11  ;;  %v1807_v16 = vmul.f32 %v3193_v34, %v1802_v9  ;;  %v1893_v55 = vand.u32 2147483648, %v1878_v11  ;;  %vm1887_vm13 = vweird.f32 %v1878_v11 }
 0x62c   :  { %3198 = vrcp.f32 %v5119_v20  ;;  %vm1812_vm14 = vweird.f32 %v3193_v34  ;;  %v1832_v49 = vand.u32 2147483648, %v5119_v20  ;;  %vm1826_vm9 = vweird.f32 %v5119_v20 }
 0x62d   :  { %v5121_v60 = vpop.f32.mrf.mxu1  ;;  %v1808_v21 = vsub.f32 1.0, %v1807_v16  ;;  %v1817_v16 = vand.u32 2147483648, %v1802_v9  ;;  %vm1813_vm0 = vmor %vm1811_vm4, %vm1812_vm14 }
 0x62f   :  { %v1809_v51 = vmul.f32 %v3193_v34, %v1808_v21  ;;  %v1894_v21 = vor.u32 1.1754944e-38, %v1893_v55  ;;  %v1830_v55 = vand.u32 2147483647, %v5119_v20 }
 0x630   :  { %v3195_v52 = vpop.eup %3194 }
 0x631   :  { %v3197_v27 = vpop.eup %3196  ;;  %v5124_v0 = vadd.f32 1.0, %v3195_v52  ;;  %v1810_v52 = vadd.f32 %v3193_v34, %v1809_v51 }
 0x632   :  { %v1883_v54 = vmul.f32 %v3197_v27, %v1878_v11  ;;  %v5129_v2 = vpop.eup %3198  ;;  %vm1888_vm11 = vweird.f32 %v3197_v27 }
 0x633   :  { %3200 = vrcp.f32 %v5124_v0  ;;  %v1822_v5 = vmul.f32 %v5129_v2, %v5119_v20  ;;  %vm1889_vm15 = vmor %vm1887_vm13, %vm1888_vm11  ;;  %vm1827_vm8 = vweird.f32 %v5129_v2  ;;  %vm1902_vm7 = vweird.f32 %v5124_v0 }
 0x634   :  { %v1884_v25 = vsub.f32 1.0, %v1883_v54  ;;  %v1891_v54 = vand.u32 2147483647, %v1878_v11  ;;  %vm1828_vm10 = vmor %vm1826_vm9, %vm1827_vm8  ;;  %vm1831_vm11 = vcmp.eq.f32.partialorder %v1830_v55, 8.507059e+37  ;;  %v1777_v20 = vadd.f32 %v5114_v63, %v6020_v36 }
 0x635   :  { %v5127_v62 = vpop.f32.mrf.mxu1  ;;  %v1823_v58 = vsub.f32 1.0, %v1822_v5  ;;  %v1818_v5 = vor.u32 1.1754944e-38, %v1817_v16 }
 0x636   :  { %v1885_v61 = vmul.f32 %v3197_v27, %v1884_v25  ;;  %vm1892_vm2 = vcmp.eq.f32.partialorder %v1891_v54, 8.507059e+37 }
 0x638   :  { %v1886_v23 = vadd.f32 %v3197_v27, %v1885_v61  ;;  %v1814_v61 = vsel %vm1813_vm0, %v3193_v34, %v1810_v52 }
 0x639   :  { %v3201_v18 = vpop.eup %3200 }
 0x63a   :  { %v1898_v30 = vmul.f32 %v3201_v18, %v5124_v0  ;;  %v1890_v59 = vsel %vm1889_vm15, %v3197_v27, %v1886_v23  ;;  %vm1903_vm3 = vweird.f32 %v3201_v18 }
 0x63b   :  { %v1895_v39 = vsel %vm1892_vm2, %v1894_v21, %v1890_v59  ;;  %v1906_v59 = vand.u32 2147483647, %v5124_v0  ;;  %vm1904_vm6 = vmor %vm1902_vm7, %vm1903_vm3  ;;  %v1776_v21 = vadd.f32 %v5111_v12, %v6019_v46 }
 0x63c   :  { %v1899_v38 = vsub.f32 1.0, %v1898_v30  ;;  %v1824_v30 = vmul.f32 %v5129_v2, %v1823_v58  ;;  %v2022_v34 = vmul.f32 %v1895_v39, %v4801_v17  ;;  %v1833_v17 = vor.u32 1.1754944e-38, %v1832_v49 }
 0x63d   :  { %v1747_v24 = vpop.f32.mrf.mxu1  ;;  %vm1907_vm12 = vcmp.eq.f32.partialorder %v1906_v59, 8.507059e+37 }
 0x63e   :  { %v1782_v10 = vadd.f32 %v1747_v24, %v6017_v28  ;;  %v1900_v25 = vmul.f32 %v3201_v18, %v1899_v38  ;;  %v1908_v38 = vand.u32 2147483648, %v5124_v0  ;;  %v1825_v27 = vadd.f32 %v5129_v2, %v1824_v30 }
 0x640   :  { %3202 = vtanh.f32 %v1782_v10  ;;  %v1901_v11 = vadd.f32 %v3201_v18, %v1900_v25  ;;  %v1819_v10 = vsel %vm1816_vm5, %v1818_v5, %v1814_v61  ;;  %v1909_v54 = vor.u32 1.1754944e-38, %v1908_v38 }
 0x641   :  { %v1829_v39 = vsel %vm1828_vm10, %v5129_v2, %v1825_v27  ;;  %v1780_v5 = vadd.f32 %v5121_v60, %v6021_v45  ;;  %v1781_v2 = vadd.f32 %v5127_v62, %v6022_v44 }
 0x642   :  { %v1905_v52 = vsel %vm1904_vm6, %v3201_v18, %v1901_v11  ;;  %v1834_v30 = vsel %vm1831_vm11, %v1833_v17, %v1829_v39  ;;  %v2906_v11 = vmul.f32 -1.442695, %v1776_v21 }
 0x643   :  { %v1910_v0 = vsel %vm1907_vm12, %v1909_v54, %v1905_v52  ;;  %v2910_v38 = vmul.f32 -1.442695, %v1780_v5 }
 0x644   :  { %v2023_v18 = vmul.f32 %v1910_v0, %v4817_v41 }
 0x645   :  { %v1750_v51 = vpop.f32.mrf.mxu1 }
 0x646   :  { %v3203_v24 = vpop.eup %3202  ;;  %v1783_v9 = vadd.f32 %v1750_v51, %v6018_v42 }
 0x647   :  { %v2026_v23 = vmul.f32 %v3203_v24, %v1819_v10  ;;  %v2907_v24 = vmul.f32 -1.442695, %v1777_v20  ;;  %v2911_v10 = vmul.f32 -1.442695, %v1781_v2 }
 0x648   :  { %3204 = vtanh.f32 %v1783_v9 }
 0x649   :  { %v5144_v58 = vadd.f32 %v2026_v23, %v2022_v34  ;;  %3206 = vpow2.f32 %v2906_v11 }
 0x64a   :  { %3208 = vpow2.f32 %v2907_v24 }
 0x64b   :  { %3210 = vpow2.f32 %v2910_v38 }
 0x64c   :  { %3212 = vpow2.f32 %v2911_v10 }
 0x64d   :  { %v1753_v16 = vpop.f32.mrf.mxu1 }
 0x64e   :  { %v3205_v25 = vpop.eup %3204 }
 0x64f   :  { %v2027_v61 = vmul.f32 %v3205_v25, %v1834_v30  ;;  %v3207_v63 = vpop.eup %3206 }
 0x650   :  { %v3209_v41 = vpop.eup %3208  ;;  %v5162_v60 = vadd.f32 1.0, %v3207_v63 }
 0x651   :  { %v5160_v51 = vadd.f32 %v2027_v61, %v2023_v18  ;;  %v3211_v27 = vpop.eup %3210  ;;  %v5164_v23 = vadd.f32 1.0, %v3209_v41 }
 0x652   :  { %v3213_v34 = vpop.eup %3212  ;;  %v5166_v62 = vadd.f32 1.0, %v3211_v27  ;;  %3214 = vrcp.f32 %v5162_v60  ;;  %vm1841_vm13 = vweird.f32 %v5162_v60 }
 0x653   :  { %v5168_v59 = vadd.f32 1.0, %v3213_v34  ;;  %3216 = vrcp.f32 %v5164_v23  ;;  %vm1856_vm15 = vweird.f32 %v5164_v23 }
 0x654   :  { %3218 = vrcp.f32 %v5166_v62  ;;  %vm1917_vm5 = vweird.f32 %v5166_v62 }
 0x655   :  { %v1756_v12 = vpop.f32.mrf.mxu1  ;;  %3220 = vrcp.f32 %v5168_v59  ;;  %vm1932_vm6 = vweird.f32 %v5168_v59 }
 0x656   :  { %v1785_v34 = vadd.f32 %v1756_v12, %v6027_v14 }
 0x658   :  { %v5176_v17 = vpop.eup %3214 }
 0x659   :  { %v5178_v0 = vpop.eup %3216  ;;  %v1837_v30 = vmul.f32 %v5176_v17, %v5162_v60  ;;  %vm1842_vm14 = vweird.f32 %v5176_v17 }
 0x65a   :  { %v5180_v25 = vpop.eup %3218  ;;  %v1852_v18 = vmul.f32 %v5178_v0, %v5164_v23  ;;  %vm1857_vm4 = vweird.f32 %v5178_v0  ;;  %vm5225_vm3 = vmor %vm1841_vm13, %vm1842_vm14 }
 0x65b   :  { %v5182_v21 = vpop.eup %3220  ;;  %v1913_v61 = vmul.f32 %v5180_v25, %v5166_v62  ;;  %v1838_v38 = vsub.f32 1.0, %v1837_v30  ;;  %vm1918_vm0 = vweird.f32 %v5180_v25  ;;  %vm5238_vm8 = vmor %vm1856_vm15, %vm1857_vm4 }
 0x65c   :  { %v1928_v2 = vmul.f32 %v5182_v21, %v5168_v59  ;;  %v1853_v63 = vsub.f32 1.0, %v1852_v18  ;;  %v1847_v18 = vand.u32 2147483648, %v5162_v60  ;;  %vm1933_vm2 = vweird.f32 %v5182_v21  ;;  %vm5245_vm7 = vmor %vm1917_vm5, %vm1918_vm0 }
 0x65d   :  { %v1759_v9 = vpop.f32.mrf.mxu1  ;;  %v1914_v41 = vsub.f32 1.0, %v1913_v61  ;;  %vm5258_vm9 = vmor %vm1932_vm6, %vm1933_vm2 }
 0x65e   :  { %v1786_v49 = vadd.f32 %v1759_v9, %v6023_v29  ;;  %v1784_v9 = vadd.f32 %v1753_v16, %v6026_v35  ;;  %v1929_v27 = vsub.f32 1.0, %v1928_v2  ;;  %v1854_v16 = vmul.f32 %v5178_v0, %v1853_v63 }
 0x65f   :  { %v1915_v30 = vmul.f32 %v5180_v25, %v1914_v41  ;;  %v1923_v63 = vand.u32 2147483648, %v5166_v62 }
 0x660   :  { %v2912_v54 = vmul.f32 -1.442695, %v1786_v49  ;;  %v1930_v12 = vmul.f32 %v5182_v21, %v1929_v27 }
 0x662   :  { %3222 = vpow2.f32 %v2912_v54 }
 0x665   :  { %v1762_v55 = vpop.f32.mrf.mxu1 }
 0x666   :  { %v1787_v52 = vadd.f32 %v1762_v55, %v6024_v1  ;;  %v1839_v55 = vmul.f32 %v5176_v17, %v1838_v38  ;;  %v1916_v38 = vadd.f32 %v5180_v25, %v1915_v30 }
 0x668   :  { %v2913_v39 = vmul.f32 -1.442695, %v1787_v52  ;;  %v3223_v24 = vpop.eup %3222  ;;  %v1845_v52 = vand.u32 2147483647, %v5162_v60 }
 0x669   :  { %v5195_v49 = vadd.f32 1.0, %v3223_v24 }
 0x66a   :  { %3224 = vpow2.f32 %v2913_v39  ;;  %vm1846_vm10 = vcmp.eq.f32.partialorder %v1845_v52, 8.507059e+37 }
 0x66b   :  { %vm1967_vm14 = vweird.f32 %v5195_v49 }
 0x66d   :  { %v1765_v20 = vpop.f32.mrf.mxu1 }
 0x66e   :  { %v1788_v5 = vadd.f32 %v1765_v20, %v6025_v56 }
 0x670   :  { %v2914_v11 = vmul.f32 -1.442695, %v1788_v5  ;;  %v3225_v10 = vpop.eup %3224  ;;  %v1862_v5 = vand.u32 2147483648, %v5164_v23 }
 0x671   :  { %v5200_v54 = vadd.f32 1.0, %v3225_v10  ;;  %v1855_v10 = vadd.f32 %v5178_v0, %v1854_v16 }
 0x672   :  { %3226 = vpow2.f32 %v2914_v11  ;;  %v1840_v11 = vadd.f32 %v5176_v17, %v1839_v55  ;;  %v1921_v55 = vand.u32 2147483647, %v5166_v62  ;;  %v1863_v41 = vor.u32 1.1754944e-38, %v1862_v5 }
 0x673   :  { %3228 = vtanh.f32 %v1784_v9  ;;  %v1931_v9 = vadd.f32 %v5182_v21, %v1930_v12  ;;  %vm1982_vm5 = vweird.f32 %v5200_v54 }
 0x674   :  { %3230 = vtanh.f32 %v1785_v34  ;;  %v1938_v34 = vand.u32 2147483648, %v5168_v59  ;;  %v1844_v62 = vsel %vm5225_vm3, %v5176_v17, %v1840_v11  ;;  %v1859_v17 = vsel %vm5238_vm8, %v5178_v0, %v1855_v10 }
 0x675   :  { %v1768_v39 = vpop.f32.mrf.mxu1  ;;  %3232 = vrcp.f32 %v5195_v49  ;;  %v1924_v11 = vor.u32 1.1754944e-38, %v1923_v63  ;;  %v1935_v14 = vsel %vm5258_vm9, %v5182_v21, %v1931_v9  ;;  %vm1922_vm12 = vcmp.eq.f32.partialorder %v1921_v55, 8.507059e+37 }
 0x676   :  { %v1789_v20 = vadd.f32 %v1768_v39, %v6028_v47  ;;  %3234 = vrcp.f32 %v5200_v54  ;;  %v1860_v39 = vand.u32 2147483647, %v5164_v23  ;;  %v1920_v47 = vsel %vm5245_vm7, %v5180_v25, %v1916_v38 }
 0x677   :  { %v1939_v35 = vor.u32 1.1754944e-38, %v1938_v34  ;;  %v1925_v38 = vsel %vm1922_vm12, %v1924_v11, %v1920_v47  ;;  %v2756_v47 = vld [vmem:[%s5910_s9] sm:$0x1f]  ;;  %s3421_s9 = smov 32  }
 0x678   :  { %v3227_v61 = vpop.eup %3226  ;;  %v2915_v2 = vmul.f32 -1.442695, %v1789_v20  ;;  %v1936_v20 = vand.u32 2147483647, %v5168_v59  ;;  %vm1861_vm11 = vcmp.eq.f32.partialorder %v1860_v39, 8.507059e+37  ;;  %v2024_v9 = vmul.f32 %v1925_v38, %v4940_v50 }
 0x679   :  { %v5214_v24 = vadd.f32 1.0, %v3227_v61  ;;  %v3229_v27 = vpop.eup %3228  ;;  %v1864_v0 = vsel %vm1861_vm11, %v1863_v41, %v1859_v17 }
 0x67a   :  { %3236 = vpow2.f32 %v2915_v2  ;;  %v3231_v30 = vpop.eup %3230  ;;  %v1848_v2 = vor.u32 1.1754944e-38, %v1847_v18  ;;  %vm1937_vm13 = vcmp.eq.f32.partialorder %v1936_v20, 8.507059e+37 }
 0x67b   :  { %3238 = vrcp.f32 %v5214_v24  ;;  %v5254_v61 = vpop.eup %3232  ;;  %v1940_v16 = vsel %vm1937_vm13, %v1939_v35, %v1935_v14  ;;  %v2029_v21 = vmul.f32 %v3231_v30, %v1864_v0  ;;  %vm1997_vm0 = vweird.f32 %v5214_v24 }
 0x67c   :  { %v5268_v59 = vpop.eup %3234  ;;  %v1849_v56 = vsel %vm1846_vm10, %v1848_v2, %v1844_v62  ;;  %v1963_v63 = vmul.f32 %v5254_v61, %v5195_v49  ;;  %v2001_v2 = vand.u32 2147483647, %v5214_v24  ;;  %v2003_v17 = vand.u32 2147483648, %v5214_v24 }
 0x67d   :  { %v1771_v12 = vpop.f32.mrf.mxu1  ;;  %v2028_v60 = vmul.f32 %v3229_v27, %v1849_v56  ;;  %v1978_v52 = vmul.f32 %v5268_v59, %v5200_v54  ;;  %v2025_v56 = vmul.f32 %v1940_v16, %v4942_v8  ;;  %vm1983_vm4 = vweird.f32 %v5268_v59 }
 0x67e   :  { %2739 = vrot.lane.b32.xlu0 %v1771_v12, %s3420_s5  ;;  %v1964_v55 = vsub.f32 1.0, %v1963_v63  ;;  %v1988_v16 = vand.u32 2147483648, %v5200_v54  ;;  %vm1968_vm8 = vweird.f32 %v5254_v61  ;;  %vm5317_vm6 = vmor %vm1982_vm5, %vm1983_vm4  ;;  %vm2002_vm12 = vcmp.eq.f32.partialorder %v2001_v2, 8.507059e+37 }
 0x67f   :  { %v5286_v35 = vadd.f32 %v2028_v60, %v2024_v9  ;;  %v1979_v14 = vsub.f32 1.0, %v1978_v52  ;;  %v5288_v27 = vadd.f32 %v2029_v21, %v2025_v56  ;;  %v1986_v60 = vand.u32 2147483647, %v5200_v54  ;;  %vm1969_vm11 = vmor %vm1967_vm14, %vm1968_vm8 }
 0x680   :  { %v3237_v18 = vpop.eup %3236  ;;  %v1965_v8 = vmul.f32 %v5254_v61, %v1964_v55  ;;  %v2004_v9 = vor.u32 1.1754944e-38, %v2003_v17 }
 0x681   :  { %v5273_v25 = vpop.eup %3238  ;;  %v1961_v10 = vadd.f32 1.0, %v3237_v18  ;;  %v1980_v50 = vmul.f32 %v5268_v59, %v1979_v14  ;;  %vm1987_vm13 = vcmp.eq.f32.partialorder %v1986_v60, 8.507059e+37 }
 0x682   :  { %v1993_v5 = vmul.f32 %v5273_v25, %v5214_v24  ;;  %vm1998_vm15 = vweird.f32 %v5273_v25  ;;  %v1966_v63 = vadd.f32 %v5254_v61, %v1965_v8 }
 0x683   :  { %3240 = vrcp.f32 %v1961_v10  ;;  %v2018_v23 = vand.u32 2147483648, %v1961_v10  ;;  %v2016_v41 = vand.u32 2147483647, %v1961_v10  ;;  %v1981_v18 = vadd.f32 %v5268_v59, %v1980_v50  ;;  %vm5304_vm3 = vmor %vm1997_vm0, %vm1998_vm15 }
 0x684   :  { %v1994_v34 = vsub.f32 1.0, %v1993_v5  ;;  %3242 = vtanh.f32 %v5160_v51  ;;  %vm2012_vm7 = vweird.f32 %v1961_v10 }
 0x685   :  { %3244 = vtanh.f32 %v5286_v35  ;;  %v2019_v54 = vor.u32 1.1754944e-38, %v2018_v23  ;;  %vm2017_vm10 = vcmp.eq.f32.partialorder %v2016_v41, 8.507059e+37 }
 0x686   :  { %2759 = vperm.xlu0 %2991, %v2756_v47   ;;  %v1995_v39 = vmul.f32 %v5273_v25, %v1994_v34  ;;  %3246 = vtanh.f32 %v5288_v27  ;;  %v1971_v34 = vand.u32 2147483647, %v5195_v49 }
 0x687   :  { %3248 = vtanh.f32 %v5144_v58 }
 0x688   :  { %v1996_v12 = vadd.f32 %v5273_v25, %v1995_v39  ;;  %v1989_v39 = vor.u32 1.1754944e-38, %v1988_v16  ;;  %vm1972_vm15 = vcmp.eq.f32.partialorder %v1971_v34, 8.507059e+37 }
 0x689   :  { %v3241_v30 = vpop.eup %3240 }
 0x68a   :  { %v2008_v62 = vmul.f32 %v3241_v30, %v1961_v10  ;;  %vm2013_vm2 = vweird.f32 %v3241_v30  ;;  %v3243_v38 = vpop.eup %3242  ;;  %v2000_v5 = vsel %vm5304_vm3, %v5273_v25, %v1996_v12  ;;  %v1973_v10 = vand.u32 2147483648, %v5195_v49 }
 0x68b   :  { %v3245_v52 = vpop.eup %3244  ;;  %vm2014_vm9 = vmor %vm2012_vm7, %vm2013_vm2  ;;  %v1985_v25 = vsel %vm5317_vm6, %v5268_v59, %v1981_v18  ;;  %v2005_v55 = vsel %vm2002_vm12, %v2004_v9, %v2000_v5 }
 0x68c   :  { %v2009_v20 = vsub.f32 1.0, %v2008_v62  ;;  %v3247_v47 = vpop.eup %3246  ;;  %v1990_v50 = vsel %vm1987_vm13, %v1989_v39, %v1985_v25  ;;  %v1974_v8 = vor.u32 1.1754944e-38, %v1973_v10 }
 0x68d   :  { %v2039_v12 = vmul.f32 %v3243_v38, %v1990_v50  ;;  %v3249_v23 = vpop.eup %3248 }
 0x68e   :  { %v2010_v11 = vmul.f32 %v3241_v30, %v2009_v20  ;;  %v2040_v20 = vmul.f32 %v3245_v52, %v2005_v55 }
 0x690   :  { %v2011_v24 = vadd.f32 %v3241_v30, %v2010_v11 }
 0x692   :  { %v2015_v56 = vsel %vm2014_vm9, %v3241_v30, %v2011_v24  ;;  %v1970_v30 = vsel %vm1969_vm11, %v5254_v61, %v1966_v63 }
 0x693   :  { %v2020_v14 = vsel %vm2017_vm10, %v2019_v54, %v2015_v56  ;;  %v1975_v59 = vsel %vm1972_vm15, %v1974_v8, %v1970_v30 }
 0x694   :  { %v2041_v62 = vmul.f32 %v3247_v47, %v2020_v14  ;;  %v2038_v2 = vmul.f32 %v3249_v23, %v1975_v59 }
 0x696   :  { %2054 = vmatpush.msra.mxu2 %v2041_v62 }
 0x698   :  { %2055 = vmatpush.msra.mxu2 %v2040_v20 }
 0x69a   :  { %2056 = vmatpush.msra.mxu2 %v2039_v12 }
 0x69c   :  { %2057 = vmatpush.msra.mxu2 %v2038_v2 }
 0x69d   :  { %2916 = vmatmul.msk.f32.vlgmr.msra.gmra.mxu2 %vm320_vm1, %v4991_v22 }
 0x6a5   :  { %2917 = vmatmul.msk.f32.gmra.mxu2 %vm320_vm1, %v4998_v15 }
 0x6ad   :  { %2918 = vmatmul.msk.f32.gmra.mxu2 %vm320_vm1, %v5005_v53 }
 0x6b5   :  { %2919 = vmatmul.msk.f32.gmra.mxu2 %vm320_vm1, %v5012_v26 }
 0x6bd   :  { %2920 = vmatmul.msk.f32.gmra.mxu2 %vm320_vm1, %v5019_v40 }
 0x6c5   :  { %2921 = vmatmul.msk.f32.gmra.mxu2 %vm320_vm1, %v5026_v31 }
 0x6cd   :  { %2922 = vmatmul.msk.f32.gmra.mxu2 %vm320_vm1, %v5033_v43  ;;  %v6053_v43 = vld [vmem:[#allocation2_spill] sm:$0xff] }
 0x6d5   :  { %2923 = vmatmul.msk.f32.gmra.mxu2 %vm320_vm1, %v5040_v7 }
 0x6dd   :  { %2924 = vmatmul.msk.f32.gmra.mxu2 %vm320_vm1, %v5047_v48 }
 0x6e5   :  { %2925 = vmatmul.msk.f32.gmra.mxu2 %vm320_vm1, %v5054_v57  ;;  %v6054_v57 = vld [vmem:[#allocation8_spill] sm:$0xff] }
 0x6ed   :  { %2926 = vmatmul.msk.f32.gmra.mxu2 %vm320_vm1, %v5061_v6 }
 0x6f5   :  { %2927 = vmatmul.msk.f32.gmra.mxu2 %vm320_vm1, %v5068_v33 }
 0x6fd   :  { %2928 = vmatmul.msk.f32.gmra.mxu2 %vm320_vm1, %v5075_v19 }
 0x705   :  { %2929 = vmatmul.msk.f32.gmra.mxu2 %vm320_vm1, %v5082_v3 }
 0x70d   :  { %2930 = vmatmul.msk.f32.gmra.mxu2 %vm320_vm1, %v5098_v32 }
 0x715   :  { %2931 = vmatmul.msk.f32.gmra.mxu2 %vm320_vm1, %v5105_v13  ;;  %v6055_v13 = vld [vmem:[#allocation5_spill] sm:$0xff] }
 0x71d   :  { %2932 = vmatmul.msk.f32.gmra.mxu2 %vm320_vm1, %v5089_v4 }
 0x720   :  { %v2059_v22 = vpop.f32.mrf.mxu2 }
 0x721   :  { %v2110_v26 = vadd.f32 %v2059_v22, %v3938_v37 }
 0x723   :  { %v2933_v31 = vmul.f32 -1.442695, %v2110_v26 }
 0x725   :  { %3250 = vpow2.f32 %v2933_v31 }
 0x728   :  { %v2062_v15 = vpop.f32.mrf.mxu2 }
 0x729   :  { %v2111_v7 = vadd.f32 %v2062_v15, %v6053_v43 }
 0x72b   :  { %v2934_v33 = vmul.f32 -1.442695, %v2111_v7  ;;  %v3251_v3 = vpop.eup %3250 }
 0x72c   :  { %v2138_v4 = vadd.f32 1.0, %v3251_v3 }
 0x72e   :  { %v2153_v59 = vand.u32 2147483648, %v2138_v4  ;;  %vm2147_vm3 = vweird.f32 %v2138_v4  ;;  %v2151_v23 = vand.u32 2147483647, %v2138_v4 }
 0x730   :  { %v5368_v53 = vpop.f32.mrf.mxu2  ;;  %v2154_v31 = vor.u32 1.1754944e-38, %v2153_v59  ;;  %vm2152_vm6 = vcmp.eq.f32.partialorder %v2151_v23, 8.507059e+37 }
 0x738   :  { %v5371_v40 = vpop.f32.mrf.mxu2 }
 0x740   :  { %v2071_v48 = vpop.f32.mrf.mxu2 }
 0x741   :  { %v2114_v6 = vadd.f32 %v2071_v48, %v6054_v57 }
 0x743   :  { %v2937_v19 = vmul.f32 -1.442695, %v2114_v6 }
 0x745   :  { %3252 = vpow2.f32 %v2937_v19 }
 0x746   :  { %3254 = vpow2.f32 %v2934_v33 }
 0x747   :  { %3256 = vrcp.f32 %v2138_v4 }
 0x748   :  { %v2074_v32 = vpop.f32.mrf.mxu2 }
 0x749   :  { %v2115_v49 = vadd.f32 %v2074_v32, %v6055_v13 }
 0x74b   :  { %v3253_v61 = vpop.eup %3252  ;;  %v2938_v17 = vmul.f32 -1.442695, %v2115_v49 }
 0x74c   :  { %v2214_v11 = vadd.f32 1.0, %v3253_v61  ;;  %v3255_v41 = vpop.eup %3254 }
 0x74d   :  { %3258 = vpow2.f32 %v2938_v17  ;;  %v5376_v18 = vadd.f32 1.0, %v3255_v41  ;;  %v3257_v0 = vpop.eup %3256 }
 0x74e   :  { %3260 = vrcp.f32 %v2214_v11  ;;  %v2143_v5 = vmul.f32 %v3257_v0, %v2138_v4  ;;  %v2229_v30 = vand.u32 2147483648, %v2214_v11  ;;  %vm2223_vm4 = vweird.f32 %v2214_v11 }
 0x74f   :  { %3262 = vrcp.f32 %v5376_v18  ;;  %vm2148_vm0 = vweird.f32 %v3257_v0  ;;  %v2227_v20 = vand.u32 2147483647, %v2214_v11  ;;  %vm2162_vm11 = vweird.f32 %v5376_v18 }
 0x750   :  { %v5378_v38 = vpop.f32.mrf.mxu2  ;;  %v2144_v54 = vsub.f32 1.0, %v2143_v5  ;;  %v2230_v22 = vor.u32 1.1754944e-38, %v2229_v30  ;;  %vm2149_vm5 = vmor %vm2147_vm3, %vm2148_vm0 }
 0x751   :  { %vm2228_vm8 = vcmp.eq.f32.partialorder %v2227_v20, 8.507059e+37 }
 0x752   :  { %v2145_v25 = vmul.f32 %v3257_v0, %v2144_v54  ;;  %v2112_v54 = vadd.f32 %v5368_v53, %v6019_v46 }
 0x753   :  { %v3259_v60 = vpop.eup %3258 }
 0x754   :  { %v3261_v16 = vpop.eup %3260  ;;  %v5381_v52 = vadd.f32 1.0, %v3259_v60  ;;  %v2146_v8 = vadd.f32 %v3257_v0, %v2145_v25 }
 0x755   :  { %v2219_v24 = vmul.f32 %v3261_v16, %v2214_v11  ;;  %v5386_v47 = vpop.eup %3262  ;;  %vm2224_vm14 = vweird.f32 %v3261_v16  ;;  %v2168_v11 = vand.u32 2147483648, %v5376_v18 }
 0x756   :  { %3264 = vrcp.f32 %v5381_v52  ;;  %v2158_v10 = vmul.f32 %v5386_v47, %v5376_v18  ;;  %vm2225_vm2 = vmor %vm2223_vm4, %vm2224_vm14  ;;  %v2150_v26 = vsel %vm2149_vm5, %v3257_v0, %v2146_v8  ;;  %vm2163_vm9 = vweird.f32 %v5386_v47 }
 0x757   :  { %v2220_v21 = vsub.f32 1.0, %v2219_v24  ;;  %v2244_v19 = vand.u32 2147483648, %v5381_v52  ;;  %v2155_v3 = vsel %vm2152_vm6, %v2154_v31, %v2150_v26  ;;  %vm2238_vm10 = vweird.f32 %v5381_v52  ;;  %vm2164_vm13 = vmor %vm2162_vm11, %vm2163_vm9 }
 0x758   :  { %v5384_v63 = vpop.f32.mrf.mxu2  ;;  %v2159_v62 = vsub.f32 1.0, %v2158_v10  ;;  %v2242_v17 = vand.u32 2147483647, %v5381_v52  ;;  %v2166_v0 = vand.u32 2147483647, %v5376_v18  ;;  %v2169_v24 = vor.u32 1.1754944e-38, %v2168_v11 }
 0x759   :  { %v2221_v34 = vmul.f32 %v3261_v16, %v2220_v21  ;;  %v2113_v18 = vadd.f32 %v5371_v40, %v6020_v36 }
 0x75a   :  { %v2160_v15 = vmul.f32 %v5386_v47, %v2159_v62  ;;  %vm2243_vm15 = vcmp.eq.f32.partialorder %v2242_v17, 8.507059e+37  ;;  %vm2167_vm14 = vcmp.eq.f32.partialorder %v2166_v0, 8.507059e+37 }
 0x75b   :  { %v2222_v39 = vadd.f32 %v3261_v16, %v2221_v34 }
 0x75c   :  { %v3265_v9 = vpop.eup %3264  ;;  %v2161_v32 = vadd.f32 %v5386_v47, %v2160_v15 }
 0x75d   :  { %v2234_v56 = vmul.f32 %v3265_v9, %v5381_v52  ;;  %v2226_v2 = vsel %vm2225_vm2, %v3261_v16, %v2222_v39  ;;  %vm2239_vm7 = vweird.f32 %v3265_v9  ;;  %v2245_v16 = vor.u32 1.1754944e-38, %v2244_v19 }
 0x75e   :  { %v2231_v7 = vsel %vm2228_vm8, %v2230_v22, %v2226_v2  ;;  %vm2240_vm12 = vmor %vm2238_vm10, %vm2239_vm7 }
 0x75f   :  { %v2235_v14 = vsub.f32 1.0, %v2234_v56  ;;  %v2358_v49 = vmul.f32 %v2231_v7, %v5144_v58  ;;  %v2165_v58 = vsel %vm2164_vm13, %v5386_v47, %v2161_v32  ;;  %v2116_v56 = vadd.f32 %v5378_v38, %v6021_v45  ;;  %v6056_v32 = vld [vmem:[#allocation11_spill] sm:$0xff] }
 0x760   :  { %v2083_v55 = vpop.f32.mrf.mxu2  ;;  %v2170_v34 = vsel %vm2167_vm14, %v2169_v24, %v2165_v58  ;;  %v2117_v47 = vadd.f32 %v5384_v63, %v6022_v44  ;;  %v6057_v24 = vld [vmem:[#allocation13_spill] sm:$0xff] }
 0x761   :  { %v2118_v50 = vadd.f32 %v2083_v55, %v6017_v28  ;;  %v2236_v12 = vmul.f32 %v3265_v9, %v2235_v14  ;;  %v2935_v14 = vmul.f32 -1.442695, %v2112_v54  ;;  %v2936_v55 = vmul.f32 -1.442695, %v2113_v18  ;;  %v6058_v54 = vld [vmem:[#allocation14_spill] sm:$0xff] }
 0x762   :  { %v2939_v39 = vmul.f32 -1.442695, %v2116_v56  ;;  %v2940_v62 = vmul.f32 -1.442695, %v2117_v47 }
 0x763   :  { %3266 = vtanh.f32 %v2118_v50  ;;  %v2237_v6 = vadd.f32 %v3265_v9, %v2236_v12 }
 0x765   :  { %v2241_v60 = vsel %vm2240_vm12, %v3265_v9, %v2237_v6  ;;  %v1435_v6 = vpop.f32.mrf.mxu0 }
 0x766   :  { %v2246_v52 = vsel %vm2243_vm15, %v2245_v16, %v2241_v60  ;;  %2735 = vrot.lane.b32.xlu2 %v1435_v6, %s3421_s9 }
 0x767   :  { %v2359_v9 = vmul.f32 %v2246_v52, %v5160_v51 }
 0x768   :  { %v2086_v48 = vpop.f32.mrf.mxu2 }
 0x769   :  { %v3267_v33 = vpop.eup %3266  ;;  %v2119_v4 = vadd.f32 %v2086_v48, %v6018_v42 }
 0x76a   :  { %v2362_v61 = vmul.f32 %v3267_v33, %v2155_v3 }
 0x76b   :  { %3268 = vtanh.f32 %v2119_v4 }
 0x76c   :  { %v5401_v41 = vadd.f32 %v2362_v61, %v2358_v49  ;;  %3270 = vpow2.f32 %v2935_v14 }
 0x76d   :  { %3272 = vpow2.f32 %v2936_v55  ;;  %v6059_v55 = vld [vmem:[#allocation15_spill] sm:$0xff] }
 0x76e   :  { %3274 = vpow2.f32 %v2939_v39 }
 0x76f   :  { %3276 = vpow2.f32 %v2940_v62 }
 0x770   :  { %v2089_v5 = vpop.f32.mrf.mxu2 }
 0x771   :  { %v3269_v21 = vpop.eup %3268  ;;  %v2120_v52 = vadd.f32 %v2089_v5, %v6057_v24 }
 0x772   :  { %v2363_v10 = vmul.f32 %v3269_v21, %v2170_v34  ;;  %v3271_v40 = vpop.eup %3270 }
 0x773   :  { %v3273_v51 = vpop.eup %3272  ;;  %v5419_v38 = vadd.f32 1.0, %v3271_v40 }
 0x774   :  { %v5417_v25 = vadd.f32 %v2363_v10, %v2359_v9  ;;  %v3275_v50 = vpop.eup %3274  ;;  %v5421_v20 = vadd.f32 1.0, %v3273_v51 }
 0x775   :  { %v3277_v8 = vpop.eup %3276  ;;  %v5423_v63 = vadd.f32 1.0, %v3275_v50  ;;  %3278 = vrcp.f32 %v5419_v38  ;;  %vm2177_vm4 = vweird.f32 %v5419_v38  ;;  %v2181_v10 = vand.u32 2147483647, %v5419_v38 }
 0x776   :  { %v5425_v59 = vadd.f32 1.0, %v3277_v8  ;;  %3280 = vrcp.f32 %v5421_v20  ;;  %vm2192_vm2 = vweird.f32 %v5421_v20  ;;  %v2198_v51 = vand.u32 2147483648, %v5421_v20 }
 0x777   :  { %3282 = vrcp.f32 %v5423_v63  ;;  %vm2253_vm6 = vweird.f32 %v5423_v63  ;;  %vm2182_vm13 = vcmp.eq.f32.partialorder %v2181_v10, 8.507059e+37 }
 0x778   :  { %v2092_v53 = vpop.f32.mrf.mxu2  ;;  %3284 = vrcp.f32 %v5425_v59  ;;  %vm2268_vm12 = vweird.f32 %v5425_v59 }
 0x779   :  { %v2121_v34 = vadd.f32 %v2092_v53, %v6058_v54  ;;  %v2183_v53 = vand.u32 2147483648, %v5419_v38 }
 0x77b   :  { %v5433_v26 = vpop.eup %3278 }
 0x77c   :  { %v5435_v31 = vpop.eup %3280  ;;  %v2173_v33 = vmul.f32 %v5433_v26, %v5419_v38  ;;  %vm2178_vm0 = vweird.f32 %v5433_v26 }
 0x77d   :  { %v5437_v7 = vpop.eup %3282  ;;  %v2188_v3 = vmul.f32 %v5435_v31, %v5421_v20  ;;  %vm2193_vm3 = vweird.f32 %v5435_v31  ;;  %vm5483_vm7 = vmor %vm2177_vm4, %vm2178_vm0 }
 0x77e   :  { %v5439_v48 = vpop.eup %3284  ;;  %v2249_v4 = vmul.f32 %v5437_v7, %v5423_v63  ;;  %v2174_v0 = vsub.f32 1.0, %v2173_v33  ;;  %vm2254_vm5 = vweird.f32 %v5437_v7  ;;  %v2274_v33 = vand.u32 2147483648, %v5425_v59  ;;  %vm5496_vm9 = vmor %vm2192_vm2, %vm2193_vm3 }
 0x77f   :  { %v2264_v61 = vmul.f32 %v5439_v48, %v5425_v59  ;;  %v2189_v16 = vsub.f32 1.0, %v2188_v3  ;;  %vm2269_vm8 = vweird.f32 %v5439_v48  ;;  %v2196_v3 = vand.u32 2147483647, %v5421_v20  ;;  %vm5503_vm10 = vmor %vm2253_vm6, %vm2254_vm5 }
 0x780   :  { %v2095_v30 = vpop.f32.mrf.mxu2  ;;  %v2250_v58 = vsub.f32 1.0, %v2249_v4  ;;  %v2175_v9 = vmul.f32 %v5433_v26, %v2174_v0  ;;  %vm5516_vm11 = vmor %vm2268_vm12, %vm2269_vm8  ;;  %v2184_v0 = vor.u32 1.1754944e-38, %v2183_v53 }
 0x781   :  { %v2122_v12 = vadd.f32 %v2095_v30, %v6023_v29  ;;  %v2265_v21 = vsub.f32 1.0, %v2264_v61  ;;  %v2190_v5 = vmul.f32 %v5435_v31, %v2189_v16  ;;  %v2272_v61 = vand.u32 2147483647, %v5425_v59 }
 0x782   :  { %v2251_v14 = vmul.f32 %v5437_v7, %v2250_v58  ;;  %v2176_v50 = vadd.f32 %v5433_v26, %v2175_v9  ;;  %v2199_v58 = vor.u32 1.1754944e-38, %v2198_v51  ;;  %vm2197_vm14 = vcmp.eq.f32.partialorder %v2196_v3, 8.507059e+37 }
 0x783   :  { %v2941_v22 = vmul.f32 -1.442695, %v2122_v12  ;;  %v2266_v62 = vmul.f32 %v5439_v48, %v2265_v21  ;;  %vm2273_vm4 = vcmp.eq.f32.partialorder %v2272_v61, 8.507059e+37 }
 0x784   :  { %v2252_v12 = vadd.f32 %v5437_v7, %v2251_v14 }
 0x785   :  { %3286 = vpow2.f32 %v2941_v22 }
 0x788   :  { %v2098_v23 = vpop.f32.mrf.mxu2 }
 0x789   :  { %v2123_v2 = vadd.f32 %v2098_v23, %v6024_v1  ;;  %v2191_v23 = vadd.f32 %v5435_v31, %v2190_v5 }
 0x78b   :  { %v2942_v15 = vmul.f32 -1.442695, %v2123_v2  ;;  %v3287_v11 = vpop.eup %3286  ;;  %v2259_v2 = vand.u32 2147483648, %v5423_v63 }
 0x78c   :  { %v5453_v18 = vadd.f32 1.0, %v3287_v11 }
 0x78d   :  { %3288 = vpow2.f32 %v2942_v15  ;;  %v2267_v15 = vadd.f32 %v5439_v48, %v2266_v62  ;;  %v2260_v16 = vor.u32 1.1754944e-38, %v2259_v2 }
 0x78e   :  { %vm2303_vm0 = vweird.f32 %v5453_v18 }
 0x790   :  { %v2101_v19 = vpop.f32.mrf.mxu2 }
 0x791   :  { %v2124_v49 = vadd.f32 %v2101_v19, %v6056_v32  ;;  %v2257_v19 = vand.u32 2147483647, %v5423_v63  ;;  %v2180_v63 = vsel %vm5483_vm7, %v5433_v26, %v2176_v50  ;;  %v2195_v26 = vsel %vm5496_vm9, %v5435_v31, %v2191_v23 }
 0x792   :  { %v2185_v9 = vsel %vm2182_vm13, %v2184_v0, %v2180_v63  ;;  %v2200_v31 = vsel %vm2197_vm14, %v2199_v58, %v2195_v26 }
 0x793   :  { %v2943_v17 = vmul.f32 -1.442695, %v2124_v49  ;;  %v3289_v60 = vpop.eup %3288  ;;  %vm2258_vm15 = vcmp.eq.f32.partialorder %v2257_v19, 8.507059e+37 }
 0x794   :  { %v5458_v56 = vadd.f32 1.0, %v3289_v60  ;;  %v2256_v60 = vsel %vm5503_vm10, %v5437_v7, %v2252_v12 }
 0x795   :  { %3290 = vpow2.f32 %v2943_v17 }
 0x796   :  { %3292 = vtanh.f32 %v2120_v52  ;;  %v2271_v52 = vsel %vm5516_vm11, %v5439_v48, %v2267_v15  ;;  %vm2318_vm6 = vweird.f32 %v5458_v56  ;;  %v2322_v0 = vand.u32 2147483647, %v5458_v56 }
 0x797   :  { %3294 = vtanh.f32 %v2121_v34  ;;  %v2275_v34 = vor.u32 1.1754944e-38, %v2274_v33 }
 0x798   :  { %v2104_v47 = vpop.f32.mrf.mxu2  ;;  %3296 = vrcp.f32 %v5453_v18 }
 0x799   :  { %v2125_v39 = vadd.f32 %v2104_v47, %v6059_v55  ;;  %3298 = vrcp.f32 %v5458_v56  ;;  %v2261_v47 = vsel %vm2258_vm15, %v2260_v16, %v2256_v60  ;;  %v2324_v60 = vand.u32 2147483648, %v5458_v56 }
 0x79b   :  { %v3291_v40 = vpop.eup %3290  ;;  %v2944_v30 = vmul.f32 -1.442695, %v2125_v39  ;;  %v2276_v39 = vsel %vm2273_vm4, %v2275_v34, %v2271_v52  ;;  %vm2323_vm4 = vcmp.eq.f32.partialorder %v2322_v0, 8.507059e+37 }
 0x79c   :  { %v5472_v8 = vadd.f32 1.0, %v3291_v40  ;;  %v3293_v6 = vpop.eup %3292  ;;  %v2360_v40 = vmul.f32 %v2261_v47, %v5286_v35  ;;  %v2309_v47 = vand.u32 2147483648, %v5453_v18 }
 0x79d   :  { %3300 = vpow2.f32 %v2944_v30  ;;  %v3295_v4 = vpop.eup %3294  ;;  %v2364_v5 = vmul.f32 %v3293_v6, %v2185_v9  ;;  %v2361_v30 = vmul.f32 %v2276_v39, %v5288_v27  ;;  %v2307_v9 = vand.u32 2147483647, %v5453_v18 }
 0x79e   :  { %3302 = vrcp.f32 %v5472_v8  ;;  %v5512_v11 = vpop.eup %3296  ;;  %v2365_v48 = vmul.f32 %v3295_v4, %v2200_v31  ;;  %vm2333_vm5 = vweird.f32 %v5472_v8  ;;  %v2337_v3 = vand.u32 2147483647, %v5472_v8 }
 0x79f   :  { %v5526_v59 = vpop.eup %3298  ;;  %v2299_v53 = vmul.f32 %v5512_v11, %v5453_v18  ;;  %v5541_v50 = vadd.f32 %v2364_v5, %v2360_v40  ;;  %v2339_v4 = vand.u32 2147483648, %v5472_v8  ;;  %vm2304_vm9 = vweird.f32 %v5512_v11  ;;  %v3402_v18 = vld [vmem:[%s5909_s8] sm:$0xff] }
 0x7a0   :  { %v2107_v17 = vpop.f32.mrf.mxu2  ;;  %v2314_v10 = vmul.f32 %v5526_v59, %v5458_v56  ;;  %v5543_v23 = vadd.f32 %v2365_v48, %v2361_v30  ;;  %vm2319_vm3 = vweird.f32 %v5526_v59  ;;  %vm2338_vm15 = vcmp.eq.f32.partialorder %v2337_v3, 8.507059e+37  ;;  %vm2305_vm14 = vmor %vm2303_vm0, %vm2304_vm9  ;;  %v1099_v3 = vpop.f32.mrf.mxu3 }
 0x7a1   :  { %2743 = vrot.lane.b32.xlu1 %v2107_v17, %s3422_s24  ;;  %v2300_v2 = vsub.f32 1.0, %v2299_v53  ;;  %vm5572_vm12 = vmor %vm2318_vm6, %vm2319_vm3  ;;  %v2340_v34 = vor.u32 1.1754944e-38, %v2339_v4  ;;  %v2325_v39 = vor.u32 1.1754944e-38, %v2324_v60  ;;  %v2310_v53 = vor.u32 1.1754944e-38, %v2309_v47  ;;  %v3415_v47 = vld [vmem:[%s5909_s8 + $0x68] sm:$0xff] }
 0x7a2   :  { %v2315_v12 = vsub.f32 1.0, %v2314_v10  ;;  %vm2751_vm0 = vcmask 523264   ;;  %vm2753_vm3 = vcmask 785408   ;;  %v2764_v60 = vlaneseq }
 0x7a3   :  { %v3301_v21 = vpop.eup %3300  ;;  %v2301_v35 = vmul.f32 %v5512_v11, %v2300_v2  ;;  %v3404_v2 = vld [vmem:[%s5909_s8 + $0x10] sm:$0xff] }
 0x7a4   :  { %v5531_v7 = vpop.eup %3302  ;;  %v2297_v14 = vadd.f32 1.0, %v3301_v21  ;;  %v2316_v33 = vmul.f32 %v5526_v59, %v2315_v12  ;;  %v5641_v58 = vshrl.u32 %v2764_v60, 7 }
 0x7a5   :  { %v2329_v62 = vmul.f32 %v5531_v7, %v5472_v8  ;;  %vm2334_vm2 = vweird.f32 %v5531_v7  ;;  %v2302_v52 = vadd.f32 %v5512_v11, %v2301_v35  ;;  %v3409_v35 = vld [vmem:[%s5909_s8 + $0x38] sm:$0xff] }
 0x7a6   :  { %3304 = vrcp.f32 %v2297_v14  ;;  %v2354_v38 = vand.u32 2147483648, %v2297_v14  ;;  %v2352_v63 = vand.u32 2147483647, %v2297_v14  ;;  %v2317_v61 = vadd.f32 %v5526_v59, %v2316_v33  ;;  %vm5559_vm7 = vmor %vm2333_vm5, %vm2334_vm2  ;;  %v3408_v33 = vld [vmem:[%s5909_s8 + $0x30] sm:$0xff] }
 0x7a7   :  { %v2330_v51 = vsub.f32 1.0, %v2329_v62  ;;  %3306 = vtanh.f32 %v5417_v25  ;;  %vm2348_vm10 = vweird.f32 %v2297_v14  ;;  %v2306_v62 = vsel %vm2305_vm14, %v5512_v11, %v2302_v52  ;;  %v3403_v11 = vld [vmem:[%s5909_s8 + $0x8] sm:$0xff] }
 0x7a8   :  { %3308 = vtanh.f32 %v5541_v50  ;;  %v2355_v56 = vor.u32 1.1754944e-38, %v2354_v38  ;;  %vm2353_vm13 = vcmp.eq.f32.partialorder %v2352_v63, 8.507059e+37  ;;  %vm2308_vm2 = vcmp.eq.f32.partialorder %v2307_v9, 8.507059e+37  ;;  %v2740_v38 = vpop.permute.xlu0 %2739  ;;  %v3412_v63 = vld [vmem:[%s5909_s8 + $0x50] sm:$0xff] }
 0x7a9   :  { %v2331_v22 = vmul.f32 %v5531_v7, %v2330_v51  ;;  %3310 = vtanh.f32 %v5543_v23  ;;  %vm2767_vm5 = vcmp.lt.s32.totalorder %v5641_v58, 4 }
 0x7aa   :  { %3312 = vtanh.f32 %v5401_v41 }
 0x7ab   :  { %v2332_v19 = vadd.f32 %v5531_v7, %v2331_v22  ;;  %v3405_v22 = vld [vmem:[%s5909_s8 + $0x18] sm:$0xff] }
 0x7ac   :  { %v3305_v15 = vpop.eup %3304 }
 0x7ad   :  { %v2344_v6 = vmul.f32 %v3305_v15, %v2297_v14  ;;  %vm2349_vm8 = vweird.f32 %v3305_v15  ;;  %v3307_v17 = vpop.eup %3306  ;;  %v2336_v16 = vsel %vm5559_vm7, %v5531_v7, %v2332_v19  ;;  %v2321_v7 = vsel %vm5572_vm12, %v5526_v59, %v2317_v61  ;;  %v3411_v19 = vld [vmem:[%s5909_s8 + $0x48] sm:$0xff] }
 0x7ae   :  { %v3309_v26 = vpop.eup %3308  ;;  %vm2350_vm11 = vmor %vm2348_vm10, %vm2349_vm8  ;;  %v2341_v5 = vsel %vm2338_vm15, %v2340_v34, %v2336_v16  ;;  %v2326_v48 = vsel %vm2323_vm4, %v2325_v39, %v2321_v7  ;;  %v2311_v59 = vsel %vm2308_vm2, %v2310_v53, %v2306_v62  ;;  %v3413_v16 = vld [vmem:[%s5909_s8 + $0x58] sm:$0xff]  ;;  %vm2766_vm8 = vcmp.lt.s32.totalorder %v5641_v58, 2  ;;  %v3414_v34 = vld [vmem:[%s5909_s8 + $0x60] sm:$0xff] }
 0x7af   :  { %v2345_v27 = vsub.f32 1.0, %v2344_v6  ;;  %v3311_v21 = vpop.eup %3310  ;;  %v2376_v40 = vmul.f32 %v3309_v26, %v2341_v5  ;;  %v2375_v51 = vmul.f32 %v3307_v17, %v2326_v48  ;;  %v3407_v6 = vld [vmem:[%s5909_s8 + $0x28] sm:$0xff]  ;;  %v3417_v7 = vld [vmem:[%s5909_s8 + $0x78] sm:$0xff] }
 0x7b0   :  { %v3313_v30 = vpop.eup %3312  ;;  %v5634_v20 = vpop.permute.xlu0 %2759 }
 0x7b1   :  { %v2346_v49 = vmul.f32 %v3305_v15, %v2345_v27  ;;  %v2374_v12 = vmul.f32 %v3313_v30, %v2311_v59  ;;  %v3410_v27 = vld [vmem:[%s5909_s8 + $0x40] sm:$0xff] }
 0x7b3   :  { %v2347_v8 = vadd.f32 %v3305_v15, %v2346_v49 }
 0x7b5   :  { %v2351_v31 = vsel %vm2350_vm11, %v3305_v15, %v2347_v8  ;;  %v3406_v15 = vld [vmem:[%s5909_s8 + $0x20] sm:$0xff] }
 0x7b6   :  { %v2356_v14 = vsel %vm2353_vm13, %v2355_v56, %v2351_v31  ;;  %v3416_v31 = vld [vmem:[%s5909_s8 + $0x70] sm:$0xff] }
 0x7b7   :  { %v2377_v10 = vmul.f32 %v3311_v21, %v2356_v14  ;;  %v5671_v14 = vld [vmem:[%s5909_s8 + $0x80] sm:$0xff] }
 0x7b9   :  { %2390 = vmatpush.msrb.mxu3 %v2377_v10 }
 0x7bb   :  { %2391 = vmatpush.msrb.mxu3 %v2376_v40 }
 0x7bd   :  { %2392 = vmatpush.msrb.mxu3 %v2375_v51 }
 0x7bf   :  { %2393 = vmatpush.msrb.mxu3 %v2374_v12 }
 0x7c0   :  { %2945 = vmatmul.msk.f32.vlgmr.msrb.gmra.mxu3 %vm320_vm1, %v3402_v18  ;;  %v2736_v4 = vpop.permute.xlu2 %2735 }
 0x7c1   :  { %v2750_v49 = vsel %vm320_vm1, %v1099_v3, %v2736_v4 }
 0x7c2   :  { %v2752_v61 = vsel %vm2751_vm0, %v2750_v49, %v2740_v38 }
 0x7c8   :  { %2946 = vmatmul.msk.f32.gmra.mxu3 %vm320_vm1, %v3403_v11 }
 0x7d0   :  { %2947 = vmatmul.msk.f32.gmra.mxu3 %vm320_vm1, %v3404_v2 }
 0x7d8   :  { %2948 = vmatmul.msk.f32.gmra.mxu3 %vm320_vm1, %v3405_v22 }
 0x7e0   :  { %2949 = vmatmul.msk.f32.gmra.mxu3 %vm320_vm1, %v3406_v15 }
 0x7e8   :  { %2950 = vmatmul.msk.f32.gmra.mxu3 %vm320_vm1, %v3407_v6 }
 0x7f0   :  { %2951 = vmatmul.msk.f32.gmra.mxu3 %vm320_vm1, %v3408_v33 }
 0x7f8   :  { %2952 = vmatmul.msk.f32.gmra.mxu3 %vm320_vm1, %v3409_v35 }
 0x800   :  { %2953 = vmatmul.msk.f32.gmra.mxu3 %vm320_vm1, %v3410_v27 }
 0x808   :  { %2954 = vmatmul.msk.f32.gmra.mxu3 %vm320_vm1, %v3411_v19 }
 0x810   :  { %2955 = vmatmul.msk.f32.gmra.mxu3 %vm320_vm1, %v3412_v63 }
 0x813   :  { %v2744_v17 = vpop.permute.xlu1 %2743 }
 0x814   :  { %v2754_v0 = vsel %vm2753_vm3, %v2752_v61, %v2744_v17 }
 0x815   :  { %v2762_v26 = vadd.f32 %v5634_v20, %v2754_v0 }
 0x817   :  { %v2768_v8 = vmul.f32 1.442695, %v2762_v26  ;;  %3314 = vtanh.f32 %v2762_v26 }
 0x818   :  { %2956 = vmatmul.msk.f32.gmra.mxu3 %vm320_vm1, %v3413_v16 }
 0x819   :  { %3316 = vpow2.f32 %v2768_v8 }
 0x81d   :  { %v3315_v52 = vpop.eup %3314 }
 0x81f   :  { %v3317_v21 = vpop.eup %3316 }
 0x820   :  { %v2774_v56 = vsel %vm2767_vm5, %v3317_v21, %v3315_v52  ;;  %2957 = vmatmul.msk.f32.gmra.mxu3 %vm320_vm1, %v3414_v34 }
 0x821   :  { %v2776_v9 = vsel %vm2766_vm8, %v2762_v26, %v2774_v56 }
 0x822   :  { %2778 = vst [vmem:[%s5911_s10] sm:$0x1f] %v2776_v9 }
 0x828   :  { %2958 = vmatmul.msk.f32.gmra.mxu3 %vm320_vm1, %v3415_v47 }
 0x830   :  { %2959 = vmatmul.msk.f32.gmra.mxu3 %vm320_vm1, %v3416_v31 }
 0x838   :  { %2960 = vmatmul.msk.f32.gmra.mxu3 %vm320_vm1, %v3417_v7 }
 0x840   :  { %2961 = vmatmul.msk.f32.gmra.mxu3 %vm320_vm1, %v5671_v14 }
 0x843   :  { %v2395_v5 = vpop.f32.mrf.mxu3 }
 0x844   :  { %v2446_v62 = vadd.f32 %v2395_v5, %v3938_v37 }
 0x846   :  { %v2962_v53 = vmul.f32 -1.442695, %v2446_v62 }
 0x848   :  { %3318 = vpow2.f32 %v2962_v53 }
 0x84b   :  { %v2398_v39 = vpop.f32.mrf.mxu3 }
 0x84c   :  { %v2447_v40 = vadd.f32 %v2398_v39, %v6053_v43 }
 0x84e   :  { %v2963_v30 = vmul.f32 -1.442695, %v2447_v40  ;;  %v3319_v18 = vpop.eup %3318 }
 0x84f   :  { %v2474_v11 = vadd.f32 1.0, %v3319_v18 }
 0x851   :  { %v2489_v7 = vand.u32 2147483648, %v2474_v11  ;;  %vm2483_vm12 = vweird.f32 %v2474_v11  ;;  %v2487_v39 = vand.u32 2147483647, %v2474_v11 }
 0x853   :  { %v5675_v10 = vpop.f32.mrf.mxu3  ;;  %vm2488_vm14 = vcmp.eq.f32.partialorder %v2487_v39, 8.507059e+37 }
 0x85b   :  { %v5678_v48 = vpop.f32.mrf.mxu3 }
 0x863   :  { %v2407_v59 = vpop.f32.mrf.mxu3 }
 0x864   :  { %v2450_v51 = vadd.f32 %v2407_v59, %v6054_v57 }
 0x866   :  { %v2966_v12 = vmul.f32 -1.442695, %v2450_v51  ;;  %v2490_v51 = vor.u32 1.1754944e-38, %v2489_v7 }
 0x868   :  { %3320 = vpow2.f32 %v2966_v12 }
 0x869   :  { %3322 = vpow2.f32 %v2963_v30 }
 0x86a   :  { %3324 = vrcp.f32 %v2474_v11 }
 0x86b   :  { %v2410_v2 = vpop.f32.mrf.mxu3 }
 0x86c   :  { %v2451_v22 = vadd.f32 %v2410_v2, %v6055_v13 }
 0x86e   :  { %v3321_v15 = vpop.eup %3320  ;;  %v2967_v37 = vmul.f32 -1.442695, %v2451_v22 }
 0x86f   :  { %v2550_v6 = vadd.f32 1.0, %v3321_v15  ;;  %v3323_v33 = vpop.eup %3322 }
 0x870   :  { %3326 = vpow2.f32 %v2967_v37  ;;  %v5683_v43 = vadd.f32 1.0, %v3323_v33  ;;  %v3325_v57 = vpop.eup %3324 }
 0x871   :  { %3328 = vrcp.f32 %v2550_v6  ;;  %v2479_v13 = vmul.f32 %v3325_v57, %v2474_v11  ;;  %v2565_v34 = vand.u32 2147483648, %v2550_v6  ;;  %vm2559_vm6 = vweird.f32 %v2550_v6 }
 0x872   :  { %3330 = vrcp.f32 %v5683_v43  ;;  %vm2484_vm9 = vweird.f32 %v3325_v57  ;;  %v2563_v31 = vand.u32 2147483647, %v2550_v6  ;;  %vm2498_vm3 = vweird.f32 %v5683_v43 }
 0x873   :  { %v5685_v35 = vpop.f32.mrf.mxu3  ;;  %v2480_v61 = vsub.f32 1.0, %v2479_v13  ;;  %v2566_v53 = vor.u32 1.1754944e-38, %v2565_v34  ;;  %vm2485_vm11 = vmor %vm2483_vm12, %vm2484_vm9 }
 0x874   :  { %vm2564_vm13 = vcmp.eq.f32.partialorder %v2563_v31, 8.507059e+37 }
 0x875   :  { %v2481_v8 = vmul.f32 %v3325_v57, %v2480_v61 }
 0x876   :  { %v3327_v27 = vpop.eup %3326 }
 0x877   :  { %v3329_v19 = vpop.eup %3328  ;;  %v5688_v38 = vadd.f32 1.0, %v3327_v27  ;;  %v2482_v47 = vadd.f32 %v3325_v57, %v2481_v8  ;;  %v2452_v8 = vadd.f32 %v5685_v35, %v6021_v45 }
 0x878   :  { %v2555_v3 = vmul.f32 %v3329_v19, %v2550_v6  ;;  %v5693_v63 = vpop.eup %3330  ;;  %vm2560_vm7 = vweird.f32 %v3329_v19 }
 0x879   :  { %3332 = vrcp.f32 %v5688_v38  ;;  %v2494_v60 = vmul.f32 %v5693_v63, %v5683_v43  ;;  %vm2561_vm10 = vmor %vm2559_vm6, %vm2560_vm7  ;;  %v2486_v59 = vsel %vm2485_vm11, %v3325_v57, %v2482_v47  ;;  %vm2499_vm4 = vweird.f32 %v5693_v63 }
 0x87a   :  { %v2556_v4 = vsub.f32 1.0, %v2555_v3  ;;  %v2580_v2 = vand.u32 2147483648, %v5688_v38  ;;  %v2491_v22 = vsel %vm2488_vm14, %v2490_v51, %v2486_v59  ;;  %vm2574_vm2 = vweird.f32 %v5688_v38  ;;  %vm2500_vm7 = vmor %vm2498_vm3, %vm2499_vm4 }
 0x87b   :  { %v5691_v49 = vpop.f32.mrf.mxu3  ;;  %v2495_v56 = vsub.f32 1.0, %v2494_v60  ;;  %v2578_v33 = vand.u32 2147483647, %v5688_v38  ;;  %v2504_v57 = vand.u32 2147483648, %v5683_v43 }
 0x87c   :  { %v2557_v0 = vmul.f32 %v3329_v19, %v2556_v4  ;;  %v2581_v3 = vor.u32 1.1754944e-38, %v2580_v2 }
 0x87d   :  { %v2496_v40 = vmul.f32 %v5693_v63, %v2495_v56  ;;  %vm2579_vm6 = vcmp.eq.f32.partialorder %v2578_v33, 8.507059e+37  ;;  %v2505_v13 = vor.u32 1.1754944e-38, %v2504_v57  ;;  %v2968_v56 = vmul.f32 -1.442695, %v2452_v8 }
 0x87e   :  { %v2558_v21 = vadd.f32 %v3329_v19, %v2557_v0  ;;  %v2448_v0 = vadd.f32 %v5675_v10, %v6019_v46 }
 0x87f   :  { %v3333_v17 = vpop.eup %3332  ;;  %v2497_v15 = vadd.f32 %v5693_v63, %v2496_v40 }
 0x880   :  { %v2570_v26 = vmul.f32 %v3333_v17, %v5688_v38  ;;  %v2562_v62 = vsel %vm2561_vm10, %v3329_v19, %v2558_v21  ;;  %vm2575_vm15 = vweird.f32 %v3333_v17  ;;  %v2502_v19 = vand.u32 2147483647, %v5683_v43 }
 0x881   :  { %v2567_v30 = vsel %vm2564_vm13, %v2566_v53, %v2562_v62  ;;  %vm2576_vm0 = vmor %vm2574_vm2, %vm2575_vm15  ;;  %v2449_v43 = vadd.f32 %v5678_v48, %v6020_v36 }
 0x882   :  { %v2571_v16 = vsub.f32 1.0, %v2570_v26  ;;  %v2694_v37 = vmul.f32 %v2567_v30, %v5401_v41  ;;  %v2501_v41 = vsel %vm2500_vm7, %v5693_v63, %v2497_v15  ;;  %vm2503_vm9 = vcmp.eq.f32.partialorder %v2502_v19, 8.507059e+37 }
 0x883   :  { %v2419_v52 = vpop.f32.mrf.mxu3  ;;  %v2506_v60 = vsel %vm2503_vm9, %v2505_v13, %v2501_v41  ;;  %v2453_v63 = vadd.f32 %v5691_v49, %v6022_v44  ;;  %v2965_v21 = vmul.f32 -1.442695, %v2449_v43 }
 0x884   :  { %v2454_v9 = vadd.f32 %v2419_v52, %v6017_v28  ;;  %v2572_v5 = vmul.f32 %v3333_v17, %v2571_v16  ;;  %v2964_v52 = vmul.f32 -1.442695, %v2448_v0 }
 0x885   :  { %v2969_v34 = vmul.f32 -1.442695, %v2453_v63 }
 0x886   :  { %3334 = vtanh.f32 %v2454_v9  ;;  %v2573_v12 = vadd.f32 %v3333_v17, %v2572_v5 }
 0x88b   :  { %v2422_v28 = vpop.f32.mrf.mxu3 }
 0x88c   :  { %v3335_v18 = vpop.eup %3334  ;;  %v2455_v11 = vadd.f32 %v2422_v28, %v6018_v42  ;;  %v2577_v42 = vsel %vm2576_vm0, %v3333_v17, %v2573_v12 }
 0x88d   :  { %v2698_v6 = vmul.f32 %v3335_v18, %v2491_v22  ;;  %v2582_v38 = vsel %vm2579_vm6, %v2581_v3, %v2577_v42 }
 0x88e   :  { %3336 = vtanh.f32 %v2455_v11  ;;  %v2695_v17 = vmul.f32 %v2582_v38, %v5417_v25 }
 0x88f   :  { %v5708_v27 = vadd.f32 %v2698_v6, %v2694_v37  ;;  %3338 = vpow2.f32 %v2964_v52 }
 0x890   :  { %3340 = vpow2.f32 %v2965_v21 }
 0x891   :  { %3342 = vpow2.f32 %v2968_v56 }
 0x892   :  { %3344 = vpow2.f32 %v2969_v34 }
 0x893   :  { %v2425_v4 = vpop.f32.mrf.mxu3 }
 0x894   :  { %v3337_v61 = vpop.eup %3336  ;;  %v2456_v6 = vadd.f32 %v2425_v4, %v6057_v24 }
 0x895   :  { %v2699_v26 = vmul.f32 %v3337_v61, %v2506_v60  ;;  %v3339_v36 = vpop.eup %3338 }
 0x896   :  { %v3341_v25 = vpop.eup %3340  ;;  %v5726_v45 = vadd.f32 1.0, %v3339_v36 }
 0x897   :  { %v5724_v16 = vadd.f32 %v2699_v26, %v2695_v17  ;;  %v3343_v48 = vpop.eup %3342  ;;  %v5728_v35 = vadd.f32 1.0, %v3341_v25 }
 0x898   :  { %v3345_v9 = vpop.eup %3344  ;;  %v5730_v44 = vadd.f32 1.0, %v3343_v48  ;;  %3346 = vrcp.f32 %v5726_v45  ;;  %vm2513_vm10 = vweird.f32 %v5726_v45  ;;  %v2519_v4 = vand.u32 2147483648, %v5726_v45 }
 0x899   :  { %v5732_v49 = vadd.f32 1.0, %v3345_v9  ;;  %3348 = vrcp.f32 %v5728_v35  ;;  %vm2528_vm11 = vweird.f32 %v5728_v35  ;;  %v2534_v0 = vand.u32 2147483648, %v5728_v35 }
 0x89a   :  { %3350 = vrcp.f32 %v5730_v44  ;;  %v2595_v8 = vand.u32 2147483648, %v5730_v44  ;;  %vm2589_vm2 = vweird.f32 %v5730_v44  ;;  %v2593_v34 = vand.u32 2147483647, %v5730_v44 }
 0x89b   :  { %v2428_v46 = vpop.f32.mrf.mxu3  ;;  %3352 = vrcp.f32 %v5732_v49  ;;  %v2610_v56 = vand.u32 2147483648, %v5732_v49  ;;  %v2532_v36 = vand.u32 2147483647, %v5728_v35  ;;  %vm2604_vm7 = vweird.f32 %v5732_v49 }
 0x89c   :  { %v2457_v57 = vadd.f32 %v2428_v46, %v6058_v54  ;;  %v2608_v9 = vand.u32 2147483647, %v5732_v49 }
 0x89e   :  { %v5740_v62 = vpop.eup %3346 }
 0x89f   :  { %v5742_v53 = vpop.eup %3348  ;;  %vm2514_vm12 = vweird.f32 %v5740_v62 }
 0x8a0   :  { %v5744_v40 = vpop.eup %3350  ;;  %v2524_v30 = vmul.f32 %v5742_v53, %v5728_v35  ;;  %vm2529_vm13 = vweird.f32 %v5742_v53  ;;  %vm5789_vm4 = vmor %vm2513_vm10, %vm2514_vm12  ;;  %vm2594_vm10 = vcmp.eq.f32.partialorder %v2593_v34, 8.507059e+37  ;;  %vm2533_vm12 = vcmp.eq.f32.partialorder %v2532_v36, 8.507059e+37 }
 0x8a1   :  { %v5746_v59 = vpop.eup %3352  ;;  %vm2590_vm15 = vweird.f32 %v5744_v40  ;;  %vm5802_vm0 = vmor %vm2528_vm11, %vm2529_vm13  ;;  %vm2609_vm11 = vcmp.eq.f32.partialorder %v2608_v9, 8.507059e+37 }
 0x8a2   :  { %v2600_v12 = vmul.f32 %v5746_v59, %v5732_v49  ;;  %v2525_v15 = vsub.f32 1.0, %v2524_v30  ;;  %vm2605_vm14 = vweird.f32 %v5746_v59  ;;  %vm5809_vm3 = vmor %vm2589_vm2, %vm2590_vm15  ;;  %v2596_v49 = vor.u32 1.1754944e-38, %v2595_v8 }
 0x8a3   :  { %v2431_v10 = vpop.f32.mrf.mxu3  ;;  %vm5822_vm6 = vmor %vm2604_vm7, %vm2605_vm14 }
 0x8a4   :  { %v2458_v47 = vadd.f32 %v2431_v10, %v6023_v29  ;;  %v2509_v29 = vmul.f32 %v5740_v62, %v5726_v45  ;;  %v2601_v33 = vsub.f32 1.0, %v2600_v12  ;;  %v2526_v24 = vmul.f32 %v5742_v53, %v2525_v15 }
 0x8a6   :  { %v2970_v5 = vmul.f32 -1.442695, %v2458_v47  ;;  %v2510_v22 = vsub.f32 1.0, %v2509_v29  ;;  %v2602_v54 = vmul.f32 %v5746_v59, %v2601_v33  ;;  %v2527_v26 = vadd.f32 %v5742_v53, %v2526_v24 }
 0x8a7   :  { %v2611_v29 = vor.u32 1.1754944e-38, %v2610_v56 }
 0x8a8   :  { %3354 = vpow2.f32 %v2970_v5  ;;  %v2511_v42 = vmul.f32 %v5740_v62, %v2510_v22  ;;  %v2603_v52 = vadd.f32 %v5746_v59, %v2602_v54  ;;  %v2535_v5 = vor.u32 1.1754944e-38, %v2534_v0 }
 0x8aa   :  { %v2512_v43 = vadd.f32 %v5740_v62, %v2511_v42 }
 0x8ab   :  { %v2434_v31 = vpop.f32.mrf.mxu3 }
 0x8ac   :  { %v2459_v7 = vadd.f32 %v2434_v31, %v6024_v1  ;;  %v2585_v1 = vmul.f32 %v5744_v40, %v5730_v44  ;;  %v2516_v48 = vsel %vm5789_vm4, %v5740_v62, %v2512_v43  ;;  %v2520_v44 = vor.u32 1.1754944e-38, %v2519_v4 }
 0x8ad   :  { %v2531_v31 = vsel %vm5802_vm0, %v5742_v53, %v2527_v26 }
 0x8ae   :  { %v2971_v39 = vmul.f32 -1.442695, %v2459_v7  ;;  %v3355_v2 = vpop.eup %3354  ;;  %v2586_v37 = vsub.f32 1.0, %v2585_v1  ;;  %v2536_v1 = vsel %vm2533_vm12, %v2535_v5, %v2531_v31 }
 0x8af   :  { %v5759_v19 = vadd.f32 1.0, %v3355_v2 }
 0x8b0   :  { %3356 = vpow2.f32 %v2971_v39  ;;  %v2587_v13 = vmul.f32 %v5744_v40, %v2586_v37  ;;  %v2607_v39 = vsel %vm5822_vm6, %v5746_v59, %v2603_v52 }
 0x8b1   :  { %v2612_v12 = vsel %vm2609_vm11, %v2611_v29, %v2607_v39  ;;  %vm2639_vm13 = vweird.f32 %v5759_v19  ;;  %v2643_v36 = vand.u32 2147483647, %v5759_v19 }
 0x8b2   :  { %v2588_v17 = vadd.f32 %v5744_v40, %v2587_v13  ;;  %v2697_v37 = vmul.f32 %v2612_v12, %v5543_v23 }
 0x8b3   :  { %v2437_v51 = vpop.f32.mrf.mxu3 }
 0x8b4   :  { %v2460_v28 = vadd.f32 %v2437_v51, %v6056_v32  ;;  %v2517_v32 = vand.u32 2147483647, %v5726_v45  ;;  %v2592_v47 = vsel %vm5809_vm3, %v5744_v40, %v2588_v17 }
 0x8b5   :  { %v2597_v40 = vsel %vm2594_vm10, %v2596_v49, %v2592_v47 }
 0x8b6   :  { %v2972_v18 = vmul.f32 -1.442695, %v2460_v28  ;;  %v3357_v11 = vpop.eup %3356  ;;  %vm2518_vm9 = vcmp.eq.f32.partialorder %v2517_v32, 8.507059e+37 }
 0x8b7   :  { %v5764_v3 = vadd.f32 1.0, %v3357_v11  ;;  %v2521_v51 = vsel %vm2518_vm9, %v2520_v44, %v2516_v48  ;;  %v2696_v11 = vmul.f32 %v2597_v40, %v5541_v50 }
 0x8b8   :  { %3358 = vpow2.f32 %v2972_v18 }
 0x8b9   :  { %3360 = vtanh.f32 %v2456_v6  ;;  %vm2654_vm3 = vweird.f32 %v5764_v3  ;;  %v2658_v26 = vand.u32 2147483647, %v5764_v3  ;;  %v2660_v8 = vand.u32 2147483648, %v5764_v3 }
 0x8ba   :  { %3362 = vtanh.f32 %v2457_v57 }
 0x8bb   :  { %v2440_v41 = vpop.f32.mrf.mxu3  ;;  %3364 = vrcp.f32 %v5759_v19  ;;  %v2661_v44 = vor.u32 1.1754944e-38, %v2660_v8 }
 0x8bc   :  { %v2461_v38 = vadd.f32 %v2440_v41, %v6059_v55  ;;  %3366 = vrcp.f32 %v5764_v3 }
 0x8be   :  { %v3359_v61 = vpop.eup %3358  ;;  %v2973_v60 = vmul.f32 -1.442695, %v2461_v38 }
 0x8bf   :  { %v5778_v55 = vadd.f32 1.0, %v3359_v61  ;;  %v3361_v21 = vpop.eup %3360 }
 0x8c0   :  { %3368 = vpow2.f32 %v2973_v60  ;;  %v3363_v25 = vpop.eup %3362  ;;  %v2700_v28 = vmul.f32 %v3361_v21, %v2521_v51 }
 0x8c1   :  { %3370 = vrcp.f32 %v5778_v55  ;;  %v5818_v45 = vpop.eup %3364  ;;  %v2701_v59 = vmul.f32 %v3363_v25, %v2536_v1  ;;  %vm2669_vm4 = vweird.f32 %v5778_v55  ;;  %v2675_v4 = vand.u32 2147483648, %v5778_v55 }
 0x8c2   :  { %v5832_v7 = vpop.eup %3366  ;;  %v2635_v22 = vmul.f32 %v5818_v45, %v5759_v19  ;;  %v2704_v6 = vadd.f32 %v2700_v28, %v2696_v11  ;;  %vm2640_vm7 = vweird.f32 %v5818_v45  ;;  %v2645_v25 = vand.u32 2147483648, %v5759_v19 }
 0x8c3   :  { %v2650_v18 = vmul.f32 %v5832_v7, %v5764_v3  ;;  %v2705_v57 = vadd.f32 %v2701_v59, %v2697_v37  ;;  %vm2655_vm14 = vweird.f32 %v5832_v7  ;;  %v2676_v46 = vor.u32 1.1754944e-38, %v2675_v4  ;;  %v2443_v51 = vpop.f32.mrf.mxu3 }
 0x8c4   :  { %v2636_v42 = vsub.f32 1.0, %v2635_v22  ;;  %vm5872_vm9 = vmor %vm2654_vm3, %vm2655_vm14  ;;  %vm2659_vm14 = vcmp.eq.f32.partialorder %v2658_v26, 8.507059e+37  ;;  %v2646_v5 = vor.u32 1.1754944e-38, %v2645_v25 }
 0x8c5   :  { %v2651_v33 = vsub.f32 1.0, %v2650_v18 }
 0x8c6   :  { %v3369_v62 = vpop.eup %3368  ;;  %v2637_v38 = vmul.f32 %v5818_v45, %v2636_v42 }
 0x8c7   :  { %v5837_v30 = vpop.eup %3370  ;;  %v2633_v53 = vadd.f32 1.0, %v3369_v62  ;;  %v2652_v24 = vmul.f32 %v5832_v7, %v2651_v33 }
 0x8c8   :  { %v2665_v2 = vmul.f32 %v5837_v30, %v5778_v55  ;;  %vm2670_vm15 = vweird.f32 %v5837_v30  ;;  %v2638_v56 = vadd.f32 %v5818_v45, %v2637_v38 }
 0x8c9   :  { %3372 = vrcp.f32 %v2633_v53  ;;  %v2690_v54 = vand.u32 2147483648, %v2633_v53  ;;  %v2688_v0 = vand.u32 2147483647, %v2633_v53  ;;  %v2653_v60 = vadd.f32 %v5832_v7, %v2652_v24  ;;  %vm5859_vm0 = vmor %vm2669_vm4, %vm2670_vm15 }
 0x8ca   :  { %v2666_v15 = vsub.f32 1.0, %v2665_v2  ;;  %3374 = vtanh.f32 %v5724_v16  ;;  %v2673_v16 = vand.u32 2147483647, %v5778_v55  ;;  %vm2684_vm6 = vweird.f32 %v2633_v53  ;;  %vm2641_vm15 = vmor %vm2639_vm13, %vm2640_vm7 }
 0x8cb   :  { %3376 = vtanh.f32 %v2704_v6  ;;  %v2691_v3 = vor.u32 1.1754944e-38, %v2690_v54  ;;  %vm2689_vm12 = vcmp.eq.f32.partialorder %v2688_v0, 8.507059e+37  ;;  %v2657_v48 = vsel %vm5872_vm9, %v5832_v7, %v2653_v60 }
 0x8cc   :  { %v2667_v32 = vmul.f32 %v5837_v30, %v2666_v15  ;;  %3378 = vtanh.f32 %v2705_v57  ;;  %vm2674_vm11 = vcmp.eq.f32.partialorder %v2673_v16, 8.507059e+37  ;;  %v2642_v31 = vsel %vm2641_vm15, %v5818_v45, %v2638_v56 }
 0x8cd   :  { %3380 = vtanh.f32 %v5708_v27  ;;  %v2662_v49 = vsel %vm2659_vm14, %v2661_v44, %v2657_v48  ;;  %vm2644_vm4 = vcmp.eq.f32.partialorder %v2643_v36, 8.507059e+37  ;;  %vm2779_vm13 = vcmask 520192  }
 0x8ce   :  { %v2668_v23 = vadd.f32 %v5837_v30, %v2667_v32  ;;  %v2647_v7 = vsel %vm2644_vm4, %v2646_v5, %v2642_v31 }
 0x8cf   :  { %v3373_v41 = vpop.eup %3372 }
 0x8d0   :  { %v2680_v13 = vmul.f32 %v3373_v41, %v2633_v53  ;;  %vm2685_vm2 = vweird.f32 %v3373_v41  ;;  %v3375_v43 = vpop.eup %3374  ;;  %v2672_v52 = vsel %vm5859_vm0, %v5837_v30, %v2668_v23 }
 0x8d1   :  { %v3377_v63 = vpop.eup %3376  ;;  %vm2686_vm10 = vmor %vm2684_vm6, %vm2685_vm2  ;;  %v2677_v35 = vsel %vm2674_vm11, %v2676_v46, %v2672_v52  ;;  %v2711_v27 = vmul.f32 %v3375_v43, %v2662_v49 }
 0x8d2   :  { %v2681_v50 = vsub.f32 1.0, %v2680_v13  ;;  %v3379_v34 = vpop.eup %3378  ;;  %v2712_v39 = vmul.f32 %v3377_v63, %v2677_v35 }
 0x8d3   :  { %v3381_v62 = vpop.eup %3380 }
 0x8d4   :  { %v2682_v61 = vmul.f32 %v3373_v41, %v2681_v50  ;;  %v2710_v29 = vmul.f32 %v3381_v62, %v2647_v7 }
 0x8d6   :  { %v2683_v55 = vadd.f32 %v3373_v41, %v2682_v61 }
 0x8d8   :  { %v2687_v10 = vsel %vm2686_vm10, %v3373_v41, %v2683_v55 }
 0x8d9   :  { %v2692_v9 = vsel %vm2689_vm12, %v2691_v3, %v2687_v10 }
 0x8da   :  { %v2713_v47 = vmul.f32 %v3379_v34, %v2692_v9 }
 0x8dc   :  { %2726 = vmatpush.msrb.mxu0 %v2713_v47 }
 0x8de   :  { %2727 = vmatpush.msrb.mxu0 %v2712_v39 }
 0x8e0   :  { %2728 = vmatpush.msrb.mxu0 %v2711_v27 }
 0x8e2   :  { %2729 = vmatpush.msrb.mxu0 %v2710_v29 }
 0x8e3   :  { %2974 = vmatmul.msk.f32.vlgmr.msrb.gmra.mxu0 %vm320_vm1, %v5671_v14 }
 0x960   :  { %v2731_v19 = vpop.f32.mrf.mxu0 }
 0x961   :  { %2747 = vrot.lane.b32.xlu2 %v2731_v19, %s3421_s9 }
 0x9bb   :  { %v2748_v45 = vpop.permute.xlu2 %2747 }
 0x9bc   :  { %v2755_v30 = vsel %vm320_vm1, %v2443_v51, %v2748_v45 }
 0x9bd   :  { %v2763_v40 = vadd.f32 %v5634_v20, %v2755_v30 }
 0x9bf   :  { %v2770_v1 = vmul.f32 1.442695, %v2763_v40  ;;  %3382 = vtanh.f32 %v2763_v40 }
 0x9c1   :  { %3384 = vpow2.f32 %v2770_v1 }
 0x9c5   :  { %v3383_v53 = vpop.eup %3382 }
 0x9c7   :  { %v3385_v28 = vpop.eup %3384 }
 0x9c8   :  { %v2775_v12 = vsel %vm2767_vm5, %v3385_v28, %v3383_v53 }
 0x9c9   :  { %v2777_v14 = vsel %vm2766_vm8, %v2763_v40, %v2775_v12 }
 0x9ca   :  { %2780 = vst.msk [vmem:[%s5911_s10 + $0x8] sm:$0x1f] %vm2779_vm13, %v2777_v14 }

</bundles_post_ra>
